<compile_context>
chip_gen: v7x
topology: tpu7x:2x2x1
jax: 0.10.0
libtpu: 0.0.40
codegen_flags: <defaults>
</compile_context>

<pallas_src>
import jax
import jax.numpy as jnp
from jax.experimental import pallas as pl
from jax.experimental.pallas import tpu as pltpu  # noqa: F401  (TPU backend)

# ----------------------------- configuration --------------------------------
INPUT_SIZE   = 16
IN_FEATS     = 16          # original code only type-checks if == INPUT_SIZE
HID_FEATS    = 32
NUM_CELLTYPE = 4
N_LAYERS     = 1           # each MLP = Linear -> ReLU -> (Dropout) -> Linear
IN_PLANE     = 1
T            = 3           # len(time_set)
N_NODES      = 8           # nodes per time layer
N_EDGES      = 2 * N_NODES # in-plane ring edges: i -> i+1 and i -> i-1
LANE         = 128         # lane-dense padded feature width

# packed weight-matrix / bias-row base indices
# (3 mats + 2 bias rows per 2-input MLP, 2 mats + 2 bias rows for decode)
W_TRE, W_TRN, W_IE, W_NM, W_TE, W_TN, W_OUT = 0, 3, 6, 9, 12, 15, 18
B_TRE, B_TRN, B_IE, B_NM, B_TE, B_TN, B_OUT = 0, 2, 4, 6, 8, 10, 12
N_MATS = 20
N_BIAS = 16                # 14 rows used, padded to a sublane multiple


# ----------------------------- fused Pallas kernel ---------------------------
def _cellfate_kernel(x_ref, gsrc_ref, gdst_ref, sdst_ref, wmat_ref, bvec_ref,
                     o_ref):
    f32 = jnp.float32

    def w(k):                                    # (128, 128) zero-padded weight
        return wmat_ref[pl.ds(k * LANE, LANE), :]

    def b(k):                                    # (1, 128) zero-padded bias row
        return bvec_ref[pl.ds(k, 1), :]

    def mlp2(xa, xb, wi, bi):
        # relu([xa | xb] @ W0 + b0) @ W1 + b1, concat-free via split W0.
        h = jnp.dot(xa, w(wi), preferred_element_type=f32)
        h = h + jnp.dot(xb, w(wi + 1), preferred_element_type=f32)
        h = jnp.maximum(h + b(bi), 0.0)
        return jnp.dot(h, w(wi + 2), preferred_element_type=f32) + b(bi + 1)

    def mlp1(x, wi, bi):
        h = jnp.maximum(jnp.dot(x, w(wi), preferred_element_type=f32) + b(bi),
                        0.0)
        return jnp.dot(h, w(wi + 1), preferred_element_type=f32) + b(bi + 1)

    gsrc = gsrc_ref[...]                         # (E, N) one-hot gather (src)
    gdst = gdst_ref[...]                         # (E, N) one-hot gather (dst)
    sdst = sdst_ref[...]                         # (N, E) one-hot scatter-sum
    feats = [x_ref[pl.ds(t * N_NODES, N_NODES), :] for t in range(T)]

    # ---------------- time-reversal pass (edges t+1 -> t) --------------------
    cur = list(feats)
    for _ in range(T - 1):
        new = list(feats)                 # ROPNM_out init = raw feature
        edge_sum = [None] * T
        for c in reversed(range(T - 1)):
            # edge src = node i of t_{c+1}, dst = node i of t_c (skip == 0);
            # one incoming edge per dst -> copy_e+sum == edge output
            edge_sum[c] = mlp2(cur[c + 1], cur[c], W_TRE, B_TRE)
        for c in reversed(range(T - 1)):
            new[c] = mlp2(cur[c], edge_sum[c], W_TRN, B_TRN)
        cur = new                         # last time layer keeps raw feature

    # ---------------- in-plane interaction pass ------------------------------
    ip = list(cur)
    for _ in range(IN_PLANE):
        agg = []
        for t in range(T):
            src_f = jnp.dot(gsrc, ip[t], preferred_element_type=f32)   # gather
            dst_f = jnp.dot(gdst, ip[t], preferred_element_type=f32)
            eo = mlp2(src_f, dst_f, W_IE, B_IE)
            agg.append(jnp.dot(sdst, eo, preferred_element_type=f32))  # segsum
        ip = [mlp2(ip[t], agg[t], W_NM, B_NM) for t in range(T)]
    ip_final = list(ip)                   # IPNM_out{in_plane}

    # ---------------- forward-time pass (edges t -> t+1) ---------------------
    out = list(ip)
    for _ in range(T - 1):
        edge_sum = [None] * T
        for c in range(T - 1):
            edge_sum[c + 1] = mlp2(out[c], out[c + 1], W_TE, B_TE)
        new = [None] * T
        for c in range(T - 1):
            new[c + 1] = mlp2(out[c + 1], edge_sum[c + 1], W_TN, B_TN)
        new[0] = ip_final[0]              # time_set[0] reset to in-plane output
        out = new

    # ---------------- decode (last time layer) -------------------------------
    o_ref[...] = mlp1(out[T - 1], W_OUT, B_OUT).astype(o_ref.dtype)


# ----------------------------- packing helpers -------------------------------
def _pad_mat(wm):
    out = jnp.zeros((LANE, LANE), jnp.float32)
    return out.at[: wm.shape[0], : wm.shape[1]].set(wm.astype(jnp.float32))


def _pad_row(v):
    out = jnp.zeros((1, LANE), jnp.float32)
    return out.at[0, : v.shape[0]].set(v.astype(jnp.float32))


def pack_params(params):
    """Zero-pad every weight to (128,128) / bias to (1,128) and stack them."""
    mats, rows = [], []
    for name in ("time_rev_edge", "time_rev_node", "interaction_edge",
                 "nodemodel", "time_edge", "time_node"):
        w0, b0, w1, b1 = params[name]
        # split W0 (2F, H) into src / dst halves -> concat-free first layer
        mats += [_pad_mat(w0[:IN_FEATS]), _pad_mat(w0[IN_FEATS:]), _pad_mat(w1)]
        rows += [_pad_row(b0), _pad_row(b1)]
    w0, b0, w1, b1 = params["output"]
    mats += [_pad_mat(w0), _pad_mat(w1)]
    rows += [_pad_row(b0), _pad_row(b1)]
    wmat = jnp.concatenate(mats, axis=0)                    # (N_MATS*128, 128)
    bvec = jnp.concatenate(
        rows + [jnp.zeros((N_BIAS - len(rows), LANE), jnp.float32)], axis=0)
    return wmat, bvec


def pack_feats(feats):
    slabs = [jnp.zeros((N_NODES, LANE), jnp.float32)
             .at[:, :INPUT_SIZE].set(f.astype(jnp.float32)) for f in feats]
    return jnp.concatenate(slabs, axis=0)                   # (T*N_NODES, 128)


# ----------------------------- fused forward ---------------------------------
def forward_pallas(params, feats, inter_src, inter_dst):
    """CellFateNetTimeReversal.forward: one pallas_call for the whole model."""
    x = pack_feats(feats)
    wmat, bvec = pack_params(params)
    gsrc = jax.nn.one_hot(inter_src, N_NODES, dtype=jnp.float32)   # (E, N)
    gdst = jax.nn.one_hot(inter_dst, N_NODES, dtype=jnp.float32)   # (E, N)
    sdst = gdst.T                                                  # (N, E)
    out = pl.pallas_call(
        _cellfate_kernel,
        out_shape=jax.ShapeDtypeStruct((N_NODES, LANE), jnp.float32),
    )(x, gsrc, gdst, sdst, wmat, bvec)
    return out[:, :NUM_CELLTYPE]


# ----------------------------- pure-JAX reference ----------------------------
def mlp_jnp(p, x):
    w0, b0, w1, b1 = p
    h = jnp.maximum(x @ w0 + b0, 0.0)
    return h @ w1 + b1


def forward_ref(params, feats, inter_src, inter_dst):
    n = feats[0].shape[0]
    cur = list(feats)
    for _ in range(T - 1):
        new = list(feats)
        edge_sum = [None] * T
        for c in reversed(range(T - 1)):
            edge_sum[c] = mlp_jnp(params["time_rev_edge"],
                                  jnp.concatenate([cur[c + 1], cur[c]], axis=1))
        for c in reversed(range(T - 1)):
            new[c] = mlp_jnp(params["time_rev_node"],
                             jnp.concatenate([cur[c], edge_sum[c]], axis=1))
        cur = new
    ip = list(cur)
    for _ in range(IN_PLANE):
        agg = []
        for t in range(T):
            src_f = ip[t][inter_src]
            dst_f = ip[t][inter_dst]
            eo = mlp_jnp(params["interaction_edge"],
                         jnp.concatenate([src_f, dst_f], axis=1))
            agg.append(jax.ops.segment_sum(eo, inter_dst, num_segments=n))
        new = []
        for t in range(T):
            new.append(mlp_jnp(params["nodemodel"],
                               jnp.concatenate([ip[t], agg[t]], axis=1)))
        ip = new
    ip_final = list(ip)
    out = list(ip)
    for _ in range(T - 1):
        edge_sum = [None] * T
        for c in range(T - 1):
            edge_sum[c + 1] = mlp_jnp(params["time_edge"],
                                      jnp.concatenate([out[c], out[c + 1]],
                                                      axis=1))
        new = [None] * T
        for c in range(T - 1):
            new[c + 1] = mlp_jnp(params["time_node"],
                                 jnp.concatenate([out[c + 1], edge_sum[c + 1]],
                                                 axis=1))
        new[0] = ip_final[0]
        out = new
    return mlp_jnp(params["output"], out[T - 1])


# ----------------------------- params / inputs -------------------------------
def _init_linear(key, din, dout, scale=0.2):
    kw, kb = jax.random.split(key)
    wm = scale * jax.random.normal(kw, (din, dout), jnp.float32)
    bv = scale * jax.random.normal(kb, (dout,), jnp.float32)
    return wm, bv


def _init_mlp(key, din, dout):
    k0, k1 = jax.random.split(key)
    w0, b0 = _init_linear(k0, din, HID_FEATS)
    w1, b1 = _init_linear(k1, HID_FEATS, dout)
    return (w0, b0, w1, b1)


def make_params(key):
    ks = jax.random.split(key, 8)
    two = 2 * IN_FEATS  # skip == 0, edge_switch == 0 -> all concat widths = 2F
    return {
        # 'encode' is dead for skip==0 / NoSelfInfo==0; kept for fidelity only.
        "encode":           _init_mlp(ks[0], INPUT_SIZE, IN_FEATS),
        "time_rev_edge":    _init_mlp(ks[1], two, IN_FEATS),
        "time_rev_node":    _init_mlp(ks[2], two, IN_FEATS),
        "interaction_edge": _init_mlp(ks[3], two, IN_FEATS),
        "nodemodel":        _init_mlp(ks[4], two, IN_FEATS),
        "time_edge":        _init_mlp(ks[5], two, IN_FEATS),
        "time_node":        _init_mlp(ks[6], two, IN_FEATS),
        "output":           _init_mlp(ks[7], IN_FEATS, NUM_CELLTYPE),
    }


if __name__ == "__main__":
    key = jax.random.PRNGKey(0)
    kp, kf = jax.random.split(key)
    params = make_params(kp)

    # raw node features per time layer
    fkeys = jax.random.split(kf, T)
    feats = [jax.random.normal(fkeys[t], (N_NODES, INPUT_SIZE), jnp.float32)
             for t in range(T)]

    # interaction (in-plane) ring edges: i -> i+1 and i -> i-1
    idx = jnp.arange(N_NODES)
    inter_src = jnp.concatenate([idx, idx])
    inter_dst = jnp.concatenate([(idx + 1) % N_NODES, (idx - 1) % N_NODES])

    fwd = jax.jit(forward_pallas)
    out = jax.block_until_ready(fwd(params, feats, inter_src, inter_dst))

    ref = jax.block_until_ready(
        jax.jit(forward_ref)(params, feats, inter_src, inter_dst))

    assert out.shape == (N_NODES, NUM_CELLTYPE), out.shape
    max_err = float(jnp.max(jnp.abs(out - ref)))
    assert jnp.allclose(out, ref, atol=1e-3, rtol=1e-3), max_err

    print("KERNEL_OK")
</pallas_src>

<mosaic_0001>
module attributes {stable_mosaic.version = 11 : i64} {
  func.func @_cellfate_kernel(%arg0: memref<24x128xf32, #tpu.memory_space<vmem>>, %arg1: memref<16x8xf32, #tpu.memory_space<vmem>>, %arg2: memref<16x8xf32, #tpu.memory_space<vmem>>, %arg3: memref<8x16xf32, #tpu.memory_space<vmem>>, %arg4: memref<2560x128xf32, #tpu.memory_space<vmem>>, %arg5: memref<16x128xf32, #tpu.memory_space<vmem>>, %arg6: memref<8x128xf32, #tpu.memory_space<vmem>>) attributes {dimension_semantics = [], scalar_prefetch = 0 : i64, scratch_operands = 0 : i64, tpu.core_type = #tpu.core_type<tc>} {
    %c0 = arith.constant 0 : index
    %c0_0 = arith.constant 0 : index
    %0 = vector.load %arg1[%c0, %c0_0] : memref<16x8xf32, #tpu.memory_space<vmem>>, vector<16x8xf32>
    %c0_1 = arith.constant 0 : index
    %c0_2 = arith.constant 0 : index
    %1 = vector.load %arg2[%c0_1, %c0_2] : memref<16x8xf32, #tpu.memory_space<vmem>>, vector<16x8xf32>
    %c0_3 = arith.constant 0 : index
    %c0_4 = arith.constant 0 : index
    %2 = vector.load %arg3[%c0_3, %c0_4] : memref<8x16xf32, #tpu.memory_space<vmem>>, vector<8x16xf32>
    %c0_5 = arith.constant 0 : index
    %c0_6 = arith.constant 0 : index
    %3 = vector.load %arg0[%c0_5, %c0_6] : memref<24x128xf32, #tpu.memory_space<vmem>>, vector<8x128xf32>
    %c8 = arith.constant 8 : index
    %c0_7 = arith.constant 0 : index
    %4 = vector.load %arg0[%c8, %c0_7] : memref<24x128xf32, #tpu.memory_space<vmem>>, vector<8x128xf32>
    %c16 = arith.constant 16 : index
    %c0_8 = arith.constant 0 : index
    %5 = vector.load %arg0[%c16, %c0_8] : memref<24x128xf32, #tpu.memory_space<vmem>>, vector<8x128xf32>
    %c0_9 = arith.constant 0 : index
    %c0_10 = arith.constant 0 : index
    %6 = vector.load %arg4[%c0_9, %c0_10] : memref<2560x128xf32, #tpu.memory_space<vmem>>, vector<128x128xf32>
    %cst = arith.constant dense<0.000000e+00> : vector<8x128xf32>
    %7 = tpu.matmul %5, %6, %cst {dimension_numbers = #tpu.dot_dimension_numbers<[1], [0], [0], [1], [0, 0, 1, 1], [], []>} : vector<8x128xf32>, vector<128x128xf32>, vector<8x128xf32> -> vector<8x128xf32>
    %c128 = arith.constant 128 : index
    %c0_11 = arith.constant 0 : index
    %8 = vector.load %arg4[%c128, %c0_11] : memref<2560x128xf32, #tpu.memory_space<vmem>>, vector<128x128xf32>
    %cst_12 = arith.constant dense<0.000000e+00> : vector<8x128xf32>
    %9 = tpu.matmul %4, %8, %cst_12 {dimension_numbers = #tpu.dot_dimension_numbers<[1], [0], [0], [1], [0, 0, 1, 1], [], []>} : vector<8x128xf32>, vector<128x128xf32>, vector<8x128xf32> -> vector<8x128xf32>
    %10 = arith.addf %7, %9 : vector<8x128xf32>
    %c0_13 = arith.constant 0 : index
    %c0_14 = arith.constant 0 : index
    %11 = vector.load %arg5[%c0_13, %c0_14] : memref<16x128xf32, #tpu.memory_space<vmem>>, vector<1x128xf32>
    %12 = vector.broadcast %11 : vector<1x128xf32> to vector<8x128xf32>
    %13 = arith.addf %10, %12 : vector<8x128xf32>
    %cst_15 = arith.constant 0.000000e+00 : f32
    %14 = vector.broadcast %cst_15 : f32 to vector<8x128xf32>
    %15 = arith.maximumf %13, %14 : vector<8x128xf32>
    %c256 = arith.constant 256 : index
    %c0_16 = arith.constant 0 : index
    %16 = vector.load %arg4[%c256, %c0_16] : memref<2560x128xf32, #tpu.memory_space<vmem>>, vector<128x128xf32>
    %cst_17 = arith.constant dense<0.000000e+00> : vector<8x128xf32>
    %17 = tpu.matmul %15, %16, %cst_17 {dimension_numbers = #tpu.dot_dimension_numbers<[1], [0], [0], [1], [0, 0, 1, 1], [], []>} : vector<8x128xf32>, vector<128x128xf32>, vector<8x128xf32> -> vector<8x128xf32>
    %c1 = arith.constant 1 : index
    %c0_18 = arith.constant 0 : index
    %18 = vector.load %arg5[%c1, %c0_18] : memref<16x128xf32, #tpu.memory_space<vmem>>, vector<1x128xf32>
    %19 = vector.broadcast %18 : vector<1x128xf32> to vector<8x128xf32>
    %20 = arith.addf %17, %19 : vector<8x128xf32>
    %c0_19 = arith.constant 0 : index
    %c0_20 = arith.constant 0 : index
    %21 = vector.load %arg4[%c0_19, %c0_20] : memref<2560x128xf32, #tpu.memory_space<vmem>>, vector<128x128xf32>
    %cst_21 = arith.constant dense<0.000000e+00> : vector<8x128xf32>
    %22 = tpu.matmul %4, %21, %cst_21 {dimension_numbers = #tpu.dot_dimension_numbers<[1], [0], [0], [1], [0, 0, 1, 1], [], []>} : vector<8x128xf32>, vector<128x128xf32>, vector<8x128xf32> -> vector<8x128xf32>
    %c128_22 = arith.constant 128 : index
    %c0_23 = arith.constant 0 : index
    %23 = vector.load %arg4[%c128_22, %c0_23] : memref<2560x128xf32, #tpu.memory_space<vmem>>, vector<128x128xf32>
    %cst_24 = arith.constant dense<0.000000e+00> : vector<8x128xf32>
    %24 = tpu.matmul %3, %23, %cst_24 {dimension_numbers = #tpu.dot_dimension_numbers<[1], [0], [0], [1], [0, 0, 1, 1], [], []>} : vector<8x128xf32>, vector<128x128xf32>, vector<8x128xf32> -> vector<8x128xf32>
    %25 = arith.addf %22, %24 : vector<8x128xf32>
    %c0_25 = arith.constant 0 : index
    %c0_26 = arith.constant 0 : index
    %26 = vector.load %arg5[%c0_25, %c0_26] : memref<16x128xf32, #tpu.memory_space<vmem>>, vector<1x128xf32>
    %27 = vector.broadcast %26 : vector<1x128xf32> to vector<8x128xf32>
    %28 = arith.addf %25, %27 : vector<8x128xf32>
    %cst_27 = arith.constant 0.000000e+00 : f32
    %29 = vector.broadcast %cst_27 : f32 to vector<8x128xf32>
    %30 = arith.maximumf %28, %29 : vector<8x128xf32>
    %c256_28 = arith.constant 256 : index
    %c0_29 = arith.constant 0 : index
    %31 = vector.load %arg4[%c256_28, %c0_29] : memref<2560x128xf32, #tpu.memory_space<vmem>>, vector<128x128xf32>
    %cst_30 = arith.constant dense<0.000000e+00> : vector<8x128xf32>
    %32 = tpu.matmul %30, %31, %cst_30 {dimension_numbers = #tpu.dot_dimension_numbers<[1], [0], [0], [1], [0, 0, 1, 1], [], []>} : vector<8x128xf32>, vector<128x128xf32>, vector<8x128xf32> -> vector<8x128xf32>
    %c1_31 = arith.constant 1 : index
    %c0_32 = arith.constant 0 : index
    %33 = vector.load %arg5[%c1_31, %c0_32] : memref<16x128xf32, #tpu.memory_space<vmem>>, vector<1x128xf32>
    %34 = vector.broadcast %33 : vector<1x128xf32> to vector<8x128xf32>
    %35 = arith.addf %32, %34 : vector<8x128xf32>
    %c384 = arith.constant 384 : index
    %c0_33 = arith.constant 0 : index
    %36 = vector.load %arg4[%c384, %c0_33] : memref<2560x128xf32, #tpu.memory_space<vmem>>, vector<128x128xf32>
    %cst_34 = arith.constant dense<0.000000e+00> : vector<8x128xf32>
    %37 = tpu.matmul %4, %36, %cst_34 {dimension_numbers = #tpu.dot_dimension_numbers<[1], [0], [0], [1], [0, 0, 1, 1], [], []>} : vector<8x128xf32>, vector<128x128xf32>, vector<8x128xf32> -> vector<8x128xf32>
    %c512 = arith.constant 512 : index
    %c0_35 = arith.constant 0 : index
    %38 = vector.load %arg4[%c512, %c0_35] : memref<2560x128xf32, #tpu.memory_space<vmem>>, vector<128x128xf32>
    %cst_36 = arith.constant dense<0.000000e+00> : vector<8x128xf32>
    %39 = tpu.matmul %20, %38, %cst_36 {dimension_numbers = #tpu.dot_dimension_numbers<[1], [0], [0], [1], [0, 0, 1, 1], [], []>} : vector<8x128xf32>, vector<128x128xf32>, vector<8x128xf32> -> vector<8x128xf32>
    %40 = arith.addf %37, %39 : vector<8x128xf32>
    %c2 = arith.constant 2 : index
    %c0_37 = arith.constant 0 : index
    %41 = vector.load %arg5[%c2, %c0_37] : memref<16x128xf32, #tpu.memory_space<vmem>>, vector<1x128xf32>
    %42 = vector.broadcast %41 : vector<1x128xf32> to vector<8x128xf32>
    %43 = arith.addf %40, %42 : vector<8x128xf32>
    %cst_38 = arith.constant 0.000000e+00 : f32
    %44 = vector.broadcast %cst_38 : f32 to vector<8x128xf32>
    %45 = arith.maximumf %43, %44 : vector<8x128xf32>
    %c640 = arith.constant 640 : index
    %c0_39 = arith.constant 0 : index
    %46 = vector.load %arg4[%c640, %c0_39] : memref<2560x128xf32, #tpu.memory_space<vmem>>, vector<128x128xf32>
    %cst_40 = arith.constant dense<0.000000e+00> : vector<8x128xf32>
    %47 = tpu.matmul %45, %46, %cst_40 {dimension_numbers = #tpu.dot_dimension_numbers<[1], [0], [0], [1], [0, 0, 1, 1], [], []>} : vector<8x128xf32>, vector<128x128xf32>, vector<8x128xf32> -> vector<8x128xf32>
    %c3 = arith.constant 3 : index
    %c0_41 = arith.constant 0 : index
    %48 = vector.load %arg5[%c3, %c0_41] : memref<16x128xf32, #tpu.memory_space<vmem>>, vector<1x128xf32>
    %49 = vector.broadcast %48 : vector<1x128xf32> to vector<8x128xf32>
    %50 = arith.addf %47, %49 : vector<8x128xf32>
    %c384_42 = arith.constant 384 : index
    %c0_43 = arith.constant 0 : index
    %51 = vector.load %arg4[%c384_42, %c0_43] : memref<2560x128xf32, #tpu.memory_space<vmem>>, vector<128x128xf32>
    %cst_44 = arith.constant dense<0.000000e+00> : vector<8x128xf32>
    %52 = tpu.matmul %3, %51, %cst_44 {dimension_numbers = #tpu.dot_dimension_numbers<[1], [0], [0], [1], [0, 0, 1, 1], [], []>} : vector<8x128xf32>, vector<128x128xf32>, vector<8x128xf32> -> vector<8x128xf32>
    %c512_45 = arith.constant 512 : index
    %c0_46 = arith.constant 0 : index
    %53 = vector.load %arg4[%c512_45, %c0_46] : memref<2560x128xf32, #tpu.memory_space<vmem>>, vector<128x128xf32>
    %cst_47 = arith.constant dense<0.000000e+00> : vector<8x128xf32>
    %54 = tpu.matmul %35, %53, %cst_47 {dimension_numbers = #tpu.dot_dimension_numbers<[1], [0], [0], [1], [0, 0, 1, 1], [], []>} : vector<8x128xf32>, vector<128x128xf32>, vector<8x128xf32> -> vector<8x128xf32>
    %55 = arith.addf %52, %54 : vector<8x128xf32>
    %c2_48 = arith.constant 2 : index
    %c0_49 = arith.constant 0 : index
    %56 = vector.load %arg5[%c2_48, %c0_49] : memref<16x128xf32, #tpu.memory_space<vmem>>, vector<1x128xf32>
    %57 = vector.broadcast %56 : vector<1x128xf32> to vector<8x128xf32>
    %58 = arith.addf %55, %57 : vector<8x128xf32>
    %cst_50 = arith.constant 0.000000e+00 : f32
    %59 = vector.broadcast %cst_50 : f32 to vector<8x128xf32>
    %60 = arith.maximumf %58, %59 : vector<8x128xf32>
    %c640_51 = arith.constant 640 : index
    %c0_52 = arith.constant 0 : index
    %61 = vector.load %arg4[%c640_51, %c0_52] : memref<2560x128xf32, #tpu.memory_space<vmem>>, vector<128x128xf32>
    %cst_53 = arith.constant dense<0.000000e+00> : vector<8x128xf32>
    %62 = tpu.matmul %60, %61, %cst_53 {dimension_numbers = #tpu.dot_dimension_numbers<[1], [0], [0], [1], [0, 0, 1, 1], [], []>} : vector<8x128xf32>, vector<128x128xf32>, vector<8x128xf32> -> vector<8x128xf32>
    %c3_54 = arith.constant 3 : index
    %c0_55 = arith.constant 0 : index
    %63 = vector.load %arg5[%c3_54, %c0_55] : memref<16x128xf32, #tpu.memory_space<vmem>>, vector<1x128xf32>
    %64 = vector.broadcast %63 : vector<1x128xf32> to vector<8x128xf32>
    %65 = arith.addf %62, %64 : vector<8x128xf32>
    %c0_56 = arith.constant 0 : index
    %c0_57 = arith.constant 0 : index
    %66 = vector.load %arg4[%c0_56, %c0_57] : memref<2560x128xf32, #tpu.memory_space<vmem>>, vector<128x128xf32>
    %cst_58 = arith.constant dense<0.000000e+00> : vector<8x128xf32>
    %67 = tpu.matmul %5, %66, %cst_58 {dimension_numbers = #tpu.dot_dimension_numbers<[1], [0], [0], [1], [0, 0, 1, 1], [], []>} : vector<8x128xf32>, vector<128x128xf32>, vector<8x128xf32> -> vector<8x128xf32>
    %c128_59 = arith.constant 128 : index
    %c0_60 = arith.constant 0 : index
    %68 = vector.load %arg4[%c128_59, %c0_60] : memref<2560x128xf32, #tpu.memory_space<vmem>>, vector<128x128xf32>
    %cst_61 = arith.constant dense<0.000000e+00> : vector<8x128xf32>
    %69 = tpu.matmul %50, %68, %cst_61 {dimension_numbers = #tpu.dot_dimension_numbers<[1], [0], [0], [1], [0, 0, 1, 1], [], []>} : vector<8x128xf32>, vector<128x128xf32>, vector<8x128xf32> -> vector<8x128xf32>
    %70 = arith.addf %67, %69 : vector<8x128xf32>
    %c0_62 = arith.constant 0 : index
    %c0_63 = arith.constant 0 : index
    %71 = vector.load %arg5[%c0_62, %c0_63] : memref<16x128xf32, #tpu.memory_space<vmem>>, vector<1x128xf32>
    %72 = vector.broadcast %71 : vector<1x128xf32> to vector<8x128xf32>
    %73 = arith.addf %70, %72 : vector<8x128xf32>
    %cst_64 = arith.constant 0.000000e+00 : f32
    %74 = vector.broadcast %cst_64 : f32 to vector<8x128xf32>
    %75 = arith.maximumf %73, %74 : vector<8x128xf32>
    %c256_65 = arith.constant 256 : index
    %c0_66 = arith.constant 0 : index
    %76 = vector.load %arg4[%c256_65, %c0_66] : memref<2560x128xf32, #tpu.memory_space<vmem>>, vector<128x128xf32>
    %cst_67 = arith.constant dense<0.000000e+00> : vector<8x128xf32>
    %77 = tpu.matmul %75, %76, %cst_67 {dimension_numbers = #tpu.dot_dimension_numbers<[1], [0], [0], [1], [0, 0, 1, 1], [], []>} : vector<8x128xf32>, vector<128x128xf32>, vector<8x128xf32> -> vector<8x128xf32>
    %c1_68 = arith.constant 1 : index
    %c0_69 = arith.constant 0 : index
    %78 = vector.load %arg5[%c1_68, %c0_69] : memref<16x128xf32, #tpu.memory_space<vmem>>, vector<1x128xf32>
    %79 = vector.broadcast %78 : vector<1x128xf32> to vector<8x128xf32>
    %80 = arith.addf %77, %79 : vector<8x128xf32>
    %c0_70 = arith.constant 0 : index
    %c0_71 = arith.constant 0 : index
    %81 = vector.load %arg4[%c0_70, %c0_71] : memref<2560x128xf32, #tpu.memory_space<vmem>>, vector<128x128xf32>
    %cst_72 = arith.constant dense<0.000000e+00> : vector<8x128xf32>
    %82 = tpu.matmul %50, %81, %cst_72 {dimension_numbers = #tpu.dot_dimension_numbers<[1], [0], [0], [1], [0, 0, 1, 1], [], []>} : vector<8x128xf32>, vector<128x128xf32>, vector<8x128xf32> -> vector<8x128xf32>
    %c128_73 = arith.constant 128 : index
    %c0_74 = arith.constant 0 : index
    %83 = vector.load %arg4[%c128_73, %c0_74] : memref<2560x128xf32, #tpu.memory_space<vmem>>, vector<128x128xf32>
    %cst_75 = arith.constant dense<0.000000e+00> : vector<8x128xf32>
    %84 = tpu.matmul %65, %83, %cst_75 {dimension_numbers = #tpu.dot_dimension_numbers<[1], [0], [0], [1], [0, 0, 1, 1], [], []>} : vector<8x128xf32>, vector<128x128xf32>, vector<8x128xf32> -> vector<8x128xf32>
    %85 = arith.addf %82, %84 : vector<8x128xf32>
    %c0_76 = arith.constant 0 : index
    %c0_77 = arith.constant 0 : index
    %86 = vector.load %arg5[%c0_76, %c0_77] : memref<16x128xf32, #tpu.memory_space<vmem>>, vector<1x128xf32>
    %87 = vector.broadcast %86 : vector<1x128xf32> to vector<8x128xf32>
    %88 = arith.addf %85, %87 : vector<8x128xf32>
    %cst_78 = arith.constant 0.000000e+00 : f32
    %89 = vector.broadcast %cst_78 : f32 to vector<8x128xf32>
    %90 = arith.maximumf %88, %89 : vector<8x128xf32>
    %c256_79 = arith.constant 256 : index
    %c0_80 = arith.constant 0 : index
    %91 = vector.load %arg4[%c256_79, %c0_80] : memref<2560x128xf32, #tpu.memory_space<vmem>>, vector<128x128xf32>
    %cst_81 = arith.constant dense<0.000000e+00> : vector<8x128xf32>
    %92 = tpu.matmul %90, %91, %cst_81 {dimension_numbers = #tpu.dot_dimension_numbers<[1], [0], [0], [1], [0, 0, 1, 1], [], []>} : vector<8x128xf32>, vector<128x128xf32>, vector<8x128xf32> -> vector<8x128xf32>
    %c1_82 = arith.constant 1 : index
    %c0_83 = arith.constant 0 : index
    %93 = vector.load %arg5[%c1_82, %c0_83] : memref<16x128xf32, #tpu.memory_space<vmem>>, vector<1x128xf32>
    %94 = vector.broadcast %93 : vector<1x128xf32> to vector<8x128xf32>
    %95 = arith.addf %92, %94 : vector<8x128xf32>
    %c384_84 = arith.constant 384 : index
    %c0_85 = arith.constant 0 : index
    %96 = vector.load %arg4[%c384_84, %c0_85] : memref<2560x128xf32, #tpu.memory_space<vmem>>, vector<128x128xf32>
    %cst_86 = arith.constant dense<0.000000e+00> : vector<8x128xf32>
    %97 = tpu.matmul %50, %96, %cst_86 {dimension_numbers = #tpu.dot_dimension_numbers<[1], [0], [0], [1], [0, 0, 1, 1], [], []>} : vector<8x128xf32>, vector<128x128xf32>, vector<8x128xf32> -> vector<8x128xf32>
    %c512_87 = arith.constant 512 : index
    %c0_88 = arith.constant 0 : index
    %98 = vector.load %arg4[%c512_87, %c0_88] : memref<2560x128xf32, #tpu.memory_space<vmem>>, vector<128x128xf32>
    %cst_89 = arith.constant dense<0.000000e+00> : vector<8x128xf32>
    %99 = tpu.matmul %80, %98, %cst_89 {dimension_numbers = #tpu.dot_dimension_numbers<[1], [0], [0], [1], [0, 0, 1, 1], [], []>} : vector<8x128xf32>, vector<128x128xf32>, vector<8x128xf32> -> vector<8x128xf32>
    %100 = arith.addf %97, %99 : vector<8x128xf32>
    %c2_90 = arith.constant 2 : index
    %c0_91 = arith.constant 0 : index
    %101 = vector.load %arg5[%c2_90, %c0_91] : memref<16x128xf32, #tpu.memory_space<vmem>>, vector<1x128xf32>
    %102 = vector.broadcast %101 : vector<1x128xf32> to vector<8x128xf32>
    %103 = arith.addf %100, %102 : vector<8x128xf32>
    %cst_92 = arith.constant 0.000000e+00 : f32
    %104 = vector.broadcast %cst_92 : f32 to vector<8x128xf32>
    %105 = arith.maximumf %103, %104 : vector<8x128xf32>
    %c640_93 = arith.constant 640 : index
    %c0_94 = arith.constant 0 : index
    %106 = vector.load %arg4[%c640_93, %c0_94] : memref<2560x128xf32, #tpu.memory_space<vmem>>, vector<128x128xf32>
    %cst_95 = arith.constant dense<0.000000e+00> : vector<8x128xf32>
    %107 = tpu.matmul %105, %106, %cst_95 {dimension_numbers = #tpu.dot_dimension_numbers<[1], [0], [0], [1], [0, 0, 1, 1], [], []>} : vector<8x128xf32>, vector<128x128xf32>, vector<8x128xf32> -> vector<8x128xf32>
    %c3_96 = arith.constant 3 : index
    %c0_97 = arith.constant 0 : index
    %108 = vector.load %arg5[%c3_96, %c0_97] : memref<16x128xf32, #tpu.memory_space<vmem>>, vector<1x128xf32>
    %109 = vector.broadcast %108 : vector<1x128xf32> to vector<8x128xf32>
    %110 = arith.addf %107, %109 : vector<8x128xf32>
    %c384_98 = arith.constant 384 : index
    %c0_99 = arith.constant 0 : index
    %111 = vector.load %arg4[%c384_98, %c0_99] : memref<2560x128xf32, #tpu.memory_space<vmem>>, vector<128x128xf32>
    %cst_100 = arith.constant dense<0.000000e+00> : vector<8x128xf32>
    %112 = tpu.matmul %65, %111, %cst_100 {dimension_numbers = #tpu.dot_dimension_numbers<[1], [0], [0], [1], [0, 0, 1, 1], [], []>} : vector<8x128xf32>, vector<128x128xf32>, vector<8x128xf32> -> vector<8x128xf32>
    %c512_101 = arith.constant 512 : index
    %c0_102 = arith.constant 0 : index
    %113 = vector.load %arg4[%c512_101, %c0_102] : memref<2560x128xf32, #tpu.memory_space<vmem>>, vector<128x128xf32>
    %cst_103 = arith.constant dense<0.000000e+00> : vector<8x128xf32>
    %114 = tpu.matmul %95, %113, %cst_103 {dimension_numbers = #tpu.dot_dimension_numbers<[1], [0], [0], [1], [0, 0, 1, 1], [], []>} : vector<8x128xf32>, vector<128x128xf32>, vector<8x128xf32> -> vector<8x128xf32>
    %115 = arith.addf %112, %114 : vector<8x128xf32>
    %c2_104 = arith.constant 2 : index
    %c0_105 = arith.constant 0 : index
    %116 = vector.load %arg5[%c2_104, %c0_105] : memref<16x128xf32, #tpu.memory_space<vmem>>, vector<1x128xf32>
    %117 = vector.broadcast %116 : vector<1x128xf32> to vector<8x128xf32>
    %118 = arith.addf %115, %117 : vector<8x128xf32>
    %cst_106 = arith.constant 0.000000e+00 : f32
    %119 = vector.broadcast %cst_106 : f32 to vector<8x128xf32>
    %120 = arith.maximumf %118, %119 : vector<8x128xf32>
    %c640_107 = arith.constant 640 : index
    %c0_108 = arith.constant 0 : index
    %121 = vector.load %arg4[%c640_107, %c0_108] : memref<2560x128xf32, #tpu.memory_space<vmem>>, vector<128x128xf32>
    %cst_109 = arith.constant dense<0.000000e+00> : vector<8x128xf32>
    %122 = tpu.matmul %120, %121, %cst_109 {dimension_numbers = #tpu.dot_dimension_numbers<[1], [0], [0], [1], [0, 0, 1, 1], [], []>} : vector<8x128xf32>, vector<128x128xf32>, vector<8x128xf32> -> vector<8x128xf32>
    %c3_110 = arith.constant 3 : index
    %c0_111 = arith.constant 0 : index
    %123 = vector.load %arg5[%c3_110, %c0_111] : memref<16x128xf32, #tpu.memory_space<vmem>>, vector<1x128xf32>
    %124 = vector.broadcast %123 : vector<1x128xf32> to vector<8x128xf32>
    %125 = arith.addf %122, %124 : vector<8x128xf32>
    %cst_112 = arith.constant dense<0.000000e+00> : vector<16x128xf32>
    %126 = tpu.matmul %0, %125, %cst_112 {dimension_numbers = #tpu.dot_dimension_numbers<[1], [0], [0], [1], [0, 0, 1, 1], [], []>} : vector<16x8xf32>, vector<8x128xf32>, vector<16x128xf32> -> vector<16x128xf32>
    %cst_113 = arith.constant dense<0.000000e+00> : vector<16x128xf32>
    %127 = tpu.matmul %1, %125, %cst_113 {dimension_numbers = #tpu.dot_dimension_numbers<[1], [0], [0], [1], [0, 0, 1, 1], [], []>} : vector<16x8xf32>, vector<8x128xf32>, vector<16x128xf32> -> vector<16x128xf32>
    %c768 = arith.constant 768 : index
    %c0_114 = arith.constant 0 : index
    %128 = vector.load %arg4[%c768, %c0_114] : memref<2560x128xf32, #tpu.memory_space<vmem>>, vector<128x128xf32>
    %cst_115 = arith.constant dense<0.000000e+00> : vector<16x128xf32>
    %129 = tpu.matmul %126, %128, %cst_115 {dimension_numbers = #tpu.dot_dimension_numbers<[1], [0], [0], [1], [0, 0, 1, 1], [], []>} : vector<16x128xf32>, vector<128x128xf32>, vector<16x128xf32> -> vector<16x128xf32>
    %c896 = arith.constant 896 : index
    %c0_116 = arith.constant 0 : index
    %130 = vector.load %arg4[%c896, %c0_116] : memref<2560x128xf32, #tpu.memory_space<vmem>>, vector<128x128xf32>
    %cst_117 = arith.constant dense<0.000000e+00> : vector<16x128xf32>
    %131 = tpu.matmul %127, %130, %cst_117 {dimension_numbers = #tpu.dot_dimension_numbers<[1], [0], [0], [1], [0, 0, 1, 1], [], []>} : vector<16x128xf32>, vector<128x128xf32>, vector<16x128xf32> -> vector<16x128xf32>
    %132 = arith.addf %129, %131 : vector<16x128xf32>
    %c4 = arith.constant 4 : index
    %c0_118 = arith.constant 0 : index
    %133 = vector.load %arg5[%c4, %c0_118] : memref<16x128xf32, #tpu.memory_space<vmem>>, vector<1x128xf32>
    %134 = vector.broadcast %133 : vector<1x128xf32> to vector<16x128xf32>
    %135 = arith.addf %132, %134 : vector<16x128xf32>
    %cst_119 = arith.constant 0.000000e+00 : f32
    %136 = vector.broadcast %cst_119 : f32 to vector<16x128xf32>
    %137 = arith.maximumf %135, %136 : vector<16x128xf32>
    %c1024 = arith.constant 1024 : index
    %c0_120 = arith.constant 0 : index
    %138 = vector.load %arg4[%c1024, %c0_120] : memref<2560x128xf32, #tpu.memory_space<vmem>>, vector<128x128xf32>
    %cst_121 = arith.constant dense<0.000000e+00> : vector<16x128xf32>
    %139 = tpu.matmul %137, %138, %cst_121 {dimension_numbers = #tpu.dot_dimension_numbers<[1], [0], [0], [1], [0, 0, 1, 1], [], []>} : vector<16x128xf32>, vector<128x128xf32>, vector<16x128xf32> -> vector<16x128xf32>
    %c5 = arith.constant 5 : index
    %c0_122 = arith.constant 0 : index
    %140 = vector.load %arg5[%c5, %c0_122] : memref<16x128xf32, #tpu.memory_space<vmem>>, vector<1x128xf32>
    %141 = vector.broadcast %140 : vector<1x128xf32> to vector<16x128xf32>
    %142 = arith.addf %139, %141 : vector<16x128xf32>
    %cst_123 = arith.constant dense<0.000000e+00> : vector<8x128xf32>
    %143 = tpu.matmul %2, %142, %cst_123 {dimension_numbers = #tpu.dot_dimension_numbers<[1], [0], [0], [1], [0, 0, 1, 1], [], []>} : vector<8x16xf32>, vector<16x128xf32>, vector<8x128xf32> -> vector<8x128xf32>
    %cst_124 = arith.constant dense<0.000000e+00> : vector<16x128xf32>
    %144 = tpu.matmul %0, %110, %cst_124 {dimension_numbers = #tpu.dot_dimension_numbers<[1], [0], [0], [1], [0, 0, 1, 1], [], []>} : vector<16x8xf32>, vector<8x128xf32>, vector<16x128xf32> -> vector<16x128xf32>
    %cst_125 = arith.constant dense<0.000000e+00> : vector<16x128xf32>
    %145 = tpu.matmul %1, %110, %cst_125 {dimension_numbers = #tpu.dot_dimension_numbers<[1], [0], [0], [1], [0, 0, 1, 1], [], []>} : vector<16x8xf32>, vector<8x128xf32>, vector<16x128xf32> -> vector<16x128xf32>
    %c768_126 = arith.constant 768 : index
    %c0_127 = arith.constant 0 : index
    %146 = vector.load %arg4[%c768_126, %c0_127] : memref<2560x128xf32, #tpu.memory_space<vmem>>, vector<128x128xf32>
    %cst_128 = arith.constant dense<0.000000e+00> : vector<16x128xf32>
    %147 = tpu.matmul %144, %146, %cst_128 {dimension_numbers = #tpu.dot_dimension_numbers<[1], [0], [0], [1], [0, 0, 1, 1], [], []>} : vector<16x128xf32>, vector<128x128xf32>, vector<16x128xf32> -> vector<16x128xf32>
    %c896_129 = arith.constant 896 : index
    %c0_130 = arith.constant 0 : index
    %148 = vector.load %arg4[%c896_129, %c0_130] : memref<2560x128xf32, #tpu.memory_space<vmem>>, vector<128x128xf32>
    %cst_131 = arith.constant dense<0.000000e+00> : vector<16x128xf32>
    %149 = tpu.matmul %145, %148, %cst_131 {dimension_numbers = #tpu.dot_dimension_numbers<[1], [0], [0], [1], [0, 0, 1, 1], [], []>} : vector<16x128xf32>, vector<128x128xf32>, vector<16x128xf32> -> vector<16x128xf32>
    %150 = arith.addf %147, %149 : vector<16x128xf32>
    %c4_132 = arith.constant 4 : index
    %c0_133 = arith.constant 0 : index
    %151 = vector.load %arg5[%c4_132, %c0_133] : memref<16x128xf32, #tpu.memory_space<vmem>>, vector<1x128xf32>
    %152 = vector.broadcast %151 : vector<1x128xf32> to vector<16x128xf32>
    %153 = arith.addf %150, %152 : vector<16x128xf32>
    %cst_134 = arith.constant 0.000000e+00 : f32
    %154 = vector.broadcast %cst_134 : f32 to vector<16x128xf32>
    %155 = arith.maximumf %153, %154 : vector<16x128xf32>
    %c1024_135 = arith.constant 1024 : index
    %c0_136 = arith.constant 0 : index
    %156 = vector.load %arg4[%c1024_135, %c0_136] : memref<2560x128xf32, #tpu.memory_space<vmem>>, vector<128x128xf32>
    %cst_137 = arith.constant dense<0.000000e+00> : vector<16x128xf32>
    %157 = tpu.matmul %155, %156, %cst_137 {dimension_numbers = #tpu.dot_dimension_numbers<[1], [0], [0], [1], [0, 0, 1, 1], [], []>} : vector<16x128xf32>, vector<128x128xf32>, vector<16x128xf32> -> vector<16x128xf32>
    %c5_138 = arith.constant 5 : index
    %c0_139 = arith.constant 0 : index
    %158 = vector.load %arg5[%c5_138, %c0_139] : memref<16x128xf32, #tpu.memory_space<vmem>>, vector<1x128xf32>
    %159 = vector.broadcast %158 : vector<1x128xf32> to vector<16x128xf32>
    %160 = arith.addf %157, %159 : vector<16x128xf32>
    %cst_140 = arith.constant dense<0.000000e+00> : vector<8x128xf32>
    %161 = tpu.matmul %2, %160, %cst_140 {dimension_numbers = #tpu.dot_dimension_numbers<[1], [0], [0], [1], [0, 0, 1, 1], [], []>} : vector<8x16xf32>, vector<16x128xf32>, vector<8x128xf32> -> vector<8x128xf32>
    %cst_141 = arith.constant dense<0.000000e+00> : vector<16x128xf32>
    %162 = tpu.matmul %0, %5, %cst_141 {dimension_numbers = #tpu.dot_dimension_numbers<[1], [0], [0], [1], [0, 0, 1, 1], [], []>} : vector<16x8xf32>, vector<8x128xf32>, vector<16x128xf32> -> vector<16x128xf32>
    %cst_142 = arith.constant dense<0.000000e+00> : vector<16x128xf32>
    %163 = tpu.matmul %1, %5, %cst_142 {dimension_numbers = #tpu.dot_dimension_numbers<[1], [0], [0], [1], [0, 0, 1, 1], [], []>} : vector<16x8xf32>, vector<8x128xf32>, vector<16x128xf32> -> vector<16x128xf32>
    %c768_143 = arith.constant 768 : index
    %c0_144 = arith.constant 0 : index
    %164 = vector.load %arg4[%c768_143, %c0_144] : memref<2560x128xf32, #tpu.memory_space<vmem>>, vector<128x128xf32>
    %cst_145 = arith.constant dense<0.000000e+00> : vector<16x128xf32>
    %165 = tpu.matmul %162, %164, %cst_145 {dimension_numbers = #tpu.dot_dimension_numbers<[1], [0], [0], [1], [0, 0, 1, 1], [], []>} : vector<16x128xf32>, vector<128x128xf32>, vector<16x128xf32> -> vector<16x128xf32>
    %c896_146 = arith.constant 896 : index
    %c0_147 = arith.constant 0 : index
    %166 = vector.load %arg4[%c896_146, %c0_147] : memref<2560x128xf32, #tpu.memory_space<vmem>>, vector<128x128xf32>
    %cst_148 = arith.constant dense<0.000000e+00> : vector<16x128xf32>
    %167 = tpu.matmul %163, %166, %cst_148 {dimension_numbers = #tpu.dot_dimension_numbers<[1], [0], [0], [1], [0, 0, 1, 1], [], []>} : vector<16x128xf32>, vector<128x128xf32>, vector<16x128xf32> -> vector<16x128xf32>
    %168 = arith.addf %165, %167 : vector<16x128xf32>
    %c4_149 = arith.constant 4 : index
    %c0_150 = arith.constant 0 : index
    %169 = vector.load %arg5[%c4_149, %c0_150] : memref<16x128xf32, #tpu.memory_space<vmem>>, vector<1x128xf32>
    %170 = vector.broadcast %169 : vector<1x128xf32> to vector<16x128xf32>
    %171 = arith.addf %168, %170 : vector<16x128xf32>
    %cst_151 = arith.constant 0.000000e+00 : f32
    %172 = vector.broadcast %cst_151 : f32 to vector<16x128xf32>
    %173 = arith.maximumf %171, %172 : vector<16x128xf32>
    %c1024_152 = arith.constant 1024 : index
    %c0_153 = arith.constant 0 : index
    %174 = vector.load %arg4[%c1024_152, %c0_153] : memref<2560x128xf32, #tpu.memory_space<vmem>>, vector<128x128xf32>
    %cst_154 = arith.constant dense<0.000000e+00> : vector<16x128xf32>
    %175 = tpu.matmul %173, %174, %cst_154 {dimension_numbers = #tpu.dot_dimension_numbers<[1], [0], [0], [1], [0, 0, 1, 1], [], []>} : vector<16x128xf32>, vector<128x128xf32>, vector<16x128xf32> -> vector<16x128xf32>
    %c5_155 = arith.constant 5 : index
    %c0_156 = arith.constant 0 : index
    %176 = vector.load %arg5[%c5_155, %c0_156] : memref<16x128xf32, #tpu.memory_space<vmem>>, vector<1x128xf32>
    %177 = vector.broadcast %176 : vector<1x128xf32> to vector<16x128xf32>
    %178 = arith.addf %175, %177 : vector<16x128xf32>
    %cst_157 = arith.constant dense<0.000000e+00> : vector<8x128xf32>
    %179 = tpu.matmul %2, %178, %cst_157 {dimension_numbers = #tpu.dot_dimension_numbers<[1], [0], [0], [1], [0, 0, 1, 1], [], []>} : vector<8x16xf32>, vector<16x128xf32>, vector<8x128xf32> -> vector<8x128xf32>
    %c1152 = arith.constant 1152 : index
    %c0_158 = arith.constant 0 : index
    %180 = vector.load %arg4[%c1152, %c0_158] : memref<2560x128xf32, #tpu.memory_space<vmem>>, vector<128x128xf32>
    %cst_159 = arith.constant dense<0.000000e+00> : vector<8x128xf32>
    %181 = tpu.matmul %125, %180, %cst_159 {dimension_numbers = #tpu.dot_dimension_numbers<[1], [0], [0], [1], [0, 0, 1, 1], [], []>} : vector<8x128xf32>, vector<128x128xf32>, vector<8x128xf32> -> vector<8x128xf32>
    %c1280 = arith.constant 1280 : index
    %c0_160 = arith.constant 0 : index
    %182 = vector.load %arg4[%c1280, %c0_160] : memref<2560x128xf32, #tpu.memory_space<vmem>>, vector<128x128xf32>
    %cst_161 = arith.constant dense<0.000000e+00> : vector<8x128xf32>
    %183 = tpu.matmul %143, %182, %cst_161 {dimension_numbers = #tpu.dot_dimension_numbers<[1], [0], [0], [1], [0, 0, 1, 1], [], []>} : vector<8x128xf32>, vector<128x128xf32>, vector<8x128xf32> -> vector<8x128xf32>
    %184 = arith.addf %181, %183 : vector<8x128xf32>
    %c6 = arith.constant 6 : index
    %c0_162 = arith.constant 0 : index
    %185 = vector.load %arg5[%c6, %c0_162] : memref<16x128xf32, #tpu.memory_space<vmem>>, vector<1x128xf32>
    %186 = vector.broadcast %185 : vector<1x128xf32> to vector<8x128xf32>
    %187 = arith.addf %184, %186 : vector<8x128xf32>
    %cst_163 = arith.constant 0.000000e+00 : f32
    %188 = vector.broadcast %cst_163 : f32 to vector<8x128xf32>
    %189 = arith.maximumf %187, %188 : vector<8x128xf32>
    %c1408 = arith.constant 1408 : index
    %c0_164 = arith.constant 0 : index
    %190 = vector.load %arg4[%c1408, %c0_164] : memref<2560x128xf32, #tpu.memory_space<vmem>>, vector<128x128xf32>
    %cst_165 = arith.constant dense<0.000000e+00> : vector<8x128xf32>
    %191 = tpu.matmul %189, %190, %cst_165 {dimension_numbers = #tpu.dot_dimension_numbers<[1], [0], [0], [1], [0, 0, 1, 1], [], []>} : vector<8x128xf32>, vector<128x128xf32>, vector<8x128xf32> -> vector<8x128xf32>
    %c7 = arith.constant 7 : index
    %c0_166 = arith.constant 0 : index
    %192 = vector.load %arg5[%c7, %c0_166] : memref<16x128xf32, #tpu.memory_space<vmem>>, vector<1x128xf32>
    %193 = vector.broadcast %192 : vector<1x128xf32> to vector<8x128xf32>
    %194 = arith.addf %191, %193 : vector<8x128xf32>
    %c1152_167 = arith.constant 1152 : index
    %c0_168 = arith.constant 0 : index
    %195 = vector.load %arg4[%c1152_167, %c0_168] : memref<2560x128xf32, #tpu.memory_space<vmem>>, vector<128x128xf32>
    %cst_169 = arith.constant dense<0.000000e+00> : vector<8x128xf32>
    %196 = tpu.matmul %110, %195, %cst_169 {dimension_numbers = #tpu.dot_dimension_numbers<[1], [0], [0], [1], [0, 0, 1, 1], [], []>} : vector<8x128xf32>, vector<128x128xf32>, vector<8x128xf32> -> vector<8x128xf32>
    %c1280_170 = arith.constant 1280 : index
    %c0_171 = arith.constant 0 : index
    %197 = vector.load %arg4[%c1280_170, %c0_171] : memref<2560x128xf32, #tpu.memory_space<vmem>>, vector<128x128xf32>
    %cst_172 = arith.constant dense<0.000000e+00> : vector<8x128xf32>
    %198 = tpu.matmul %161, %197, %cst_172 {dimension_numbers = #tpu.dot_dimension_numbers<[1], [0], [0], [1], [0, 0, 1, 1], [], []>} : vector<8x128xf32>, vector<128x128xf32>, vector<8x128xf32> -> vector<8x128xf32>
    %199 = arith.addf %196, %198 : vector<8x128xf32>
    %c6_173 = arith.constant 6 : index
    %c0_174 = arith.constant 0 : index
    %200 = vector.load %arg5[%c6_173, %c0_174] : memref<16x128xf32, #tpu.memory_space<vmem>>, vector<1x128xf32>
    %201 = vector.broadcast %200 : vector<1x128xf32> to vector<8x128xf32>
    %202 = arith.addf %199, %201 : vector<8x128xf32>
    %cst_175 = arith.constant 0.000000e+00 : f32
    %203 = vector.broadcast %cst_175 : f32 to vector<8x128xf32>
    %204 = arith.maximumf %202, %203 : vector<8x128xf32>
    %c1408_176 = arith.constant 1408 : index
    %c0_177 = arith.constant 0 : index
    %205 = vector.load %arg4[%c1408_176, %c0_177] : memref<2560x128xf32, #tpu.memory_space<vmem>>, vector<128x128xf32>
    %cst_178 = arith.constant dense<0.000000e+00> : vector<8x128xf32>
    %206 = tpu.matmul %204, %205, %cst_178 {dimension_numbers = #tpu.dot_dimension_numbers<[1], [0], [0], [1], [0, 0, 1, 1], [], []>} : vector<8x128xf32>, vector<128x128xf32>, vector<8x128xf32> -> vector<8x128xf32>
    %c7_179 = arith.constant 7 : index
    %c0_180 = arith.constant 0 : index
    %207 = vector.load %arg5[%c7_179, %c0_180] : memref<16x128xf32, #tpu.memory_space<vmem>>, vector<1x128xf32>
    %208 = vector.broadcast %207 : vector<1x128xf32> to vector<8x128xf32>
    %209 = arith.addf %206, %208 : vector<8x128xf32>
    %c1152_181 = arith.constant 1152 : index
    %c0_182 = arith.constant 0 : index
    %210 = vector.load %arg4[%c1152_181, %c0_182] : memref<2560x128xf32, #tpu.memory_space<vmem>>, vector<128x128xf32>
    %cst_183 = arith.constant dense<0.000000e+00> : vector<8x128xf32>
    %211 = tpu.matmul %5, %210, %cst_183 {dimension_numbers = #tpu.dot_dimension_numbers<[1], [0], [0], [1], [0, 0, 1, 1], [], []>} : vector<8x128xf32>, vector<128x128xf32>, vector<8x128xf32> -> vector<8x128xf32>
    %c1280_184 = arith.constant 1280 : index
    %c0_185 = arith.constant 0 : index
    %212 = vector.load %arg4[%c1280_184, %c0_185] : memref<2560x128xf32, #tpu.memory_space<vmem>>, vector<128x128xf32>
    %cst_186 = arith.constant dense<0.000000e+00> : vector<8x128xf32>
    %213 = tpu.matmul %179, %212, %cst_186 {dimension_numbers = #tpu.dot_dimension_numbers<[1], [0], [0], [1], [0, 0, 1, 1], [], []>} : vector<8x128xf32>, vector<128x128xf32>, vector<8x128xf32> -> vector<8x128xf32>
    %214 = arith.addf %211, %213 : vector<8x128xf32>
    %c6_187 = arith.constant 6 : index
    %c0_188 = arith.constant 0 : index
    %215 = vector.load %arg5[%c6_187, %c0_188] : memref<16x128xf32, #tpu.memory_space<vmem>>, vector<1x128xf32>
    %216 = vector.broadcast %215 : vector<1x128xf32> to vector<8x128xf32>
    %217 = arith.addf %214, %216 : vector<8x128xf32>
    %cst_189 = arith.constant 0.000000e+00 : f32
    %218 = vector.broadcast %cst_189 : f32 to vector<8x128xf32>
    %219 = arith.maximumf %217, %218 : vector<8x128xf32>
    %c1408_190 = arith.constant 1408 : index
    %c0_191 = arith.constant 0 : index
    %220 = vector.load %arg4[%c1408_190, %c0_191] : memref<2560x128xf32, #tpu.memory_space<vmem>>, vector<128x128xf32>
    %cst_192 = arith.constant dense<0.000000e+00> : vector<8x128xf32>
    %221 = tpu.matmul %219, %220, %cst_192 {dimension_numbers = #tpu.dot_dimension_numbers<[1], [0], [0], [1], [0, 0, 1, 1], [], []>} : vector<8x128xf32>, vector<128x128xf32>, vector<8x128xf32> -> vector<8x128xf32>
    %c7_193 = arith.constant 7 : index
    %c0_194 = arith.constant 0 : index
    %222 = vector.load %arg5[%c7_193, %c0_194] : memref<16x128xf32, #tpu.memory_space<vmem>>, vector<1x128xf32>
    %223 = vector.broadcast %222 : vector<1x128xf32> to vector<8x128xf32>
    %224 = arith.addf %221, %223 : vector<8x128xf32>
    %c1536 = arith.constant 1536 : index
    %c0_195 = arith.constant 0 : index
    %225 = vector.load %arg4[%c1536, %c0_195] : memref<2560x128xf32, #tpu.memory_space<vmem>>, vector<128x128xf32>
    %cst_196 = arith.constant dense<0.000000e+00> : vector<8x128xf32>
    %226 = tpu.matmul %194, %225, %cst_196 {dimension_numbers = #tpu.dot_dimension_numbers<[1], [0], [0], [1], [0, 0, 1, 1], [], []>} : vector<8x128xf32>, vector<128x128xf32>, vector<8x128xf32> -> vector<8x128xf32>
    %c1664 = arith.constant 1664 : index
    %c0_197 = arith.constant 0 : index
    %227 = vector.load %arg4[%c1664, %c0_197] : memref<2560x128xf32, #tpu.memory_space<vmem>>, vector<128x128xf32>
    %cst_198 = arith.constant dense<0.000000e+00> : vector<8x128xf32>
    %228 = tpu.matmul %209, %227, %cst_198 {dimension_numbers = #tpu.dot_dimension_numbers<[1], [0], [0], [1], [0, 0, 1, 1], [], []>} : vector<8x128xf32>, vector<128x128xf32>, vector<8x128xf32> -> vector<8x128xf32>
    %229 = arith.addf %226, %228 : vector<8x128xf32>
    %c8_199 = arith.constant 8 : index
    %c0_200 = arith.constant 0 : index
    %230 = vector.load %arg5[%c8_199, %c0_200] : memref<16x128xf32, #tpu.memory_space<vmem>>, vector<1x128xf32>
    %231 = vector.broadcast %230 : vector<1x128xf32> to vector<8x128xf32>
    %232 = arith.addf %229, %231 : vector<8x128xf32>
    %cst_201 = arith.constant 0.000000e+00 : f32
    %233 = vector.broadcast %cst_201 : f32 to vector<8x128xf32>
    %234 = arith.maximumf %232, %233 : vector<8x128xf32>
    %c1792 = arith.constant 1792 : index
    %c0_202 = arith.constant 0 : index
    %235 = vector.load %arg4[%c1792, %c0_202] : memref<2560x128xf32, #tpu.memory_space<vmem>>, vector<128x128xf32>
    %cst_203 = arith.constant dense<0.000000e+00> : vector<8x128xf32>
    %236 = tpu.matmul %234, %235, %cst_203 {dimension_numbers = #tpu.dot_dimension_numbers<[1], [0], [0], [1], [0, 0, 1, 1], [], []>} : vector<8x128xf32>, vector<128x128xf32>, vector<8x128xf32> -> vector<8x128xf32>
    %c9 = arith.constant 9 : index
    %c0_204 = arith.constant 0 : index
    %237 = vector.load %arg5[%c9, %c0_204] : memref<16x128xf32, #tpu.memory_space<vmem>>, vector<1x128xf32>
    %238 = vector.broadcast %237 : vector<1x128xf32> to vector<8x128xf32>
    %239 = arith.addf %236, %238 : vector<8x128xf32>
    %c1536_205 = arith.constant 1536 : index
    %c0_206 = arith.constant 0 : index
    %240 = vector.load %arg4[%c1536_205, %c0_206] : memref<2560x128xf32, #tpu.memory_space<vmem>>, vector<128x128xf32>
    %cst_207 = arith.constant dense<0.000000e+00> : vector<8x128xf32>
    %241 = tpu.matmul %209, %240, %cst_207 {dimension_numbers = #tpu.dot_dimension_numbers<[1], [0], [0], [1], [0, 0, 1, 1], [], []>} : vector<8x128xf32>, vector<128x128xf32>, vector<8x128xf32> -> vector<8x128xf32>
    %c1664_208 = arith.constant 1664 : index
    %c0_209 = arith.constant 0 : index
    %242 = vector.load %arg4[%c1664_208, %c0_209] : memref<2560x128xf32, #tpu.memory_space<vmem>>, vector<128x128xf32>
    %cst_210 = arith.constant dense<0.000000e+00> : vector<8x128xf32>
    %243 = tpu.matmul %224, %242, %cst_210 {dimension_numbers = #tpu.dot_dimension_numbers<[1], [0], [0], [1], [0, 0, 1, 1], [], []>} : vector<8x128xf32>, vector<128x128xf32>, vector<8x128xf32> -> vector<8x128xf32>
    %244 = arith.addf %241, %243 : vector<8x128xf32>
    %c8_211 = arith.constant 8 : index
    %c0_212 = arith.constant 0 : index
    %245 = vector.load %arg5[%c8_211, %c0_212] : memref<16x128xf32, #tpu.memory_space<vmem>>, vector<1x128xf32>
    %246 = vector.broadcast %245 : vector<1x128xf32> to vector<8x128xf32>
    %247 = arith.addf %244, %246 : vector<8x128xf32>
    %cst_213 = arith.constant 0.000000e+00 : f32
    %248 = vector.broadcast %cst_213 : f32 to vector<8x128xf32>
    %249 = arith.maximumf %247, %248 : vector<8x128xf32>
    %c1792_214 = arith.constant 1792 : index
    %c0_215 = arith.constant 0 : index
    %250 = vector.load %arg4[%c1792_214, %c0_215] : memref<2560x128xf32, #tpu.memory_space<vmem>>, vector<128x128xf32>
    %cst_216 = arith.constant dense<0.000000e+00> : vector<8x128xf32>
    %251 = tpu.matmul %249, %250, %cst_216 {dimension_numbers = #tpu.dot_dimension_numbers<[1], [0], [0], [1], [0, 0, 1, 1], [], []>} : vector<8x128xf32>, vector<128x128xf32>, vector<8x128xf32> -> vector<8x128xf32>
    %c9_217 = arith.constant 9 : index
    %c0_218 = arith.constant 0 : index
    %252 = vector.load %arg5[%c9_217, %c0_218] : memref<16x128xf32, #tpu.memory_space<vmem>>, vector<1x128xf32>
    %253 = vector.broadcast %252 : vector<1x128xf32> to vector<8x128xf32>
    %254 = arith.addf %251, %253 : vector<8x128xf32>
    %c1920 = arith.constant 1920 : index
    %c0_219 = arith.constant 0 : index
    %255 = vector.load %arg4[%c1920, %c0_219] : memref<2560x128xf32, #tpu.memory_space<vmem>>, vector<128x128xf32>
    %cst_220 = arith.constant dense<0.000000e+00> : vector<8x128xf32>
    %256 = tpu.matmul %209, %255, %cst_220 {dimension_numbers = #tpu.dot_dimension_numbers<[1], [0], [0], [1], [0, 0, 1, 1], [], []>} : vector<8x128xf32>, vector<128x128xf32>, vector<8x128xf32> -> vector<8x128xf32>
    %c2048 = arith.constant 2048 : index
    %c0_221 = arith.constant 0 : index
    %257 = vector.load %arg4[%c2048, %c0_221] : memref<2560x128xf32, #tpu.memory_space<vmem>>, vector<128x128xf32>
    %cst_222 = arith.constant dense<0.000000e+00> : vector<8x128xf32>
    %258 = tpu.matmul %239, %257, %cst_222 {dimension_numbers = #tpu.dot_dimension_numbers<[1], [0], [0], [1], [0, 0, 1, 1], [], []>} : vector<8x128xf32>, vector<128x128xf32>, vector<8x128xf32> -> vector<8x128xf32>
    %259 = arith.addf %256, %258 : vector<8x128xf32>
    %c10 = arith.constant 10 : index
    %c0_223 = arith.constant 0 : index
    %260 = vector.load %arg5[%c10, %c0_223] : memref<16x128xf32, #tpu.memory_space<vmem>>, vector<1x128xf32>
    %261 = vector.broadcast %260 : vector<1x128xf32> to vector<8x128xf32>
    %262 = arith.addf %259, %261 : vector<8x128xf32>
    %cst_224 = arith.constant 0.000000e+00 : f32
    %263 = vector.broadcast %cst_224 : f32 to vector<8x128xf32>
    %264 = arith.maximumf %262, %263 : vector<8x128xf32>
    %c2176 = arith.constant 2176 : index
    %c0_225 = arith.constant 0 : index
    %265 = vector.load %arg4[%c2176, %c0_225] : memref<2560x128xf32, #tpu.memory_space<vmem>>, vector<128x128xf32>
    %cst_226 = arith.constant dense<0.000000e+00> : vector<8x128xf32>
    %266 = tpu.matmul %264, %265, %cst_226 {dimension_numbers = #tpu.dot_dimension_numbers<[1], [0], [0], [1], [0, 0, 1, 1], [], []>} : vector<8x128xf32>, vector<128x128xf32>, vector<8x128xf32> -> vector<8x128xf32>
    %c11 = arith.constant 11 : index
    %c0_227 = arith.constant 0 : index
    %267 = vector.load %arg5[%c11, %c0_227] : memref<16x128xf32, #tpu.memory_space<vmem>>, vector<1x128xf32>
    %268 = vector.broadcast %267 : vector<1x128xf32> to vector<8x128xf32>
    %269 = arith.addf %266, %268 : vector<8x128xf32>
    %c1920_228 = arith.constant 1920 : index
    %c0_229 = arith.constant 0 : index
    %270 = vector.load %arg4[%c1920_228, %c0_229] : memref<2560x128xf32, #tpu.memory_space<vmem>>, vector<128x128xf32>
    %cst_230 = arith.constant dense<0.000000e+00> : vector<8x128xf32>
    %271 = tpu.matmul %224, %270, %cst_230 {dimension_numbers = #tpu.dot_dimension_numbers<[1], [0], [0], [1], [0, 0, 1, 1], [], []>} : vector<8x128xf32>, vector<128x128xf32>, vector<8x128xf32> -> vector<8x128xf32>
    %c2048_231 = arith.constant 2048 : index
    %c0_232 = arith.constant 0 : index
    %272 = vector.load %arg4[%c2048_231, %c0_232] : memref<2560x128xf32, #tpu.memory_space<vmem>>, vector<128x128xf32>
    %cst_233 = arith.constant dense<0.000000e+00> : vector<8x128xf32>
    %273 = tpu.matmul %254, %272, %cst_233 {dimension_numbers = #tpu.dot_dimension_numbers<[1], [0], [0], [1], [0, 0, 1, 1], [], []>} : vector<8x128xf32>, vector<128x128xf32>, vector<8x128xf32> -> vector<8x128xf32>
    %274 = arith.addf %271, %273 : vector<8x128xf32>
    %c10_234 = arith.constant 10 : index
    %c0_235 = arith.constant 0 : index
    %275 = vector.load %arg5[%c10_234, %c0_235] : memref<16x128xf32, #tpu.memory_space<vmem>>, vector<1x128xf32>
    %276 = vector.broadcast %275 : vector<1x128xf32> to vector<8x128xf32>
    %277 = arith.addf %274, %276 : vector<8x128xf32>
    %cst_236 = arith.constant 0.000000e+00 : f32
    %278 = vector.broadcast %cst_236 : f32 to vector<8x128xf32>
    %279 = arith.maximumf %277, %278 : vector<8x128xf32>
    %c2176_237 = arith.constant 2176 : index
    %c0_238 = arith.constant 0 : index
    %280 = vector.load %arg4[%c2176_237, %c0_238] : memref<2560x128xf32, #tpu.memory_space<vmem>>, vector<128x128xf32>
    %cst_239 = arith.constant dense<0.000000e+00> : vector<8x128xf32>
    %281 = tpu.matmul %279, %280, %cst_239 {dimension_numbers = #tpu.dot_dimension_numbers<[1], [0], [0], [1], [0, 0, 1, 1], [], []>} : vector<8x128xf32>, vector<128x128xf32>, vector<8x128xf32> -> vector<8x128xf32>
    %c11_240 = arith.constant 11 : index
    %c0_241 = arith.constant 0 : index
    %282 = vector.load %arg5[%c11_240, %c0_241] : memref<16x128xf32, #tpu.memory_space<vmem>>, vector<1x128xf32>
    %283 = vector.broadcast %282 : vector<1x128xf32> to vector<8x128xf32>
    %284 = arith.addf %281, %283 : vector<8x128xf32>
    %c1536_242 = arith.constant 1536 : index
    %c0_243 = arith.constant 0 : index
    %285 = vector.load %arg4[%c1536_242, %c0_243] : memref<2560x128xf32, #tpu.memory_space<vmem>>, vector<128x128xf32>
    %cst_244 = arith.constant dense<0.000000e+00> : vector<8x128xf32>
    %286 = tpu.matmul %269, %285, %cst_244 {dimension_numbers = #tpu.dot_dimension_numbers<[1], [0], [0], [1], [0, 0, 1, 1], [], []>} : vector<8x128xf32>, vector<128x128xf32>, vector<8x128xf32> -> vector<8x128xf32>
    %c1664_245 = arith.constant 1664 : index
    %c0_246 = arith.constant 0 : index
    %287 = vector.load %arg4[%c1664_245, %c0_246] : memref<2560x128xf32, #tpu.memory_space<vmem>>, vector<128x128xf32>
    %cst_247 = arith.constant dense<0.000000e+00> : vector<8x128xf32>
    %288 = tpu.matmul %284, %287, %cst_247 {dimension_numbers = #tpu.dot_dimension_numbers<[1], [0], [0], [1], [0, 0, 1, 1], [], []>} : vector<8x128xf32>, vector<128x128xf32>, vector<8x128xf32> -> vector<8x128xf32>
    %289 = arith.addf %286, %288 : vector<8x128xf32>
    %c8_248 = arith.constant 8 : index
    %c0_249 = arith.constant 0 : index
    %290 = vector.load %arg5[%c8_248, %c0_249] : memref<16x128xf32, #tpu.memory_space<vmem>>, vector<1x128xf32>
    %291 = vector.broadcast %290 : vector<1x128xf32> to vector<8x128xf32>
    %292 = arith.addf %289, %291 : vector<8x128xf32>
    %cst_250 = arith.constant 0.000000e+00 : f32
    %293 = vector.broadcast %cst_250 : f32 to vector<8x128xf32>
    %294 = arith.maximumf %292, %293 : vector<8x128xf32>
    %c1792_251 = arith.constant 1792 : index
    %c0_252 = arith.constant 0 : index
    %295 = vector.load %arg4[%c1792_251, %c0_252] : memref<2560x128xf32, #tpu.memory_space<vmem>>, vector<128x128xf32>
    %cst_253 = arith.constant dense<0.000000e+00> : vector<8x128xf32>
    %296 = tpu.matmul %294, %295, %cst_253 {dimension_numbers = #tpu.dot_dimension_numbers<[1], [0], [0], [1], [0, 0, 1, 1], [], []>} : vector<8x128xf32>, vector<128x128xf32>, vector<8x128xf32> -> vector<8x128xf32>
    %c9_254 = arith.constant 9 : index
    %c0_255 = arith.constant 0 : index
    %297 = vector.load %arg5[%c9_254, %c0_255] : memref<16x128xf32, #tpu.memory_space<vmem>>, vector<1x128xf32>
    %298 = vector.broadcast %297 : vector<1x128xf32> to vector<8x128xf32>
    %299 = arith.addf %296, %298 : vector<8x128xf32>
    %c1920_256 = arith.constant 1920 : index
    %c0_257 = arith.constant 0 : index
    %300 = vector.load %arg4[%c1920_256, %c0_257] : memref<2560x128xf32, #tpu.memory_space<vmem>>, vector<128x128xf32>
    %cst_258 = arith.constant dense<0.000000e+00> : vector<8x128xf32>
    %301 = tpu.matmul %284, %300, %cst_258 {dimension_numbers = #tpu.dot_dimension_numbers<[1], [0], [0], [1], [0, 0, 1, 1], [], []>} : vector<8x128xf32>, vector<128x128xf32>, vector<8x128xf32> -> vector<8x128xf32>
    %c2048_259 = arith.constant 2048 : index
    %c0_260 = arith.constant 0 : index
    %302 = vector.load %arg4[%c2048_259, %c0_260] : memref<2560x128xf32, #tpu.memory_space<vmem>>, vector<128x128xf32>
    %cst_261 = arith.constant dense<0.000000e+00> : vector<8x128xf32>
    %303 = tpu.matmul %299, %302, %cst_261 {dimension_numbers = #tpu.dot_dimension_numbers<[1], [0], [0], [1], [0, 0, 1, 1], [], []>} : vector<8x128xf32>, vector<128x128xf32>, vector<8x128xf32> -> vector<8x128xf32>
    %304 = arith.addf %301, %303 : vector<8x128xf32>
    %c10_262 = arith.constant 10 : index
    %c0_263 = arith.constant 0 : index
    %305 = vector.load %arg5[%c10_262, %c0_263] : memref<16x128xf32, #tpu.memory_space<vmem>>, vector<1x128xf32>
    %306 = vector.broadcast %305 : vector<1x128xf32> to vector<8x128xf32>
    %307 = arith.addf %304, %306 : vector<8x128xf32>
    %cst_264 = arith.constant 0.000000e+00 : f32
    %308 = vector.broadcast %cst_264 : f32 to vector<8x128xf32>
    %309 = arith.maximumf %307, %308 : vector<8x128xf32>
    %c2176_265 = arith.constant 2176 : index
    %c0_266 = arith.constant 0 : index
    %310 = vector.load %arg4[%c2176_265, %c0_266] : memref<2560x128xf32, #tpu.memory_space<vmem>>, vector<128x128xf32>
    %cst_267 = arith.constant dense<0.000000e+00> : vector<8x128xf32>
    %311 = tpu.matmul %309, %310, %cst_267 {dimension_numbers = #tpu.dot_dimension_numbers<[1], [0], [0], [1], [0, 0, 1, 1], [], []>} : vector<8x128xf32>, vector<128x128xf32>, vector<8x128xf32> -> vector<8x128xf32>
    %c11_268 = arith.constant 11 : index
    %c0_269 = arith.constant 0 : index
    %312 = vector.load %arg5[%c11_268, %c0_269] : memref<16x128xf32, #tpu.memory_space<vmem>>, vector<1x128xf32>
    %313 = vector.broadcast %312 : vector<1x128xf32> to vector<8x128xf32>
    %314 = arith.addf %311, %313 : vector<8x128xf32>
    %c2304 = arith.constant 2304 : index
    %c0_270 = arith.constant 0 : index
    %315 = vector.load %arg4[%c2304, %c0_270] : memref<2560x128xf32, #tpu.memory_space<vmem>>, vector<128x128xf32>
    %cst_271 = arith.constant dense<0.000000e+00> : vector<8x128xf32>
    %316 = tpu.matmul %314, %315, %cst_271 {dimension_numbers = #tpu.dot_dimension_numbers<[1], [0], [0], [1], [0, 0, 1, 1], [], []>} : vector<8x128xf32>, vector<128x128xf32>, vector<8x128xf32> -> vector<8x128xf32>
    %c12 = arith.constant 12 : index
    %c0_272 = arith.constant 0 : index
    %317 = vector.load %arg5[%c12, %c0_272] : memref<16x128xf32, #tpu.memory_space<vmem>>, vector<1x128xf32>
    %318 = vector.broadcast %317 : vector<1x128xf32> to vector<8x128xf32>
    %319 = arith.addf %316, %318 : vector<8x128xf32>
    %cst_273 = arith.constant 0.000000e+00 : f32
    %320 = vector.broadcast %cst_273 : f32 to vector<8x128xf32>
    %321 = arith.maximumf %319, %320 : vector<8x128xf32>
    %c2432 = arith.constant 2432 : index
    %c0_274 = arith.constant 0 : index
    %322 = vector.load %arg4[%c2432, %c0_274] : memref<2560x128xf32, #tpu.memory_space<vmem>>, vector<128x128xf32>
    %cst_275 = arith.constant dense<0.000000e+00> : vector<8x128xf32>
    %323 = tpu.matmul %321, %322, %cst_275 {dimension_numbers = #tpu.dot_dimension_numbers<[1], [0], [0], [1], [0, 0, 1, 1], [], []>} : vector<8x128xf32>, vector<128x128xf32>, vector<8x128xf32> -> vector<8x128xf32>
    %c13 = arith.constant 13 : index
    %c0_276 = arith.constant 0 : index
    %324 = vector.load %arg5[%c13, %c0_276] : memref<16x128xf32, #tpu.memory_space<vmem>>, vector<1x128xf32>
    %325 = vector.broadcast %324 : vector<1x128xf32> to vector<8x128xf32>
    %326 = arith.addf %323, %325 : vector<8x128xf32>
    %c0_277 = arith.constant 0 : index
    %c0_278 = arith.constant 0 : index
    %327 = vector.load %arg6[%c0_277, %c0_278] : memref<8x128xf32, #tpu.memory_space<vmem>>, vector<8x128xf32>
    tpu.vector_store %arg6[%c0_277, %c0_278], %326 {strides = array<i32>} : memref<8x128xf32, #tpu.memory_space<vmem>>, vector<8x128xf32>,
    return
  }
}

</mosaic_0001>

<bundles_post_ra>
// kernel: forward_pallas.1
= control target key start
LH: loop header
LB: loop body
LE: loop exit
PB: predicated region body
PF: predicated region fallthrough
CT: control target
= control target key end

     0   :  { %v10454_v0 = vmov 0.0|0.0   ;;  %vm10455_vm0 = vmmov 0   ;;  %v10456_v8 = vmov 0.0   ;;  %vm1843_vm1 = vcmask 64512   ;;  %s13083_s4 = inlined_call_operand.vmem [shape: f32[2560,128], index: 4, kind: input, shape index: {}]   ;;  %s13084_s0 = inlined_call_operand.vmem [shape: f32[24,128], index: 0, kind: input, shape index: {}]   ;;  %s13085_s5 = inlined_call_operand.vmem [shape: f32[16,128], index: 5, kind: input, shape index: {}]   ;;  %s13086_s2 = inlined_call_operand.vmem [shape: f32[16,8], index: 2, kind: input, shape index: {}]   ;;  %s13087_s1 = inlined_call_operand.vmem [shape: f32[16,8], index: 1, kind: input, shape index: {}]   ;;  %s13088_s3 = inlined_call_operand.vmem [shape: f32[8,16], index: 3, kind: input, shape index: {}]   ;;  %s13089_s6 = inlined_call_operand.vmem [shape: f32[8,128], index: 6, kind: output, shape index: {}]  }
   0x1   :  { %8875 = vmatprep.subr.bf16.mxu0 %v10454_v0  ;;  %8899 = vmatprep.subr.bf16.mxu1 %v10454_v0  ;;  %v47_v1 = vld [vmem:[%s13083_s4 + $0x80] sm:$0xff]  ;;  %v48_v2 = vld [vmem:[%s13083_s4 + $0x88] sm:$0xff]  ;;  %v49_v6 = vld [vmem:[%s13083_s4 + $0x90] sm:$0xff]  ;;  %vm2293_vm2 = vcmask 130048  }
   0x2   :  { %v31_v3 = vld [vmem:[%s13083_s4] sm:$0xff]  ;;  %v10503_v4 = vpack.c.bf16 %v48_v2, %v47_v1  ;;  %v32_v5 = vld [vmem:[%s13083_s4 + $0x8] sm:$0xff]  ;;  %v50_v7 = vld [vmem:[%s13083_s4 + $0x98] sm:$0xff]  ;;  %6686 = vmatprep.mubr.msk.f32.mxu0 %vm10455_vm0, %v10456_v8  ;;  %6721 = vmatprep.mubr.msk.f32.mxu1 %vm10455_vm0, %v10456_v8 }
   0x3   :  { %v10518_v9 = vpack.c.bf16 %v32_v5, %v31_v3  ;;  %v33_v10 = vld [vmem:[%s13083_s4 + $0x10] sm:$0xff]  ;;  %v34_v11 = vld [vmem:[%s13083_s4 + $0x18] sm:$0xff]  ;;  %v10527_v12 = vpack.c.bf16 %v50_v7, %v49_v6  ;;  %v51_v14 = vld [vmem:[%s13083_s4 + $0xa0] sm:$0xff] }
   0x4   :  { %8877 = vmatpush3.bf16.msra.mxu0 %v10503_v4  ;;  %v10531_v13 = vpack.c.bf16 %v34_v11, %v33_v10  ;;  %v52_v15 = vld [vmem:[%s13083_s4 + $0xa8] sm:$0xff]  ;;  %v35_v16 = vld [vmem:[%s13083_s4 + $0x20] sm:$0xff]  ;;  %v53_v20 = vld [vmem:[%s13083_s4 + $0xb0] sm:$0xff] }
   0x5   :  { %8901 = vmatpush3.bf16.msra.mxu1 %v10518_v9  ;;  %8878 = vmatprep.subr.bf16.mxu0 %v10454_v0  ;;  %v36_v17 = vld [vmem:[%s13083_s4 + $0x28] sm:$0xff]  ;;  %v10547_v18 = vpack.c.bf16 %v52_v15, %v51_v14  ;;  %v54_v21 = vld [vmem:[%s13083_s4 + $0xb8] sm:$0xff]  ;;  %v37_v22 = vld [vmem:[%s13083_s4 + $0x30] sm:$0xff] }
   0x6   :  { %8902 = vmatprep.subr.bf16.mxu1 %v10454_v0  ;;  %v10551_v19 = vpack.c.bf16 %v36_v17, %v35_v16  ;;  %v38_v23 = vld [vmem:[%s13083_s4 + $0x38] sm:$0xff]  ;;  %v10567_v24 = vpack.c.bf16 %v54_v21, %v53_v20  ;;  %v55_v26 = vld [vmem:[%s13083_s4 + $0xc0] sm:$0xff]  ;;  %v56_v27 = vld [vmem:[%s13083_s4 + $0xc8] sm:$0xff] }
   0x7   :  { %v10571_v25 = vpack.c.bf16 %v38_v23, %v37_v22  ;;  %v39_v28 = vld [vmem:[%s13083_s4 + $0x40] sm:$0xff]  ;;  %v40_v29 = vld [vmem:[%s13083_s4 + $0x48] sm:$0xff]  ;;  %v10587_v30 = vpack.c.bf16 %v56_v27, %v55_v26  ;;  %v57_v32 = vld [vmem:[%s13083_s4 + $0xd0] sm:$0xff] }
   0x8   :  { %8880 = vmatpush3.bf16.msra.mxu0 %v10527_v12  ;;  %v10591_v31 = vpack.c.bf16 %v40_v29, %v39_v28  ;;  %v58_v33 = vld [vmem:[%s13083_s4 + $0xd8] sm:$0xff]  ;;  %v41_v34 = vld [vmem:[%s13083_s4 + $0x50] sm:$0xff]  ;;  %v59_v38 = vld [vmem:[%s13083_s4 + $0xe0] sm:$0xff] }
   0x9   :  { %8904 = vmatpush3.bf16.msra.mxu1 %v10531_v13  ;;  %8881 = vmatprep.subr.bf16.mxu0 %v10454_v0  ;;  %v42_v35 = vld [vmem:[%s13083_s4 + $0x58] sm:$0xff]  ;;  %v10607_v36 = vpack.c.bf16 %v58_v33, %v57_v32  ;;  %v60_v39 = vld [vmem:[%s13083_s4 + $0xe8] sm:$0xff]  ;;  %v43_v40 = vld [vmem:[%s13083_s4 + $0x60] sm:$0xff] }
   0xa   :  { %8905 = vmatprep.subr.bf16.mxu1 %v10454_v0  ;;  %v10611_v37 = vpack.c.bf16 %v42_v35, %v41_v34  ;;  %v44_v41 = vld [vmem:[%s13083_s4 + $0x68] sm:$0xff]  ;;  %v10627_v42 = vpack.c.bf16 %v60_v39, %v59_v38  ;;  %v61_v44 = vld [vmem:[%s13083_s4 + $0xf0] sm:$0xff]  ;;  %v62_v45 = vld [vmem:[%s13083_s4 + $0xf8] sm:$0xff] }
   0xb   :  { %v10631_v43 = vpack.c.bf16 %v44_v41, %v43_v40  ;;  %v45_v46 = vld [vmem:[%s13083_s4 + $0x70] sm:$0xff]  ;;  %v46_v47 = vld [vmem:[%s13083_s4 + $0x78] sm:$0xff]  ;;  %v10647_v48 = vpack.c.bf16 %v62_v45, %v61_v44  ;;  %v210_v50 = vld [vmem:[%s13083_s4 + $0x100] sm:$0xff] }
   0xc   :  { %8883 = vmatpush3.bf16.msra.mxu0 %v10547_v18  ;;  %v10651_v49 = vpack.c.bf16 %v46_v47, %v45_v46  ;;  %v211_v51 = vld [vmem:[%s13083_s4 + $0x108] sm:$0xff]  ;;  %v10672_v54 = vld [vmem:[%s13084_s0 + $0x10] sm:$0xff]  ;;  %v213_v56 = vld [vmem:[%s13083_s4 + $0x118] sm:$0xff] }
   0xd   :  { %8907 = vmatpush3.bf16.msra.mxu1 %v10551_v19  ;;  %8884 = vmatprep.subr.bf16.mxu0 %v10454_v0  ;;  %v10664_v52 = vld [vmem:[%s13084_s0 + $0x8] sm:$0xff]  ;;  %v10666_v53 = vpack.c.bf16 %v211_v51, %v210_v50  ;;  %v212_v55 = vld [vmem:[%s13083_s4 + $0x110] sm:$0xff]  ;;  %v214_v58 = vld [vmem:[%s13083_s4 + $0x120] sm:$0xff] }
   0xe   :  { %8908 = vmatprep.subr.bf16.mxu1 %v10454_v0  ;;  %v10685_v57 = vpack.c.bf16 %v213_v56, %v212_v55  ;;  %v215_v59 = vld [vmem:[%s13083_s4 + $0x128] sm:$0xff]  ;;  %v216_v61 = vld [vmem:[%s13083_s4 + $0x130] sm:$0xff]  ;;  %v217_v62 = vld [vmem:[%s13083_s4 + $0x138] sm:$0xff] }
   0xf   :  { %v10701_v60 = vpack.c.bf16 %v215_v59, %v214_v58  ;;  %v10713_v63 = vpack.c.bf16 %v217_v62, %v216_v61  ;;  %v218_v1 = vld [vmem:[%s13083_s4 + $0x140] sm:$0xff]  ;;  %v219_v2 = vld [vmem:[%s13083_s4 + $0x148] sm:$0xff]  ;;  %v220_v5 = vld [vmem:[%s13083_s4 + $0x150] sm:$0xff] }
  0x10   :  { %8886 = vmatpush3.bf16.msra.mxu0 %v10567_v24  ;;  %v10725_v3 = vpack.c.bf16 %v219_v2, %v218_v1  ;;  %v221_v6 = vld [vmem:[%s13083_s4 + $0x158] sm:$0xff]  ;;  %v222_v10 = vld [vmem:[%s13083_s4 + $0x160] sm:$0xff]  ;;  %v223_v11 = vld [vmem:[%s13083_s4 + $0x168] sm:$0xff] }
  0x11   :  { %8910 = vmatpush3.bf16.msra.mxu1 %v10571_v25  ;;  %8887 = vmatprep.subr.bf16.mxu0 %v10454_v0  ;;  %v10737_v7 = vpack.c.bf16 %v221_v6, %v220_v5  ;;  %v10749_v14 = vpack.c.bf16 %v223_v11, %v222_v10  ;;  %v224_v15 = vld [vmem:[%s13083_s4 + $0x170] sm:$0xff]  ;;  %v225_v16 = vld [vmem:[%s13083_s4 + $0x178] sm:$0xff]  ;;  %v10773_v20 = vld [vmem:[%s13084_s0] sm:$0xff] }
  0x12   :  { %8911 = vmatprep.subr.bf16.mxu1 %v10454_v0  ;;  %v10766_v17 = vpack.c.bf16 %v225_v16, %v224_v15  ;;  %v10797_v23 = vld [vmem:[%s13085_s5] ss:$0 sm:$0xff]  ;;  %v530_v34 = vld [vmem:[%s13083_s4 + $0x208] sm:$0xff]  ;;  %v531_v38 = vld [vmem:[%s13083_s4 + $0x210] sm:$0xff] }
  0x13   :  { %v529_v33 = vld [vmem:[%s13083_s4 + $0x200] sm:$0xff]  ;;  %v532_v39 = vld [vmem:[%s13083_s4 + $0x218] sm:$0xff]  ;;  %v534_v44 = vld [vmem:[%s13083_s4 + $0x228] sm:$0xff] }
  0x14   :  { %8889 = vmatpush3.bf16.msra.mxu0 %v10587_v30  ;;  %v10823_v35 = vpack.c.bf16 %v530_v34, %v529_v33  ;;  %v10834_v40 = vpack.c.bf16 %v532_v39, %v531_v38  ;;  %v533_v41 = vld [vmem:[%s13083_s4 + $0x220] sm:$0xff]  ;;  %v535_v46 = vld [vmem:[%s13083_s4 + $0x230] sm:$0xff]  ;;  %v536_v47 = vld [vmem:[%s13083_s4 + $0x238] sm:$0xff] }
  0x15   :  { %8913 = vmatpush3.bf16.msra.mxu1 %v10591_v31  ;;  %8890 = vmatprep.subr.bf16.mxu0 %v10454_v0  ;;  %v10846_v45 = vpack.c.bf16 %v534_v44, %v533_v41  ;;  %v10856_v50 = vpack.c.bf16 %v536_v47, %v535_v46  ;;  %v537_v51 = vld [vmem:[%s13083_s4 + $0x240] sm:$0xff]  ;;  %v538_v55 = vld [vmem:[%s13083_s4 + $0x248] sm:$0xff]  ;;  %v539_v58 = vld [vmem:[%s13083_s4 + $0x250] sm:$0xff] }
  0x16   :  { %8914 = vmatprep.subr.bf16.mxu1 %v10454_v0  ;;  %v10866_v56 = vpack.c.bf16 %v538_v55, %v537_v51  ;;  %v540_v59 = vld [vmem:[%s13083_s4 + $0x258] sm:$0xff]  ;;  %v541_v62 = vld [vmem:[%s13083_s4 + $0x260] sm:$0xff]  ;;  %v542_v1 = vld [vmem:[%s13083_s4 + $0x268] sm:$0xff] }
  0x17   :  { %v10876_v61 = vpack.c.bf16 %v540_v59, %v539_v58  ;;  %v10886_v2 = vpack.c.bf16 %v542_v1, %v541_v62  ;;  %v543_v5 = vld [vmem:[%s13083_s4 + $0x270] sm:$0xff]  ;;  %v544_v6 = vld [vmem:[%s13083_s4 + $0x278] sm:$0xff]  ;;  %v10904_v16 = vld [vmem:[%s13085_s5 + $0x1] ss:$0 sm:$0xff] }
  0x18   :  { %8892 = vmatpush3.bf16.msra.mxu0 %v10607_v36  ;;  %v10897_v10 = vpack.c.bf16 %v544_v6, %v543_v5  ;;  %v514_v33 = vld [vmem:[%s13083_s4 + $0x188] sm:$0xff]  ;;  %v515_v41 = vld [vmem:[%s13083_s4 + $0x190] sm:$0xff]  ;;  %v516_v44 = vld [vmem:[%s13083_s4 + $0x198] sm:$0xff] }
  0x19   :  { %8916 = vmatpush3.bf16.msra.mxu1 %v10611_v37  ;;  %8893 = vmatprep.subr.bf16.mxu0 %v10454_v0  ;;  %v10925_v46 = vpack.c.bf16 %v516_v44, %v515_v41  ;;  %v517_v47 = vld [vmem:[%s13083_s4 + $0x1a0] sm:$0xff]  ;;  %v518_v51 = vld [vmem:[%s13083_s4 + $0x1a8] sm:$0xff]  ;;  %v519_v58 = vld [vmem:[%s13083_s4 + $0x1b0] sm:$0xff] }
  0x1a   :  { %8917 = vmatprep.subr.bf16.mxu1 %v10454_v0  ;;  %v10937_v55 = vpack.c.bf16 %v518_v51, %v517_v47  ;;  %v520_v59 = vld [vmem:[%s13083_s4 + $0x1b8] sm:$0xff]  ;;  %v521_v1 = vld [vmem:[%s13083_s4 + $0x1c0] sm:$0xff]  ;;  %v522_v5 = vld [vmem:[%s13083_s4 + $0x1c8] sm:$0xff] }
  0x1b   :  { %v10947_v62 = vpack.c.bf16 %v520_v59, %v519_v58  ;;  %v10957_v6 = vpack.c.bf16 %v522_v5, %v521_v1  ;;  %v695_v41 = vld [vmem:[%s13083_s4 + $0x298] sm:$0xff]  ;;  %v696_v47 = vld [vmem:[%s13083_s4 + $0x2a0] sm:$0xff]  ;;  %v697_v51 = vld [vmem:[%s13083_s4 + $0x2a8] sm:$0xff] }
  0x1c   :  { %8895 = vmatpush3.bf16.msra.mxu0 %v10627_v42  ;;  %v11036_v58 = vpack.c.bf16 %v697_v51, %v696_v47  ;;  %v698_v59 = vld [vmem:[%s13083_s4 + $0x2b0] sm:$0xff]  ;;  %v699_v1 = vld [vmem:[%s13083_s4 + $0x2b8] sm:$0xff] }
  0x1d   :  { %8919 = vmatpush3.bf16.msra.mxu1 %v10631_v43  ;;  %8896 = vmatprep.subr.bf16.mxu0 %v10454_v0  ;;  %v11046_v5 = vpack.c.bf16 %v699_v1, %v698_v59  ;;  %v707_v47 = vld [vmem:[%s13083_s4 + $0x2f8] sm:$0xff] }
  0x1e   :  { %8920 = vmatprep.subr.bf16.mxu1 %v10454_v0 }
  0x20   :  { %8898 = vmatpush3.bf16.msra.mxu0 %v10647_v48 }
  0x21   :  { %8922 = vmatpush3.bf16.msra.mxu1 %v10651_v49  ;;  %8923 = vmatprep.subr.bf16.mxu0 %v10454_v0 }
  0x22   :  { %8947 = vmatprep.subr.bf16.mxu1 %v10454_v0 }
  0x23   :  { %6687 = vmatmul.mubr.f32.vlgmr.msra.gmra.mrb[0].mxu0 %v10664_v52 }
  0x24   :  { %6722 = vmatmul.mubr.f32.vlgmr.msra.gmra.mrb[0].mxu1 %v10672_v54  ;;  %8925 = vmatpush3.bf16.msra.mxu0 %v10666_v53 }
  0x25   :  { %8926 = vmatprep.subr.bf16.mxu0 %v10454_v0  ;;  %6756 = vmatprep.mubr.msk.f32.mxu0 %vm10455_vm0, %v10456_v8 }
  0x26   :  { %8949 = vmatpush3.bf16.msra.mxu1 %v10503_v4  ;;  %6791 = vmatprep.mubr.msk.f32.mxu1 %vm10455_vm0, %v10456_v8 }
  0x27   :  { %8950 = vmatprep.subr.bf16.mxu1 %v10454_v0 }
  0x28   :  { %8928 = vmatpush3.bf16.msra.mxu0 %v10685_v57 }
  0x29   :  { %8929 = vmatprep.subr.bf16.mxu0 %v10454_v0 }
  0x2a   :  { %8952 = vmatpush3.bf16.msra.mxu1 %v10527_v12 }
  0x2b   :  { %8953 = vmatprep.subr.bf16.mxu1 %v10454_v0 }
  0x2c   :  { %8931 = vmatpush3.bf16.msra.mxu0 %v10701_v60 }
  0x2d   :  { %8932 = vmatprep.subr.bf16.mxu0 %v10454_v0 }
  0x2e   :  { %8955 = vmatpush3.bf16.msra.mxu1 %v10547_v18 }
  0x2f   :  { %8956 = vmatprep.subr.bf16.mxu1 %v10454_v0 }
  0x30   :  { %8934 = vmatpush3.bf16.msra.mxu0 %v10713_v63 }
  0x31   :  { %8935 = vmatprep.subr.bf16.mxu0 %v10454_v0 }
  0x32   :  { %8958 = vmatpush3.bf16.msra.mxu1 %v10567_v24 }
  0x33   :  { %8959 = vmatprep.subr.bf16.mxu1 %v10454_v0 }
  0x34   :  { %8937 = vmatpush3.bf16.msra.mxu0 %v10725_v3 }
  0x35   :  { %8938 = vmatprep.subr.bf16.mxu0 %v10454_v0 }
  0x36   :  { %8961 = vmatpush3.bf16.msra.mxu1 %v10587_v30 }
  0x37   :  { %8962 = vmatprep.subr.bf16.mxu1 %v10454_v0 }
  0x38   :  { %8940 = vmatpush3.bf16.msra.mxu0 %v10737_v7 }
  0x39   :  { %8941 = vmatprep.subr.bf16.mxu0 %v10454_v0 }
  0x3a   :  { %8964 = vmatpush3.bf16.msra.mxu1 %v10607_v36 }
  0x3b   :  { %8965 = vmatprep.subr.bf16.mxu1 %v10454_v0 }
  0x3c   :  { %8943 = vmatpush3.bf16.msra.mxu0 %v10749_v14 }
  0x3d   :  { %8944 = vmatprep.subr.bf16.mxu0 %v10454_v0 }
  0x3e   :  { %8967 = vmatpush3.bf16.msra.mxu1 %v10627_v42 }
  0x3f   :  { %8968 = vmatprep.subr.bf16.mxu1 %v10454_v0 }
  0x40   :  { %8946 = vmatpush3.bf16.msra.mxu0 %v10766_v17 }
  0x41   :  { %8971 = vmatprep.subr.bf16.mxu0 %v10454_v0 }
  0x42   :  { %8970 = vmatpush3.bf16.msra.mxu1 %v10647_v48 }
  0x43   :  { %8995 = vmatprep.subr.bf16.mxu1 %v10454_v0 }
  0x45   :  { %6792 = vmatmul.mubr.f32.vlgmr.msra.gmra.mrb[2].mxu1 %v10773_v20 }
  0x46   :  { %8997 = vmatpush3.bf16.msra.mxu1 %v10666_v53  ;;  %6861 = vmatprep.mubr.msk.f32.mxu1 %vm10455_vm0, %v10456_v8 }
  0x47   :  { %8998 = vmatprep.subr.bf16.mxu1 %v10454_v0 }
  0x4a   :  { %9000 = vmatpush3.bf16.msra.mxu1 %v10685_v57 }
  0x4b   :  { %9001 = vmatprep.subr.bf16.mxu1 %v10454_v0 }
  0x4e   :  { %9003 = vmatpush3.bf16.msra.mxu1 %v10701_v60 }
  0x4f   :  { %9004 = vmatprep.subr.bf16.mxu1 %v10454_v0 }
  0x52   :  { %9006 = vmatpush3.bf16.msra.mxu1 %v10713_v63 }
  0x53   :  { %9007 = vmatprep.subr.bf16.mxu1 %v10454_v0 }
  0x56   :  { %9009 = vmatpush3.bf16.msra.mxu1 %v10725_v3 }
  0x57   :  { %9010 = vmatprep.subr.bf16.mxu1 %v10454_v0 }
  0x5a   :  { %9012 = vmatpush3.bf16.msra.mxu1 %v10737_v7 }
  0x5b   :  { %9013 = vmatprep.subr.bf16.mxu1 %v10454_v0 }
  0x5e   :  { %9015 = vmatpush3.bf16.msra.mxu1 %v10749_v14 }
  0x5f   :  { %9016 = vmatprep.subr.bf16.mxu1 %v10454_v0 }
  0x62   :  { %9018 = vmatpush3.bf16.msra.mxu1 %v10766_v17 }
  0x63   :  { %9043 = vmatprep.subr.bf16.mxu1 %v10454_v0 }
  0xf6   :  { %v129_v21 = vpop.f32.mrb[0].mxu0 }
  0xf7   :  { %v199_v22 = vpop.f32.mrb[0].mxu1  ;;  %v6688_v26 = vpop.f32.mrb[1].mxu0 }
  0xf8   :  { %v200_v27 = vadd.f32 %v199_v22, %v129_v21  ;;  %v6723_v28 = vpop.f32.mrb[1].mxu1 }
  0xfa   :  { %v208_v29 = vadd.f32 %v10797_v23, %v200_v27 }
  0xfc   :  { %v209_v32 = vmax.f32 %v208_v29, 0.0 }
  0xfe   :  { %6757 = vmatmul.mubr.f32.vlgmr.msra.gmra.mrb[2].mxu0 %v209_v32  ;;  %v513_v32 = vld [vmem:[%s13083_s4 + $0x180] sm:$0xff] }
  0xff   :  { %8973 = vmatpush3.bf16.msra.mxu0 %v10518_v9  ;;  %6826 = vmatprep.mubr.msk.f32.mxu0 %vm10455_vm0, %v10456_v8  ;;  %v10916_v38 = vpack.c.bf16 %v514_v33, %v513_v32  ;;  %v693_v33 = vld [vmem:[%s13083_s4 + $0x288] sm:$0xff] }
 0x100   :  { %8974 = vmatprep.subr.bf16.mxu0 %v10454_v0 }
 0x103   :  { %8976 = vmatpush3.bf16.msra.mxu0 %v10531_v13 }
 0x104   :  { %8977 = vmatprep.subr.bf16.mxu0 %v10454_v0 }
 0x107   :  { %8979 = vmatpush3.bf16.msra.mxu0 %v10551_v19 }
 0x108   :  { %8980 = vmatprep.subr.bf16.mxu0 %v10454_v0 }
 0x10b   :  { %8982 = vmatpush3.bf16.msra.mxu0 %v10571_v25 }
 0x10c   :  { %8983 = vmatprep.subr.bf16.mxu0 %v10454_v0 }
 0x10f   :  { %8985 = vmatpush3.bf16.msra.mxu0 %v10591_v31 }
 0x110   :  { %8986 = vmatprep.subr.bf16.mxu0 %v10454_v0 }
 0x113   :  { %8988 = vmatpush3.bf16.msra.mxu0 %v10611_v37 }
 0x114   :  { %8989 = vmatprep.subr.bf16.mxu0 %v10454_v0 }
 0x117   :  { %8991 = vmatpush3.bf16.msra.mxu0 %v10631_v43 }
 0x118   :  { %8992 = vmatprep.subr.bf16.mxu0 %v10454_v0  ;;  %v367_v11 = vpop.f32.mrb[2].mxu1 }
 0x119   :  { %v6793_v15 = vpop.f32.mrb[3].mxu1 }
 0x11a   :  { %v524_v15 = vld [vmem:[%s13083_s4 + $0x1d8] sm:$0xff] }
 0x11b   :  { %8994 = vmatpush3.bf16.msra.mxu0 %v10651_v49 }
 0x11c   :  { %9019 = vmatprep.subr.bf16.mxu0 %v10454_v0 }
 0x11e   :  { %6827 = vmatmul.mubr.f32.vlgmr.msra.gmra.mrb[4].mxu0 %v10664_v52 }
 0x11f   :  { %9021 = vmatpush3.bf16.msra.mxu0 %v10823_v35  ;;  %6896 = vmatprep.mubr.msk.f32.mxu0 %vm10455_vm0, %v10456_v8 }
 0x120   :  { %9022 = vmatprep.subr.bf16.mxu0 %v10454_v0 }
 0x123   :  { %9024 = vmatpush3.bf16.msra.mxu0 %v10834_v40 }
 0x124   :  { %9025 = vmatprep.subr.bf16.mxu0 %v10454_v0 }
 0x127   :  { %9027 = vmatpush3.bf16.msra.mxu0 %v10846_v45 }
 0x128   :  { %9028 = vmatprep.subr.bf16.mxu0 %v10454_v0 }
 0x12b   :  { %9030 = vmatpush3.bf16.msra.mxu0 %v10856_v50 }
 0x12c   :  { %9031 = vmatprep.subr.bf16.mxu0 %v10454_v0 }
 0x12f   :  { %9033 = vmatpush3.bf16.msra.mxu0 %v10866_v56 }
 0x130   :  { %9034 = vmatprep.subr.bf16.mxu0 %v10454_v0 }
 0x133   :  { %9036 = vmatpush3.bf16.msra.mxu0 %v10876_v61 }
 0x134   :  { %9037 = vmatprep.subr.bf16.mxu0 %v10454_v0 }
 0x137   :  { %9039 = vmatpush3.bf16.msra.mxu0 %v10886_v2 }
 0x138   :  { %9040 = vmatprep.subr.bf16.mxu0 %v10454_v0 }
 0x13b   :  { %9042 = vmatpush3.bf16.msra.mxu0 %v10897_v10 }
 0x13c   :  { %9067 = vmatprep.subr.bf16.mxu0 %v10454_v0 }
 0x1d1   :  { %v297_v21 = vpop.f32.mrb[2].mxu0 }
 0x1d2   :  { %v298_v22 = vadd.f32 %v10904_v16, %v297_v21  ;;  %v6758_v26 = vpop.f32.mrb[3].mxu0 }
 0x1d3   :  { %v526_v26 = vld [vmem:[%s13083_s4 + $0x1e8] sm:$0xff] }
 0x1d4   :  { %6897 = vmatmul.mubr.f32.vlgmr.msra.gmra.mrb[6].mxu0 %v298_v22  ;;  %v525_v22 = vld [vmem:[%s13083_s4 + $0x1e0] sm:$0xff] }
 0x1d5   :  { %6966 = vmatprep.mubr.msk.f32.mxu0 %vm10455_vm0, %v10456_v8 }
 0x1f1   :  { %v437_v27 = vpop.f32.mrb[4].mxu0 }
 0x1f2   :  { %v438_v28 = vadd.f32 %v437_v27, %v367_v11  ;;  %v6828_v29 = vpop.f32.mrb[5].mxu0  ;;  %v523_v11 = vld [vmem:[%s13083_s4 + $0x1d0] sm:$0xff]  ;;  %v10977_v27 = vpack.c.bf16 %v526_v26, %v525_v22 }
 0x1f3   :  { %v10967_v21 = vpack.c.bf16 %v524_v15, %v523_v11  ;;  %v528_v29 = vld [vmem:[%s13083_s4 + $0x1f8] sm:$0xff]  ;;  %v700_v11 = vld [vmem:[%s13083_s4 + $0x2c0] sm:$0xff]  ;;  %v701_v15 = vld [vmem:[%s13083_s4 + $0x2c8] sm:$0xff] }
 0x1f4   :  { %v441_v34 = vadd.f32 %v10797_v23, %v438_v28  ;;  %v527_v28 = vld [vmem:[%s13083_s4 + $0x1f0] sm:$0xff]  ;;  %v11056_v22 = vpack.c.bf16 %v701_v15, %v700_v11 }
 0x1f5   :  { %v10987_v32 = vpack.c.bf16 %v528_v29, %v527_v28  ;;  %v702_v26 = vld [vmem:[%s13083_s4 + $0x2d0] sm:$0xff]  ;;  %v703_v28 = vld [vmem:[%s13083_s4 + $0x2d8] sm:$0xff] }
 0x1f6   :  { %v442_v39 = vmax.f32 %v441_v34, 0.0  ;;  %v694_v34 = vld [vmem:[%s13083_s4 + $0x290] sm:$0xff]  ;;  %v11066_v29 = vpack.c.bf16 %v703_v28, %v702_v26 }
 0x1f7   :  { %v11026_v44 = vpack.c.bf16 %v695_v41, %v694_v34  ;;  %v706_v41 = vld [vmem:[%s13083_s4 + $0x2f0] sm:$0xff] }
 0x1f8   :  { %6862 = vmatmul.mubr.f32.vlgmr.msra.gmra.mrb[4].mxu1 %v442_v39  ;;  %v11087_v51 = vpack.c.bf16 %v707_v47, %v706_v41 }
 0x1f9   :  { %9045 = vmatpush3.bf16.msra.mxu1 %v10916_v38  ;;  %6931 = vmatprep.mubr.msk.f32.mxu1 %vm10455_vm0, %v10456_v8 }
 0x1fa   :  { %9046 = vmatprep.subr.bf16.mxu1 %v10454_v0 }
 0x1fd   :  { %9048 = vmatpush3.bf16.msra.mxu1 %v10925_v46 }
 0x1fe   :  { %9049 = vmatprep.subr.bf16.mxu1 %v10454_v0 }
 0x201   :  { %9051 = vmatpush3.bf16.msra.mxu1 %v10937_v55 }
 0x202   :  { %9052 = vmatprep.subr.bf16.mxu1 %v10454_v0 }
 0x205   :  { %9054 = vmatpush3.bf16.msra.mxu1 %v10947_v62 }
 0x206   :  { %9055 = vmatprep.subr.bf16.mxu1 %v10454_v0 }
 0x209   :  { %9057 = vmatpush3.bf16.msra.mxu1 %v10957_v6 }
 0x20a   :  { %9058 = vmatprep.subr.bf16.mxu1 %v10454_v0 }
 0x20d   :  { %9060 = vmatpush3.bf16.msra.mxu1 %v10967_v21 }
 0x20e   :  { %9061 = vmatprep.subr.bf16.mxu1 %v10454_v0 }
 0x211   :  { %9063 = vmatpush3.bf16.msra.mxu1 %v10977_v27 }
 0x212   :  { %9064 = vmatprep.subr.bf16.mxu1 %v10454_v0 }
 0x215   :  { %9066 = vmatpush3.bf16.msra.mxu1 %v10987_v32 }
 0x216   :  { %9091 = vmatprep.subr.bf16.mxu1 %v10454_v0 }
 0x218   :  { %6932 = vmatmul.mubr.f32.vlgmr.msra.gmra.mrb[6].mxu1 %v10664_v52  ;;  %v692_v52 = vld [vmem:[%s13083_s4 + $0x280] sm:$0xff] }
 0x219   :  { %9093 = vmatpush3.bf16.msra.mxu1 %v10823_v35  ;;  %7001 = vmatprep.mubr.msk.f32.mxu1 %vm10455_vm0, %v10456_v8  ;;  %v11020_v39 = vpack.c.bf16 %v693_v33, %v692_v52  ;;  %v704_v52 = vld [vmem:[%s13083_s4 + $0x2e0] sm:$0xff]  ;;  %v705_v33 = vld [vmem:[%s13083_s4 + $0x2e8] sm:$0xff] }
 0x21a   :  { %9094 = vmatprep.subr.bf16.mxu1 %v10454_v0  ;;  %v11076_v34 = vpack.c.bf16 %v705_v33, %v704_v52  ;;  %v11111_v52 = vld [vmem:[%s13085_s5 + $0x2] ss:$0 sm:$0xff] }
 0x21b   :  { %9069 = vmatpush3.bf16.msra.mxu0 %v11020_v39 }
 0x21c   :  { %9070 = vmatprep.subr.bf16.mxu0 %v10454_v0 }
 0x21d   :  { %9096 = vmatpush3.bf16.msra.mxu1 %v10834_v40 }
 0x21e   :  { %9097 = vmatprep.subr.bf16.mxu1 %v10454_v0 }
 0x21f   :  { %9072 = vmatpush3.bf16.msra.mxu0 %v11026_v44 }
 0x220   :  { %9073 = vmatprep.subr.bf16.mxu0 %v10454_v0 }
 0x221   :  { %9099 = vmatpush3.bf16.msra.mxu1 %v10846_v45 }
 0x222   :  { %9100 = vmatprep.subr.bf16.mxu1 %v10454_v0 }
 0x223   :  { %9075 = vmatpush3.bf16.msra.mxu0 %v11036_v58 }
 0x224   :  { %9076 = vmatprep.subr.bf16.mxu0 %v10454_v0 }
 0x225   :  { %9102 = vmatpush3.bf16.msra.mxu1 %v10856_v50 }
 0x226   :  { %9103 = vmatprep.subr.bf16.mxu1 %v10454_v0 }
 0x227   :  { %9078 = vmatpush3.bf16.msra.mxu0 %v11046_v5 }
 0x228   :  { %9079 = vmatprep.subr.bf16.mxu0 %v10454_v0 }
 0x229   :  { %9105 = vmatpush3.bf16.msra.mxu1 %v10866_v56 }
 0x22a   :  { %9106 = vmatprep.subr.bf16.mxu1 %v10454_v0 }
 0x22b   :  { %9081 = vmatpush3.bf16.msra.mxu0 %v11056_v22 }
 0x22c   :  { %9082 = vmatprep.subr.bf16.mxu0 %v10454_v0 }
 0x22d   :  { %9108 = vmatpush3.bf16.msra.mxu1 %v10876_v61 }
 0x22e   :  { %9109 = vmatprep.subr.bf16.mxu1 %v10454_v0 }
 0x22f   :  { %9084 = vmatpush3.bf16.msra.mxu0 %v11066_v29 }
 0x230   :  { %9085 = vmatprep.subr.bf16.mxu0 %v10454_v0 }
 0x231   :  { %9111 = vmatpush3.bf16.msra.mxu1 %v10886_v2 }
 0x232   :  { %9112 = vmatprep.subr.bf16.mxu1 %v10454_v0 }
 0x233   :  { %9087 = vmatpush3.bf16.msra.mxu0 %v11076_v34 }
 0x234   :  { %9088 = vmatprep.subr.bf16.mxu0 %v10454_v0 }
 0x235   :  { %9114 = vmatpush3.bf16.msra.mxu1 %v10897_v10 }
 0x236   :  { %9139 = vmatprep.subr.bf16.mxu1 %v10454_v0 }
 0x237   :  { %9090 = vmatpush3.bf16.msra.mxu0 %v11087_v51 }
 0x238   :  { %9115 = vmatprep.subr.bf16.mxu0 %v10454_v0 }
 0x2a7   :  { %v611_v59 = vpop.f32.mrb[6].mxu0 }
 0x2a8   :  { %v6898_v1 = vpop.f32.mrb[7].mxu0 }
 0x2cb   :  { %v509_v11 = vpop.f32.mrb[4].mxu1 }
 0x2cc   :  { %v510_v15 = vadd.f32 %v10904_v16, %v509_v11  ;;  %v6863_v26 = vpop.f32.mrb[5].mxu1  ;;  %v11156_v11 = vld [vmem:[%s13085_s5 + $0x3] ss:$0 sm:$0xff] }
 0x2ce   :  { %7002 = vmatmul.mubr.f32.vlgmr.msra.gmra.mrb[8].mxu1 %v510_v15 }
 0x2cf   :  { %9141 = vmatpush3.bf16.msra.mxu1 %v11020_v39  ;;  %7071 = vmatprep.mubr.msk.f32.mxu1 %vm10455_vm0, %v10456_v8 }
 0x2d0   :  { %9142 = vmatprep.subr.bf16.mxu1 %v10454_v0 }
 0x2d3   :  { %9144 = vmatpush3.bf16.msra.mxu1 %v11026_v44 }
 0x2d4   :  { %9145 = vmatprep.subr.bf16.mxu1 %v10454_v0 }
 0x2d7   :  { %9147 = vmatpush3.bf16.msra.mxu1 %v11036_v58 }
 0x2d8   :  { %9148 = vmatprep.subr.bf16.mxu1 %v10454_v0 }
 0x2db   :  { %9150 = vmatpush3.bf16.msra.mxu1 %v11046_v5 }
 0x2dc   :  { %9151 = vmatprep.subr.bf16.mxu1 %v10454_v0 }
 0x2df   :  { %9153 = vmatpush3.bf16.msra.mxu1 %v11056_v22 }
 0x2e0   :  { %9154 = vmatprep.subr.bf16.mxu1 %v10454_v0 }
 0x2e3   :  { %9156 = vmatpush3.bf16.msra.mxu1 %v11066_v29 }
 0x2e4   :  { %9157 = vmatprep.subr.bf16.mxu1 %v10454_v0 }
 0x2e7   :  { %9159 = vmatpush3.bf16.msra.mxu1 %v11076_v34 }
 0x2e8   :  { %9160 = vmatprep.subr.bf16.mxu1 %v10454_v0 }
 0x2eb   :  { %v681_v28 = vpop.f32.mrb[6].mxu1  ;;  %9162 = vmatpush3.bf16.msra.mxu1 %v11087_v51 }
 0x2ec   :  { %v682_v33 = vadd.f32 %v681_v28, %v611_v59  ;;  %v6933_v41 = vpop.f32.mrb[7].mxu1  ;;  %9187 = vmatprep.subr.bf16.mxu1 %v10454_v0 }
 0x2ee   :  { %v690_v47 = vadd.f32 %v11111_v52, %v682_v33 }
 0x2f0   :  { %v691_v1 = vmax.f32 %v690_v47, 0.0 }
 0x2f2   :  { %6967 = vmatmul.mubr.f32.vlgmr.msra.gmra.mrb[8].mxu0 %v691_v1 }
 0x2f3   :  { %9117 = vmatpush3.bf16.msra.mxu0 %v10916_v38  ;;  %7036 = vmatprep.mubr.msk.f32.mxu0 %vm10455_vm0, %v10456_v8 }
 0x2f4   :  { %9118 = vmatprep.subr.bf16.mxu0 %v10454_v0 }
 0x2f7   :  { %9120 = vmatpush3.bf16.msra.mxu0 %v10925_v46 }
 0x2f8   :  { %9121 = vmatprep.subr.bf16.mxu0 %v10454_v0 }
 0x2fb   :  { %9123 = vmatpush3.bf16.msra.mxu0 %v10937_v55 }
 0x2fc   :  { %9124 = vmatprep.subr.bf16.mxu0 %v10454_v0 }
 0x2ff   :  { %9126 = vmatpush3.bf16.msra.mxu0 %v10947_v62 }
 0x300   :  { %9127 = vmatprep.subr.bf16.mxu0 %v10454_v0 }
 0x303   :  { %9129 = vmatpush3.bf16.msra.mxu0 %v10957_v6 }
 0x304   :  { %9130 = vmatprep.subr.bf16.mxu0 %v10454_v0 }
 0x307   :  { %9132 = vmatpush3.bf16.msra.mxu0 %v10967_v21 }
 0x308   :  { %9133 = vmatprep.subr.bf16.mxu0 %v10454_v0 }
 0x30b   :  { %9135 = vmatpush3.bf16.msra.mxu0 %v10977_v27 }
 0x30c   :  { %9136 = vmatprep.subr.bf16.mxu0 %v10454_v0 }
 0x30f   :  { %9138 = vmatpush3.bf16.msra.mxu0 %v10987_v32 }
 0x310   :  { %9163 = vmatprep.subr.bf16.mxu0 %v10454_v0 }
 0x312   :  { %7037 = vmatmul.mubr.f32.vlgmr.msra.gmra.mrb[10].mxu0 %v10773_v20 }
 0x313   :  { %9165 = vmatpush3.bf16.msra.mxu0 %v10503_v4  ;;  %7106 = vmatprep.mubr.msk.f32.mxu0 %vm10455_vm0, %v10456_v8 }
 0x314   :  { %9166 = vmatprep.subr.bf16.mxu0 %v10454_v0 }
 0x317   :  { %9168 = vmatpush3.bf16.msra.mxu0 %v10527_v12 }
 0x318   :  { %9169 = vmatprep.subr.bf16.mxu0 %v10454_v0 }
 0x31b   :  { %9171 = vmatpush3.bf16.msra.mxu0 %v10547_v18 }
 0x31c   :  { %9172 = vmatprep.subr.bf16.mxu0 %v10454_v0 }
 0x31f   :  { %9174 = vmatpush3.bf16.msra.mxu0 %v10567_v24 }
 0x320   :  { %9175 = vmatprep.subr.bf16.mxu0 %v10454_v0 }
 0x323   :  { %9177 = vmatpush3.bf16.msra.mxu0 %v10587_v30 }
 0x324   :  { %9178 = vmatprep.subr.bf16.mxu0 %v10454_v0 }
 0x327   :  { %9180 = vmatpush3.bf16.msra.mxu0 %v10607_v36 }
 0x328   :  { %9181 = vmatprep.subr.bf16.mxu0 %v10454_v0 }
 0x32b   :  { %9183 = vmatpush3.bf16.msra.mxu0 %v10627_v42 }
 0x32c   :  { %9184 = vmatprep.subr.bf16.mxu0 %v10454_v0 }
 0x32f   :  { %9186 = vmatpush3.bf16.msra.mxu0 %v10647_v48 }
 0x330   :  { %9211 = vmatprep.subr.bf16.mxu0 %v10454_v0 }
 0x3a1   :  { %v849_v20 = vpop.f32.mrb[8].mxu1 }
 0x3a2   :  { %v7003_v59 = vpop.f32.mrb[9].mxu1 }
 0x3c5   :  { %v779_v15 = vpop.f32.mrb[8].mxu0 }
 0x3c6   :  { %v11159_v26 = vadd.f32 %v11156_v11, %v779_v15  ;;  %v6968_v28 = vpop.f32.mrb[9].mxu0  ;;  %v2027_v15 = vld [vmem:[%s13083_s4 + $0x3a8] sm:$0xff] }
 0x3c7   :  { %v2028_v28 = vld [vmem:[%s13083_s4 + $0x3b0] sm:$0xff] }
 0x3c8   :  { %7107 = vmatmul.mubr.f32.vlgmr.msra.gmra.mrb[12].mxu0 %v11159_v26 }
 0x3c9   :  { %9213 = vmatpush3.bf16.msra.mxu0 %v10666_v53  ;;  %7176 = vmatprep.mubr.msk.f32.mxu0 %vm10455_vm0, %v10456_v8 }
 0x3ca   :  { %9214 = vmatprep.subr.bf16.mxu0 %v10454_v0 }
 0x3cd   :  { %9216 = vmatpush3.bf16.msra.mxu0 %v10685_v57 }
 0x3ce   :  { %9217 = vmatprep.subr.bf16.mxu0 %v10454_v0 }
 0x3d1   :  { %9219 = vmatpush3.bf16.msra.mxu0 %v10701_v60 }
 0x3d2   :  { %9220 = vmatprep.subr.bf16.mxu0 %v10454_v0 }
 0x3d5   :  { %9222 = vmatpush3.bf16.msra.mxu0 %v10713_v63 }
 0x3d6   :  { %9223 = vmatprep.subr.bf16.mxu0 %v10454_v0 }
 0x3d9   :  { %9225 = vmatpush3.bf16.msra.mxu0 %v10725_v3 }
 0x3da   :  { %9226 = vmatprep.subr.bf16.mxu0 %v10454_v0 }
 0x3dd   :  { %9228 = vmatpush3.bf16.msra.mxu0 %v10737_v7 }
 0x3de   :  { %9229 = vmatprep.subr.bf16.mxu0 %v10454_v0 }
 0x3e1   :  { %9231 = vmatpush3.bf16.msra.mxu0 %v10749_v14 }
 0x3e2   :  { %9232 = vmatprep.subr.bf16.mxu0 %v10454_v0 }
 0x3e5   :  { %v919_v33 = vpop.f32.mrb[10].mxu0  ;;  %9234 = vmatpush3.bf16.msra.mxu0 %v10766_v17 }
 0x3e6   :  { %v920_v41 = vadd.f32 %v919_v33, %v849_v20  ;;  %v7038_v47 = vpop.f32.mrb[11].mxu0  ;;  %9259 = vmatprep.subr.bf16.mxu0 %v10454_v0  ;;  %v2026_v20 = vld [vmem:[%s13083_s4 + $0x3a0] sm:$0xff]  ;;  %v2029_v33 = vld [vmem:[%s13083_s4 + $0x3b8] sm:$0xff] }
 0x3e7   :  { %v2030_v47 = vld [vmem:[%s13083_s4 + $0x3c0] sm:$0xff] }
 0x3e8   :  { %v923_v1 = vadd.f32 %v11111_v52, %v920_v41  ;;  %v11445_v41 = vpack.c.bf16 %v2029_v33, %v2028_v28  ;;  %v2014_v28 = vld [vmem:[%s13083_s4 + $0x340] sm:$0xff]  ;;  %v2015_v33 = vld [vmem:[%s13083_s4 + $0x348] sm:$0xff] }
 0x3ea   :  { %v924_v59 = vmax.f32 %v923_v1, 0.0  ;;  %v2031_v1 = vld [vmem:[%s13083_s4 + $0x3c8] sm:$0xff] }
 0x3ec   :  { %7072 = vmatmul.mubr.f32.vlgmr.msra.gmra.mrb[10].mxu1 %v924_v59  ;;  %v11455_v59 = vpack.c.bf16 %v2031_v1, %v2030_v47  ;;  %v11605_v47 = vpack.c.bf16 %v2015_v33, %v2014_v28  ;;  %v2016_v1 = vld [vmem:[%s13083_s4 + $0x350] sm:$0xff] }
 0x3ed   :  { %9189 = vmatpush3.bf16.msra.mxu1 %v10518_v9  ;;  %7141 = vmatprep.mubr.msk.f32.mxu1 %vm10455_vm0, %v10456_v8 }
 0x3ee   :  { %9190 = vmatprep.subr.bf16.mxu1 %v10454_v0 }
 0x3f1   :  { %9192 = vmatpush3.bf16.msra.mxu1 %v10531_v13 }
 0x3f2   :  { %9193 = vmatprep.subr.bf16.mxu1 %v10454_v0 }
 0x3f5   :  { %9195 = vmatpush3.bf16.msra.mxu1 %v10551_v19 }
 0x3f6   :  { %9196 = vmatprep.subr.bf16.mxu1 %v10454_v0 }
 0x3f9   :  { %9198 = vmatpush3.bf16.msra.mxu1 %v10571_v25 }
 0x3fa   :  { %9199 = vmatprep.subr.bf16.mxu1 %v10454_v0 }
 0x3fd   :  { %9201 = vmatpush3.bf16.msra.mxu1 %v10591_v31 }
 0x3fe   :  { %9202 = vmatprep.subr.bf16.mxu1 %v10454_v0 }
 0x401   :  { %9204 = vmatpush3.bf16.msra.mxu1 %v10611_v37 }
 0x402   :  { %9205 = vmatprep.subr.bf16.mxu1 %v10454_v0 }
 0x405   :  { %9207 = vmatpush3.bf16.msra.mxu1 %v10631_v43 }
 0x406   :  { %9208 = vmatprep.subr.bf16.mxu1 %v10454_v0 }
 0x409   :  { %9210 = vmatpush3.bf16.msra.mxu1 %v10651_v49 }
 0x40a   :  { %9235 = vmatprep.subr.bf16.mxu1 %v10454_v0 }
 0x40c   :  { %7142 = vmatmul.mubr.f32.vlgmr.msra.gmra.mrb[12].mxu1 %v10672_v54 }
 0x40d   :  { %9237 = vmatpush3.bf16.msra.mxu1 %v10503_v4  ;;  %7211 = vmatprep.mubr.msk.f32.mxu1 %vm10455_vm0, %v10456_v8 }
 0x40e   :  { %9238 = vmatprep.subr.bf16.mxu1 %v10454_v0 }
 0x411   :  { %9240 = vmatpush3.bf16.msra.mxu1 %v10527_v12 }
 0x412   :  { %9241 = vmatprep.subr.bf16.mxu1 %v10454_v0 }
 0x415   :  { %9243 = vmatpush3.bf16.msra.mxu1 %v10547_v18 }
 0x416   :  { %9244 = vmatprep.subr.bf16.mxu1 %v10454_v0 }
 0x419   :  { %9246 = vmatpush3.bf16.msra.mxu1 %v10567_v24 }
 0x41a   :  { %9247 = vmatprep.subr.bf16.mxu1 %v10454_v0 }
 0x41d   :  { %9249 = vmatpush3.bf16.msra.mxu1 %v10587_v30 }
 0x41e   :  { %9250 = vmatprep.subr.bf16.mxu1 %v10454_v0 }
 0x421   :  { %9252 = vmatpush3.bf16.msra.mxu1 %v10607_v36 }
 0x422   :  { %9253 = vmatprep.subr.bf16.mxu1 %v10454_v0 }
 0x425   :  { %9255 = vmatpush3.bf16.msra.mxu1 %v10627_v42 }
 0x426   :  { %9256 = vmatprep.subr.bf16.mxu1 %v10454_v0 }
 0x429   :  { %9258 = vmatpush3.bf16.msra.mxu1 %v10647_v48 }
 0x42a   :  { %9283 = vmatprep.subr.bf16.mxu1 %v10454_v0 }
 0x49b   :  { %v1061_v4 = vpop.f32.mrb[12].mxu0 }
 0x49c   :  { %v7108_v12 = vpop.f32.mrb[13].mxu0 }
 0x49d   :  { %v2033_v12 = vld [vmem:[%s13083_s4 + $0x3d8] sm:$0xff] }
 0x4bf   :  { %v991_v18 = vpop.f32.mrb[10].mxu1 }
 0x4c0   :  { %v11219_v24 = vadd.f32 %v11156_v11, %v991_v18  ;;  %v7073_v30 = vpop.f32.mrb[11].mxu1 }
 0x4c1   :  { %v2035_v30 = vld [vmem:[%s13083_s4 + $0x3e8] sm:$0xff] }
 0x4c2   :  { %7212 = vmatmul.mubr.f32.vlgmr.msra.gmra.mrb[14].mxu1 %v11219_v24 }
 0x4c3   :  { %9285 = vmatpush3.bf16.msra.mxu1 %v10666_v53  ;;  %7281 = vmatprep.mubr.msk.f32.mxu1 %vm10455_vm0, %v10456_v8 }
 0x4c4   :  { %9286 = vmatprep.subr.bf16.mxu1 %v10454_v0 }
 0x4c7   :  { %9288 = vmatpush3.bf16.msra.mxu1 %v10685_v57 }
 0x4c8   :  { %9289 = vmatprep.subr.bf16.mxu1 %v10454_v0 }
 0x4cb   :  { %9291 = vmatpush3.bf16.msra.mxu1 %v10701_v60 }
 0x4cc   :  { %9292 = vmatprep.subr.bf16.mxu1 %v10454_v0 }
 0x4cf   :  { %9294 = vmatpush3.bf16.msra.mxu1 %v10713_v63 }
 0x4d0   :  { %9295 = vmatprep.subr.bf16.mxu1 %v10454_v0 }
 0x4d3   :  { %9297 = vmatpush3.bf16.msra.mxu1 %v10725_v3 }
 0x4d4   :  { %9298 = vmatprep.subr.bf16.mxu1 %v10454_v0 }
 0x4d7   :  { %9300 = vmatpush3.bf16.msra.mxu1 %v10737_v7 }
 0x4d8   :  { %9301 = vmatprep.subr.bf16.mxu1 %v10454_v0 }
 0x4db   :  { %9303 = vmatpush3.bf16.msra.mxu1 %v10749_v14 }
 0x4dc   :  { %9304 = vmatprep.subr.bf16.mxu1 %v10454_v0 }
 0x4df   :  { %v1131_v36 = vpop.f32.mrb[12].mxu1  ;;  %9306 = vmatpush3.bf16.msra.mxu1 %v10766_v17 }
 0x4e0   :  { %v1132_v42 = vadd.f32 %v1131_v36, %v1061_v4  ;;  %v7143_v48 = vpop.f32.mrb[13].mxu1  ;;  %9331 = vmatprep.subr.bf16.mxu1 %v10454_v0  ;;  %v2032_v4 = vld [vmem:[%s13083_s4 + $0x3d0] sm:$0xff] }
 0x4e1   :  { %v11465_v18 = vpack.c.bf16 %v2033_v12, %v2032_v4  ;;  %v2037_v48 = vld [vmem:[%s13083_s4 + $0x3f8] sm:$0xff] }
 0x4e2   :  { %v1135_v53 = vadd.f32 %v10797_v23, %v1132_v42  ;;  %v2036_v42 = vld [vmem:[%s13083_s4 + $0x3f0] sm:$0xff]  ;;  %v2017_v4 = vld [vmem:[%s13083_s4 + $0x358] sm:$0xff] }
 0x4e3   :  { %v11615_v12 = vpack.c.bf16 %v2017_v4, %v2016_v1  ;;  %v11767_v1 = vld [vmem:[%s13084_s0 + $0x10] sm:$0xff] }
 0x4e4   :  { %v1136_v54 = vmax.f32 %v1135_v53, 0.0  ;;  %v11485_v53 = vpack.c.bf16 %v2037_v48, %v2036_v42  ;;  %v2020_v48 = vld [vmem:[%s13083_s4 + $0x370] sm:$0xff] }
 0x4e6   :  { %7177 = vmatmul.mubr.f32.vlgmr.msra.gmra.mrb[14].mxu0 %v1136_v54  ;;  %v2006_v54 = vld [vmem:[%s13083_s4 + $0x300] sm:$0xff] }
 0x4e7   :  { %9261 = vmatpush3.bf16.msra.mxu0 %v10518_v9  ;;  %7246 = vmatprep.mubr.msk.f32.mxu0 %vm10455_vm0, %v10456_v8 }
 0x4e8   :  { %9262 = vmatprep.subr.bf16.mxu0 %v10454_v0 }
 0x4eb   :  { %9264 = vmatpush3.bf16.msra.mxu0 %v10531_v13 }
 0x4ec   :  { %9265 = vmatprep.subr.bf16.mxu0 %v10454_v0 }
 0x4ef   :  { %9267 = vmatpush3.bf16.msra.mxu0 %v10551_v19 }
 0x4f0   :  { %9268 = vmatprep.subr.bf16.mxu0 %v10454_v0 }
 0x4f3   :  { %9270 = vmatpush3.bf16.msra.mxu0 %v10571_v25 }
 0x4f4   :  { %9271 = vmatprep.subr.bf16.mxu0 %v10454_v0 }
 0x4f7   :  { %9273 = vmatpush3.bf16.msra.mxu0 %v10591_v31 }
 0x4f8   :  { %9274 = vmatprep.subr.bf16.mxu0 %v10454_v0 }
 0x4fb   :  { %9276 = vmatpush3.bf16.msra.mxu0 %v10611_v37 }
 0x4fc   :  { %9277 = vmatprep.subr.bf16.mxu0 %v10454_v0 }
 0x4ff   :  { %9279 = vmatpush3.bf16.msra.mxu0 %v10631_v43 }
 0x500   :  { %9280 = vmatprep.subr.bf16.mxu0 %v10454_v0 }
 0x503   :  { %9282 = vmatpush3.bf16.msra.mxu0 %v10651_v49 }
 0x504   :  { %9307 = vmatprep.subr.bf16.mxu0 %v10454_v0 }
 0x506   :  { %7247 = vmatmul.mubr.f32.vlgmr.msra.gmra.mrb[16].mxu0 %v11159_v26 }
 0x507   :  { %9309 = vmatpush3.bf16.msra.mxu0 %v10823_v35  ;;  %7316 = vmatprep.mubr.msk.f32.mxu0 %vm10455_vm0, %v10456_v8 }
 0x508   :  { %9310 = vmatprep.subr.bf16.mxu0 %v10454_v0 }
 0x50b   :  { %9312 = vmatpush3.bf16.msra.mxu0 %v10834_v40 }
 0x50c   :  { %9313 = vmatprep.subr.bf16.mxu0 %v10454_v0 }
 0x50f   :  { %9315 = vmatpush3.bf16.msra.mxu0 %v10846_v45 }
 0x510   :  { %9316 = vmatprep.subr.bf16.mxu0 %v10454_v0 }
 0x513   :  { %9318 = vmatpush3.bf16.msra.mxu0 %v10856_v50 }
 0x514   :  { %9319 = vmatprep.subr.bf16.mxu0 %v10454_v0 }
 0x517   :  { %9321 = vmatpush3.bf16.msra.mxu0 %v10866_v56 }
 0x518   :  { %9322 = vmatprep.subr.bf16.mxu0 %v10454_v0 }
 0x51b   :  { %9324 = vmatpush3.bf16.msra.mxu0 %v10876_v61 }
 0x51c   :  { %9325 = vmatprep.subr.bf16.mxu0 %v10454_v0 }
 0x51f   :  { %9327 = vmatpush3.bf16.msra.mxu0 %v10886_v2 }
 0x520   :  { %9328 = vmatprep.subr.bf16.mxu0 %v10454_v0 }
 0x523   :  { %9330 = vmatpush3.bf16.msra.mxu0 %v10897_v10 }
 0x524   :  { %9355 = vmatprep.subr.bf16.mxu0 %v10454_v0 }
 0x595   :  { %v1273_v9 = vpop.f32.mrb[14].mxu1 }
 0x596   :  { %v7213_v13 = vpop.f32.mrb[15].mxu1 }
 0x5b9   :  { %v1203_v19 = vpop.f32.mrb[14].mxu0 }
 0x5ba   :  { %v1204_v25 = vadd.f32 %v10904_v16, %v1203_v19  ;;  %v7178_v31 = vpop.f32.mrb[15].mxu0  ;;  %v2197_v19 = vld [vmem:[%s13083_s4 + $0x400] sm:$0xff] }
 0x5bb   :  { %v2199_v31 = vld [vmem:[%s13083_s4 + $0x410] sm:$0xff] }
 0x5bc   :  { %7317 = vmatmul.mubr.f32.vlgmr.msra.gmra.mrb[18].mxu0 %v1204_v25  ;;  %v2198_v25 = vld [vmem:[%s13083_s4 + $0x408] sm:$0xff] }
 0x5bd   :  { %9357 = vmatpush3.bf16.msra.mxu0 %v11020_v39  ;;  %7386 = vmatprep.mubr.msk.f32.mxu0 %vm10455_vm0, %v10456_v8 }
 0x5be   :  { %9358 = vmatprep.subr.bf16.mxu0 %v10454_v0 }
 0x5c1   :  { %9360 = vmatpush3.bf16.msra.mxu0 %v11026_v44 }
 0x5c2   :  { %9361 = vmatprep.subr.bf16.mxu0 %v10454_v0 }
 0x5c5   :  { %9363 = vmatpush3.bf16.msra.mxu0 %v11036_v58 }
 0x5c6   :  { %9364 = vmatprep.subr.bf16.mxu0 %v10454_v0 }
 0x5c9   :  { %9366 = vmatpush3.bf16.msra.mxu0 %v11046_v5 }
 0x5ca   :  { %9367 = vmatprep.subr.bf16.mxu0 %v10454_v0 }
 0x5cd   :  { %9369 = vmatpush3.bf16.msra.mxu0 %v11056_v22 }
 0x5ce   :  { %9370 = vmatprep.subr.bf16.mxu0 %v10454_v0 }
 0x5d1   :  { %9372 = vmatpush3.bf16.msra.mxu0 %v11066_v29 }
 0x5d2   :  { %9373 = vmatprep.subr.bf16.mxu0 %v10454_v0 }
 0x5d5   :  { %9375 = vmatpush3.bf16.msra.mxu0 %v11076_v34 }
 0x5d6   :  { %9376 = vmatprep.subr.bf16.mxu0 %v10454_v0 }
 0x5d9   :  { %v1343_v37 = vpop.f32.mrb[16].mxu0  ;;  %9378 = vmatpush3.bf16.msra.mxu0 %v11087_v51 }
 0x5da   :  { %v1344_v43 = vadd.f32 %v1343_v37, %v1273_v9  ;;  %v7248_v49 = vpop.f32.mrb[17].mxu0  ;;  %9403 = vmatprep.subr.bf16.mxu0 %v10454_v0  ;;  %v2007_v9 = vld [vmem:[%s13083_s4 + $0x308] sm:$0xff]  ;;  %v11508_v37 = vpack.c.bf16 %v2198_v25, %v2197_v19  ;;  %v2211_v19 = vld [vmem:[%s13083_s4 + $0x470] sm:$0xff]  ;;  %v2212_v25 = vld [vmem:[%s13083_s4 + $0x478] sm:$0xff] }
 0x5db   :  { %v11496_v13 = vpack.c.bf16 %v2007_v9, %v2006_v54  ;;  %v2021_v54 = vld [vmem:[%s13083_s4 + $0x378] sm:$0xff] }
 0x5dc   :  { %v1347_v57 = vadd.f32 %v10797_v23, %v1344_v43  ;;  %v2200_v43 = vld [vmem:[%s13083_s4 + $0x418] sm:$0xff]  ;;  %v11635_v9 = vpack.c.bf16 %v2021_v54, %v2020_v48 }
 0x5dd   :  { %v11513_v49 = vpack.c.bf16 %v2200_v43, %v2199_v31  ;;  %v11660_v31 = vpack.c.bf16 %v2212_v25, %v2211_v19  ;;  %v11671_v43 = vld [vmem:[%s13085_s5 + $0x4] ss:$0 sm:$0xff]  ;;  %v3276_v48 = vld [vmem:[%s13083_s4 + $0x4d8] sm:$0xff]  ;;  %v3278_v19 = vld [vmem:[%s13083_s4 + $0x4e8] sm:$0xff] }
 0x5de   :  { %v1348_v60 = vmax.f32 %v1347_v57, 0.0  ;;  %v2201_v57 = vld [vmem:[%s13083_s4 + $0x420] sm:$0xff] }
 0x5e0   :  { %7282 = vmatmul.mubr.f32.vlgmr.msra.gmra.mrb[16].mxu1 %v1348_v60  ;;  %v2202_v60 = vld [vmem:[%s13083_s4 + $0x428] sm:$0xff] }
 0x5e1   :  { %9333 = vmatpush3.bf16.msra.mxu1 %v10916_v38  ;;  %7351 = vmatprep.mubr.msk.f32.mxu1 %vm10455_vm0, %v10456_v8 }
 0x5e2   :  { %9334 = vmatprep.subr.bf16.mxu1 %v10454_v0 }
 0x5e5   :  { %9336 = vmatpush3.bf16.msra.mxu1 %v10925_v46 }
 0x5e6   :  { %9337 = vmatprep.subr.bf16.mxu1 %v10454_v0 }
 0x5e9   :  { %9339 = vmatpush3.bf16.msra.mxu1 %v10937_v55 }
 0x5ea   :  { %9340 = vmatprep.subr.bf16.mxu1 %v10454_v0 }
 0x5ed   :  { %9342 = vmatpush3.bf16.msra.mxu1 %v10947_v62 }
 0x5ee   :  { %9343 = vmatprep.subr.bf16.mxu1 %v10454_v0 }
 0x5f1   :  { %9345 = vmatpush3.bf16.msra.mxu1 %v10957_v6 }
 0x5f2   :  { %9346 = vmatprep.subr.bf16.mxu1 %v10454_v0 }
 0x5f5   :  { %9348 = vmatpush3.bf16.msra.mxu1 %v10967_v21 }
 0x5f6   :  { %9349 = vmatprep.subr.bf16.mxu1 %v10454_v0 }
 0x5f9   :  { %9351 = vmatpush3.bf16.msra.mxu1 %v10977_v27 }
 0x5fa   :  { %9352 = vmatprep.subr.bf16.mxu1 %v10454_v0 }
 0x5fd   :  { %9354 = vmatpush3.bf16.msra.mxu1 %v10987_v32 }
 0x5fe   :  { %9379 = vmatprep.subr.bf16.mxu1 %v10454_v0 }
 0x600   :  { %7352 = vmatmul.mubr.f32.vlgmr.msra.gmra.mrb[18].mxu1 %v11159_v26  ;;  %v11435_v26 = vpack.c.bf16 %v2027_v15, %v2026_v20  ;;  %v2013_v20 = vld [vmem:[%s13083_s4 + $0x338] sm:$0xff] }
 0x601   :  { %9381 = vmatpush3.bf16.msra.mxu1 %v10823_v35  ;;  %7421 = vmatprep.mubr.msk.f32.mxu1 %vm10455_vm0, %v10456_v8 }
 0x602   :  { %9382 = vmatprep.subr.bf16.mxu1 %v10454_v0 }
 0x605   :  { %9384 = vmatpush3.bf16.msra.mxu1 %v10834_v40 }
 0x606   :  { %9385 = vmatprep.subr.bf16.mxu1 %v10454_v0 }
 0x609   :  { %9387 = vmatpush3.bf16.msra.mxu1 %v10846_v45 }
 0x60a   :  { %9388 = vmatprep.subr.bf16.mxu1 %v10454_v0 }
 0x60d   :  { %9390 = vmatpush3.bf16.msra.mxu1 %v10856_v50 }
 0x60e   :  { %9391 = vmatprep.subr.bf16.mxu1 %v10454_v0 }
 0x611   :  { %9393 = vmatpush3.bf16.msra.mxu1 %v10866_v56 }
 0x612   :  { %9394 = vmatprep.subr.bf16.mxu1 %v10454_v0 }
 0x615   :  { %9396 = vmatpush3.bf16.msra.mxu1 %v10876_v61 }
 0x616   :  { %9397 = vmatprep.subr.bf16.mxu1 %v10454_v0 }
 0x619   :  { %9399 = vmatpush3.bf16.msra.mxu1 %v10886_v2 }
 0x61a   :  { %9400 = vmatprep.subr.bf16.mxu1 %v10454_v0 }
 0x61d   :  { %9402 = vmatpush3.bf16.msra.mxu1 %v10897_v10 }
 0x61e   :  { %9427 = vmatprep.subr.bf16.mxu1 %v10454_v0 }
 0x68f   :  { %v1485_v63 = vpop.f32.mrb[18].mxu0 }
 0x690   :  { %v7318_v3 = vpop.f32.mrb[19].mxu0 }
 0x691   :  { %v2203_v3 = vld [vmem:[%s13083_s4 + $0x430] sm:$0xff] }
 0x6b3   :  { %v1415_v7 = vpop.f32.mrb[16].mxu1 }
 0x6b4   :  { %v1416_v14 = vadd.f32 %v10904_v16, %v1415_v7  ;;  %v7283_v17 = vpop.f32.mrb[17].mxu1  ;;  %v2204_v7 = vld [vmem:[%s13083_s4 + $0x438] sm:$0xff] }
 0x6b5   :  { %v2205_v17 = vld [vmem:[%s13083_s4 + $0x440] sm:$0xff] }
 0x6b6   :  { %7422 = vmatmul.mubr.f32.vlgmr.msra.gmra.mrb[20].mxu1 %v1416_v14  ;;  %v11534_v14 = vpack.c.bf16 %v2204_v7, %v2203_v3 }
 0x6b7   :  { %9429 = vmatpush3.bf16.msra.mxu1 %v11020_v39  ;;  %7491 = vmatprep.mubr.msk.f32.mxu1 %vm10455_vm0, %v10456_v8 }
 0x6b8   :  { %9430 = vmatprep.subr.bf16.mxu1 %v10454_v0 }
 0x6bb   :  { %9432 = vmatpush3.bf16.msra.mxu1 %v11026_v44 }
 0x6bc   :  { %9433 = vmatprep.subr.bf16.mxu1 %v10454_v0 }
 0x6bf   :  { %9435 = vmatpush3.bf16.msra.mxu1 %v11036_v58 }
 0x6c0   :  { %9436 = vmatprep.subr.bf16.mxu1 %v10454_v0 }
 0x6c3   :  { %9438 = vmatpush3.bf16.msra.mxu1 %v11046_v5  ;;  %v2024_v5 = vld [vmem:[%s13083_s4 + $0x390] sm:$0xff] }
 0x6c4   :  { %9439 = vmatprep.subr.bf16.mxu1 %v10454_v0 }
 0x6c7   :  { %9441 = vmatpush3.bf16.msra.mxu1 %v11056_v22  ;;  %v2025_v22 = vld [vmem:[%s13083_s4 + $0x398] sm:$0xff] }
 0x6c8   :  { %9442 = vmatprep.subr.bf16.mxu1 %v10454_v0 }
 0x6cb   :  { %9444 = vmatpush3.bf16.msra.mxu1 %v11066_v29  ;;  %v11407_v29 = vld [vmem:[%s13086_s2 + $0x8] sm:$0xff] }
 0x6cc   :  { %9445 = vmatprep.subr.bf16.mxu1 %v10454_v0 }
 0x6cf   :  { %9447 = vmatpush3.bf16.msra.mxu1 %v11076_v34  ;;  %v11412_v34 = vld [vmem:[%s13087_s1 + $0x8] sm:$0xff] }
 0x6d0   :  { %9448 = vmatprep.subr.bf16.mxu1 %v10454_v0 }
 0x6d3   :  { %v1555_v23 = vpop.f32.mrb[18].mxu1  ;;  %9450 = vmatpush3.bf16.msra.mxu1 %v11087_v51 }
 0x6d4   :  { %v1556_v35 = vadd.f32 %v1555_v23, %v1485_v63  ;;  %v7353_v40 = vpop.f32.mrb[19].mxu1  ;;  %v11524_v63 = vpack.c.bf16 %v2202_v60, %v2201_v57  ;;  %v2206_v23 = vld [vmem:[%s13083_s4 + $0x448] sm:$0xff] }
 0x6d5   :  { %v2207_v40 = vld [vmem:[%s13083_s4 + $0x450] sm:$0xff] }
 0x6d6   :  { %v1559_v45 = vadd.f32 %v11111_v52, %v1556_v35  ;;  %v11544_v35 = vpack.c.bf16 %v2206_v23, %v2205_v17 }
 0x6d8   :  { %v1560_v50 = vmax.f32 %v1559_v45, 0.0  ;;  %v2208_v45 = vld [vmem:[%s13083_s4 + $0x458] sm:$0xff] }
 0x6da   :  { %7387 = vmatmul.mubr.f32.vlgmr.msra.gmra.mrb[20].mxu0 %v1560_v50  ;;  %v11554_v50 = vpack.c.bf16 %v2208_v45, %v2207_v40  ;;  %v11680_v40 = vld [vmem:[%s13085_s5 + $0x5] ss:$0 sm:$0xff] }
 0x6db   :  { %9405 = vmatpush3.bf16.msra.mxu0 %v10916_v38  ;;  %7456 = vmatprep.mubr.msk.f32.mxu0 %vm10455_vm0, %v10456_v8 }
 0x6dc   :  { %9406 = vmatprep.subr.bf16.mxu0 %v10454_v0 }
 0x6df   :  { %9408 = vmatpush3.bf16.msra.mxu0 %v10925_v46 }
 0x6e0   :  { %9409 = vmatprep.subr.bf16.mxu0 %v10454_v0 }
 0x6e3   :  { %9411 = vmatpush3.bf16.msra.mxu0 %v10937_v55 }
 0x6e4   :  { %9412 = vmatprep.subr.bf16.mxu0 %v10454_v0 }
 0x6e7   :  { %9414 = vmatpush3.bf16.msra.mxu0 %v10947_v62 }
 0x6e8   :  { %9415 = vmatprep.subr.bf16.mxu0 %v10454_v0 }
 0x6eb   :  { %9417 = vmatpush3.bf16.msra.mxu0 %v10957_v6  ;;  %v11378_v6 = vld [vmem:[%s13086_s2] sm:$0xff] }
 0x6ec   :  { %9418 = vmatprep.subr.bf16.mxu0 %v10454_v0 }
 0x6ef   :  { %9420 = vmatpush3.bf16.msra.mxu0 %v10967_v21  ;;  %v11385_v21 = vld [vmem:[%s13087_s1] sm:$0xff] }
 0x6f0   :  { %9421 = vmatprep.subr.bf16.mxu0 %v10454_v0 }
 0x6f3   :  { %9423 = vmatpush3.bf16.msra.mxu0 %v10977_v27  ;;  %v2022_v27 = vld [vmem:[%s13083_s4 + $0x380] sm:$0xff] }
 0x6f4   :  { %9424 = vmatprep.subr.bf16.mxu0 %v10454_v0 }
 0x6f7   :  { %9426 = vmatpush3.bf16.msra.mxu0 %v10987_v32  ;;  %v2023_v32 = vld [vmem:[%s13083_s4 + $0x388] sm:$0xff] }
 0x6f8   :  { %v11414_v51 = vpack.c.bf16 %v2023_v32, %v2022_v27 }
 0x6fa   :  { %7457 = vmatmul.mubr.f32.vlgmr.msra.gmra.mrb[22].mxu0 %v11219_v24  ;;  %v2034_v24 = vld [vmem:[%s13083_s4 + $0x3e0] sm:$0xff] }
 0x6fb   :  { %7496 = vmatprep.mubr.msk.f32.mxu0 %vm1843_vm1, %v11385_v21  ;;  %v11475_v36 = vpack.c.bf16 %v2035_v30, %v2034_v24  ;;  %v2018_v24 = vld [vmem:[%s13083_s4 + $0x360] sm:$0xff]  ;;  %v2019_v30 = vld [vmem:[%s13083_s4 + $0x368] sm:$0xff] }
 0x6fc   :  { %v11625_v42 = vpack.c.bf16 %v2019_v30, %v2018_v24  ;;  %v3274_v24 = vld [vmem:[%s13083_s4 + $0x4c8] sm:$0xff] }
 0x789   :  { %v1697_v56 = vpop.f32.mrb[20].mxu1 }
 0x78a   :  { %v7423_v61 = vpop.f32.mrb[21].mxu1 }
 0x78b   :  { %v2210_v61 = vld [vmem:[%s13083_s4 + $0x468] sm:$0xff] }
 0x7ad   :  { %v11372_v2 = vpop.f32.mrb[20].mxu0 }
 0x7ae   :  { %v7388_v10 = vpop.f32.mrb[21].mxu0 }
 0x7cd   :  { %v1767_v16 = vpop.f32.mrb[22].mxu0 }
 0x7ce   :  { %v1768_v38 = vadd.f32 %v1767_v16, %v1697_v56  ;;  %v7458_v46 = vpop.f32.mrb[23].mxu0  ;;  %v2209_v56 = vld [vmem:[%s13083_s4 + $0x460] sm:$0xff]  ;;  %v2008_v16 = vld [vmem:[%s13083_s4 + $0x310] sm:$0xff] }
 0x7cf   :  { %v11564_v10 = vpack.c.bf16 %v2210_v61, %v2209_v56 }
 0x7d0   :  { %v1771_v55 = vadd.f32 %v11111_v52, %v1768_v38  ;;  %v11420_v52 = vpack.c.bf16 %v2025_v22, %v2024_v5  ;;  %v2009_v38 = vld [vmem:[%s13083_s4 + $0x318] sm:$0xff]  ;;  %v2012_v22 = vld [vmem:[%s13083_s4 + $0x330] sm:$0xff] }
 0x7d1   :  { %v11575_v27 = vpack.c.bf16 %v2009_v38, %v2008_v16  ;;  %v11595_v15 = vpack.c.bf16 %v2013_v20, %v2012_v22 }
 0x7d2   :  { %v1772_v62 = vmax.f32 %v1771_v55, 0.0 }
 0x7d4   :  { %7492 = vmatmul.mubr.f32.vlgmr.msra.gmra.mrb[22].mxu1 %v1772_v62 }
 0x7d5   :  { %7501 = vmatprep.mubr.msk.f32.mxu1 %vm1843_vm1, %v11378_v6 }
 0x8a7   :  { %v1839_v39 = vpop.f32.mrb[22].mxu1 }
 0x8a8   :  { %v11396_v44 = vadd.f32 %v11156_v11, %v1839_v39  ;;  %v7493_v58 = vpop.f32.mrb[23].mxu1  ;;  %v2010_v39 = vld [vmem:[%s13083_s4 + $0x320] sm:$0xff] }
 0x8a9   :  { %v2011_v58 = vld [vmem:[%s13083_s4 + $0x328] sm:$0xff] }
 0x8aa   :  { %7494 = vmatprep.subr.mxu0 %v11396_v44  ;;  %7499 = vmatprep.subr.mxu1 %v11396_v44  ;;  %v11585_v5 = vpack.c.bf16 %v2011_v58, %v2010_v39 }
 0x8ab   :  { %7495 = vmatpush3.msra.mxu0 %v11396_v44  ;;  %7500 = vmatpush3.msra.mxu1 %v11396_v44 }
 0x8ac   :  { %7502 = vmatmul.mubr.msk.f32.vlgmr.msra.gmra.mrb[24].mxu1 %vm1843_vm1, %v11407_v29  ;;  %7497 = vmatmul.mubr.msk.f32.vlgmr.msra.gmra.mrb[24].mxu0 %vm1843_vm1, %v11412_v34 }
 0x8ad   :  { %9452 = vmatprep.subr.bf16.mxu0 %v11414_v51  ;;  %9516 = vmatprep.subr.bf16.mxu1 %v11508_v37 }
 0x8ae   :  { %9454 = vmatpush3.bf16.msra.mxu0 %v11414_v51  ;;  %9518 = vmatpush3.bf16.msra.mxu1 %v11508_v37 }
 0x8af   :  { %9456 = vmatprep.subr.bf16.mxu0 %v11420_v52  ;;  %9520 = vmatprep.subr.bf16.mxu1 %v11513_v49 }
 0x8b2   :  { %9458 = vmatpush3.bf16.msra.mxu0 %v11420_v52  ;;  %9522 = vmatpush3.bf16.msra.mxu1 %v11513_v49 }
 0x8b3   :  { %9460 = vmatprep.subr.bf16.mxu0 %v11435_v26  ;;  %9524 = vmatprep.subr.bf16.mxu1 %v11524_v63 }
 0x8b6   :  { %9462 = vmatpush3.bf16.msra.mxu0 %v11435_v26  ;;  %9526 = vmatpush3.bf16.msra.mxu1 %v11524_v63 }
 0x8b7   :  { %9464 = vmatprep.subr.bf16.mxu0 %v11445_v41  ;;  %9528 = vmatprep.subr.bf16.mxu1 %v11534_v14 }
 0x8ba   :  { %9466 = vmatpush3.bf16.msra.mxu0 %v11445_v41  ;;  %9530 = vmatpush3.bf16.msra.mxu1 %v11534_v14 }
 0x8bb   :  { %9468 = vmatprep.subr.bf16.mxu0 %v11455_v59  ;;  %9532 = vmatprep.subr.bf16.mxu1 %v11544_v35 }
 0x8be   :  { %9470 = vmatpush3.bf16.msra.mxu0 %v11455_v59  ;;  %9534 = vmatpush3.bf16.msra.mxu1 %v11544_v35 }
 0x8bf   :  { %9472 = vmatprep.subr.bf16.mxu0 %v11465_v18  ;;  %9536 = vmatprep.subr.bf16.mxu1 %v11554_v50 }
 0x8c2   :  { %9474 = vmatpush3.bf16.msra.mxu0 %v11465_v18  ;;  %9538 = vmatpush3.bf16.msra.mxu1 %v11554_v50 }
 0x8c3   :  { %9476 = vmatprep.subr.bf16.mxu0 %v11475_v36  ;;  %9540 = vmatprep.subr.bf16.mxu1 %v11564_v10 }
 0x8c6   :  { %9478 = vmatpush3.bf16.msra.mxu0 %v11475_v36  ;;  %9542 = vmatpush3.bf16.msra.mxu1 %v11564_v10 }
 0x8c7   :  { %9480 = vmatprep.subr.bf16.mxu0 %v11485_v53  ;;  %9544 = vmatprep.subr.bf16.mxu1 %v11660_v31 }
 0x8ca   :  { %9482 = vmatpush3.bf16.msra.mxu0 %v11485_v53  ;;  %9546 = vmatpush3.bf16.msra.mxu1 %v11660_v31 }
 0x8cb   :  { %9484 = vmatprep.subr.bf16.mxu0 %v11496_v13  ;;  %9547 = vmatprep.subr.bf16.mxu1 %v10454_v0 }
 0x97f   :  { %v7503_v46 = vpop.f32.mrb[24].mxu1  ;;  %v7498_v55 = vpop.f32.mrb[24].mxu0 }
 0x980   :  { %v1997_v62 = vpop.f32.mrb[25].mxu1  ;;  %v1916_v32 = vpop.f32.mrb[25].mxu0 }
 0x981   :  { %7536 = vmatprep.mubr.f32.mxu0 %v1997_v62 }
 0x982   :  { %7537 = vmatmul.mubr.f32.vlgmr.msra.gmra.mrb[26].mxu0 %v7503_v46  ;;  %v11686_v46 = vadd.f32 %v11156_v11, %v11372_v2 }
 0x983   :  { %9486 = vmatpush3.bf16.msra.mxu0 %v11496_v13  ;;  %7571 = vmatprep.mubr.f32.mxu0 %v1916_v32 }
 0x984   :  { %9488 = vmatprep.subr.bf16.mxu0 %v11575_v27 }
 0x987   :  { %9490 = vmatpush3.bf16.msra.mxu0 %v11575_v27 }
 0x988   :  { %9492 = vmatprep.subr.bf16.mxu0 %v11585_v5 }
 0x98b   :  { %9494 = vmatpush3.bf16.msra.mxu0 %v11585_v5 }
 0x98c   :  { %9496 = vmatprep.subr.bf16.mxu0 %v11595_v15 }
 0x98f   :  { %9498 = vmatpush3.bf16.msra.mxu0 %v11595_v15 }
 0x990   :  { %9500 = vmatprep.subr.bf16.mxu0 %v11605_v47 }
 0x993   :  { %9502 = vmatpush3.bf16.msra.mxu0 %v11605_v47 }
 0x994   :  { %9504 = vmatprep.subr.bf16.mxu0 %v11615_v12 }
 0x997   :  { %9506 = vmatpush3.bf16.msra.mxu0 %v11615_v12 }
 0x998   :  { %9508 = vmatprep.subr.bf16.mxu0 %v11625_v42 }
 0x99b   :  { %9510 = vmatpush3.bf16.msra.mxu0 %v11625_v42 }
 0x99c   :  { %9512 = vmatprep.subr.bf16.mxu0 %v11635_v9 }
 0x99f   :  { %9514 = vmatpush3.bf16.msra.mxu0 %v11635_v9 }
 0x9a0   :  { %9615 = vmatprep.subr.bf16.mxu0 %v11508_v37 }
 0x9a2   :  { %7572 = vmatmul.mubr.f32.vlgmr.msra.gmra.mrb[26].mxu0 %v7498_v55  ;;  %v11691_v55 = vld [vmem:[%s13088_s3] sm:$0xff] }
 0x9a3   :  { %9617 = vmatpush3.bf16.msra.mxu0 %v11508_v37 }
 0x9a4   :  { %9619 = vmatprep.subr.bf16.mxu0 %v11513_v49 }
 0x9a7   :  { %9621 = vmatpush3.bf16.msra.mxu0 %v11513_v49 }
 0x9a8   :  { %9623 = vmatprep.subr.bf16.mxu0 %v11524_v63 }
 0x9ab   :  { %9625 = vmatpush3.bf16.msra.mxu0 %v11524_v63 }
 0x9ac   :  { %9627 = vmatprep.subr.bf16.mxu0 %v11534_v14 }
 0x9af   :  { %9629 = vmatpush3.bf16.msra.mxu0 %v11534_v14 }
 0x9b0   :  { %9631 = vmatprep.subr.bf16.mxu0 %v11544_v35 }
 0x9b3   :  { %9633 = vmatpush3.bf16.msra.mxu0 %v11544_v35 }
 0x9b4   :  { %9635 = vmatprep.subr.bf16.mxu0 %v11554_v50 }
 0x9b7   :  { %9637 = vmatpush3.bf16.msra.mxu0 %v11554_v50 }
 0x9b8   :  { %9639 = vmatprep.subr.bf16.mxu0 %v11564_v10 }
 0x9bb   :  { %9641 = vmatpush3.bf16.msra.mxu0 %v11564_v10 }
 0x9bc   :  { %9643 = vmatprep.subr.bf16.mxu0 %v11660_v31 }
 0x9bf   :  { %9645 = vmatpush3.bf16.msra.mxu0 %v11660_v31 }
 0x9c0   :  { %9646 = vmatprep.subr.bf16.mxu0 %v10454_v0 }
 0xa75   :  { %v7573_v57 = vpop.f32.mrb[26].mxu0 }
 0xa76   :  { %v2194_v60 = vadd.f32 %v7573_v57, %v11671_v43  ;;  %v2179_v3 = vpop.f32.mrb[27].mxu0  ;;  %v3280_v57 = vld [vmem:[%s13083_s4 + $0x4f8] sm:$0xff] }
 0xa77   :  { %v2193_v7 = vadd.f32 %v11671_v43, %v2179_v3  ;;  %v3281_v3 = vld [vmem:[%s13083_s4 + $0x500] sm:$0xff] }
 0xa78   :  { %v2196_v23 = vmax.f32 %v2194_v60, 0.0 }
 0xa79   :  { %v2195_v17 = vmax.f32 %v2193_v7, 0.0  ;;  %v3282_v7 = vld [vmem:[%s13083_s4 + $0x508] sm:$0xff] }
 0xa7b   :  { %7606 = vmatprep.mubr.f32.mxu1 %v2195_v17  ;;  %v11905_v17 = vpack.c.bf16 %v3282_v7, %v3281_v3  ;;  %v3453_v3 = vld [vmem:[%s13083_s4 + $0x5c8] sm:$0xff] }
 0xa7c   :  { %7607 = vmatmul.mubr.f32.vlgmr.msra.gmra.mrb[26].mxu1 %v2196_v23  ;;  %v3283_v23 = vld [vmem:[%s13083_s4 + $0x510] sm:$0xff] }
 0xa7d   :  { %7613 = vmatprep.mubr.msk.f32.mxu1 %vm10455_vm0, %v10456_v8 }
 0xb4f   :  { %v7608_v45 = vpop.f32.mrb[26].mxu1 }
 0xb50   :  { %v2290_v56 = vadd.f32 %v7608_v45, %v11680_v40  ;;  %v2284_v61 = vpop.f32.mrb[27].mxu1  ;;  %v3284_v45 = vld [vmem:[%s13083_s4 + $0x518] sm:$0xff] }
 0xb51   :  { %v2285_v16 = vadd.f32 %v11680_v40, %v2284_v61  ;;  %v3285_v61 = vld [vmem:[%s13083_s4 + $0x520] sm:$0xff] }
 0xb53   :  { %v9548_v38 = vpack.c.bf16 %v2290_v56, %v2285_v16  ;;  %v11916_v56 = vpack.c.bf16 %v3284_v45, %v3283_v23  ;;  %v3286_v16 = vld [vmem:[%s13083_s4 + $0x528] sm:$0xff]  ;;  %v3454_v23 = vld [vmem:[%s13083_s4 + $0x5d0] sm:$0xff]  ;;  %v3455_v45 = vld [vmem:[%s13083_s4 + $0x5d8] sm:$0xff] }
 0xb55   :  { %9549 = vmatpush3.bf16.msra.mxu1 %v9548_v38  ;;  %v3287_v38 = vld [vmem:[%s13083_s4 + $0x530] sm:$0xff] }
 0xb56   :  { %7616 = vmatprep.subr.mxu1 %v11686_v46 }
 0xb58   :  { %7614 = vmatmul.mubr.msk.f32.vlgmr.msra.gmra.mrb[28].mxu1 %vm2293_vm2, %v11691_v55 }
 0xb59   :  { %7617 = vmatpush3.msra.mxu1 %v11686_v46  ;;  %7618 = vmatprep.mubr.msk.f32.mxu1 %vm1843_vm1, %v11385_v21 }
 0xb5a   :  { %7621 = vmatprep.subr.mxu1 %v11686_v46 }
 0xb5c   :  { %7619 = vmatmul.mubr.msk.f32.vlgmr.msra.gmra.mrb[30].mxu1 %vm1843_vm1, %v11412_v34 }
 0xb5d   :  { %7622 = vmatpush3.msra.mxu1 %v11686_v46  ;;  %7623 = vmatprep.mubr.msk.f32.mxu1 %vm1843_vm1, %v11378_v6 }
 0xb5e   :  { %9551 = vmatprep.subr.bf16.mxu1 %v11414_v51 }
 0xb60   :  { %7624 = vmatmul.mubr.msk.f32.vlgmr.msra.gmra.mrb[32].mxu1 %vm1843_vm1, %v11407_v29 }
 0xb61   :  { %9553 = vmatpush3.bf16.msra.mxu1 %v11414_v51 }
 0xb62   :  { %9555 = vmatprep.subr.bf16.mxu1 %v11420_v52 }
 0xb65   :  { %9557 = vmatpush3.bf16.msra.mxu1 %v11420_v52 }
 0xb66   :  { %9559 = vmatprep.subr.bf16.mxu1 %v11435_v26 }
 0xb69   :  { %9561 = vmatpush3.bf16.msra.mxu1 %v11435_v26 }
 0xb6a   :  { %9563 = vmatprep.subr.bf16.mxu1 %v11445_v41 }
 0xb6d   :  { %9565 = vmatpush3.bf16.msra.mxu1 %v11445_v41 }
 0xb6e   :  { %9567 = vmatprep.subr.bf16.mxu1 %v11455_v59 }
 0xb71   :  { %9569 = vmatpush3.bf16.msra.mxu1 %v11455_v59 }
 0xb72   :  { %9571 = vmatprep.subr.bf16.mxu1 %v11465_v18 }
 0xb75   :  { %9573 = vmatpush3.bf16.msra.mxu1 %v11465_v18 }
 0xb76   :  { %9575 = vmatprep.subr.bf16.mxu1 %v11475_v36 }
 0xb79   :  { %9577 = vmatpush3.bf16.msra.mxu1 %v11475_v36 }
 0xb7a   :  { %9579 = vmatprep.subr.bf16.mxu1 %v11485_v53 }
 0xb7d   :  { %9581 = vmatpush3.bf16.msra.mxu1 %v11485_v53 }
 0xb7e   :  { %9583 = vmatprep.subr.bf16.mxu1 %v11496_v13 }
 0xc2b   :  { %v11724_v11 = vpop.f32.mrb[28].mxu1 }
 0xc2c   :  { %v7615_v2 = vpop.f32.mrb[29].mxu1 }
 0xc2d   :  { %v3288_v2 = vld [vmem:[%s13083_s4 + $0x538] sm:$0xff] }
 0xc2f   :  { %v7620_v62 = vpop.f32.mrb[30].mxu1 }
 0xc30   :  { %v2433_v32 = vpop.f32.mrb[31].mxu1 }
 0xc33   :  { %v7625_v39 = vpop.f32.mrb[32].mxu1 }
 0xc34   :  { %v2508_v58 = vpop.f32.mrb[33].mxu1 }
 0xc35   :  { %7658 = vmatprep.mubr.f32.mxu1 %v2508_v58 }
 0xc36   :  { %7659 = vmatmul.mubr.f32.vlgmr.msra.gmra.mrb[34].mxu1 %v7625_v39  ;;  %v3290_v39 = vld [vmem:[%s13083_s4 + $0x548] sm:$0xff] }
 0xc37   :  { %9585 = vmatpush3.bf16.msra.mxu1 %v11496_v13  ;;  %7693 = vmatprep.mubr.f32.mxu1 %v2433_v32  ;;  %v3289_v32 = vld [vmem:[%s13083_s4 + $0x540] sm:$0xff] }
 0xc38   :  { %9587 = vmatprep.subr.bf16.mxu1 %v11575_v27  ;;  %v11948_v58 = vpack.c.bf16 %v3290_v39, %v3289_v32  ;;  %v3458_v32 = vld [vmem:[%s13083_s4 + $0x5f0] sm:$0xff]  ;;  %v3459_v39 = vld [vmem:[%s13083_s4 + $0x5f8] sm:$0xff] }
 0xc3b   :  { %9589 = vmatpush3.bf16.msra.mxu1 %v11575_v27 }
 0xc3c   :  { %9591 = vmatprep.subr.bf16.mxu1 %v11585_v5 }
 0xc3f   :  { %9593 = vmatpush3.bf16.msra.mxu1 %v11585_v5 }
 0xc40   :  { %9595 = vmatprep.subr.bf16.mxu1 %v11595_v15 }
 0xc43   :  { %9597 = vmatpush3.bf16.msra.mxu1 %v11595_v15 }
 0xc44   :  { %9599 = vmatprep.subr.bf16.mxu1 %v11605_v47 }
 0xc47   :  { %9601 = vmatpush3.bf16.msra.mxu1 %v11605_v47 }
 0xc48   :  { %9603 = vmatprep.subr.bf16.mxu1 %v11615_v12 }
 0xc4b   :  { %9605 = vmatpush3.bf16.msra.mxu1 %v11615_v12 }
 0xc4c   :  { %9607 = vmatprep.subr.bf16.mxu1 %v11625_v42 }
 0xc4f   :  { %9609 = vmatpush3.bf16.msra.mxu1 %v11625_v42 }
 0xc50   :  { %9611 = vmatprep.subr.bf16.mxu1 %v11635_v9 }
 0xc53   :  { %9613 = vmatpush3.bf16.msra.mxu1 %v11635_v9 }
 0xc54   :  { %9714 = vmatprep.subr.bf16.mxu1 %v11508_v37 }
 0xc56   :  { %7694 = vmatmul.mubr.f32.vlgmr.msra.gmra.mrb[34].mxu1 %v7620_v62  ;;  %v11938_v62 = vpack.c.bf16 %v3288_v2, %v3287_v38  ;;  %v3457_v38 = vld [vmem:[%s13083_s4 + $0x5e8] sm:$0xff] }
 0xc57   :  { %9716 = vmatpush3.bf16.msra.mxu1 %v11508_v37 }
 0xc58   :  { %9718 = vmatprep.subr.bf16.mxu1 %v11513_v49 }
 0xc5b   :  { %9720 = vmatpush3.bf16.msra.mxu1 %v11513_v49 }
 0xc5c   :  { %9722 = vmatprep.subr.bf16.mxu1 %v11524_v63 }
 0xc5f   :  { %9724 = vmatpush3.bf16.msra.mxu1 %v11524_v63 }
 0xc60   :  { %9726 = vmatprep.subr.bf16.mxu1 %v11534_v14 }
 0xc63   :  { %9728 = vmatpush3.bf16.msra.mxu1 %v11534_v14 }
 0xc64   :  { %9730 = vmatprep.subr.bf16.mxu1 %v11544_v35 }
 0xc67   :  { %9732 = vmatpush3.bf16.msra.mxu1 %v11544_v35 }
 0xc68   :  { %9734 = vmatprep.subr.bf16.mxu1 %v11554_v50 }
 0xc6b   :  { %9736 = vmatpush3.bf16.msra.mxu1 %v11554_v50 }
 0xc6c   :  { %9738 = vmatprep.subr.bf16.mxu1 %v11564_v10 }
 0xc6f   :  { %9740 = vmatpush3.bf16.msra.mxu1 %v11564_v10 }
 0xc70   :  { %9742 = vmatprep.subr.bf16.mxu1 %v11660_v31 }
 0xc73   :  { %9744 = vmatpush3.bf16.msra.mxu1 %v11660_v31  ;;  %v3279_v31 = vld [vmem:[%s13083_s4 + $0x4f0] sm:$0xff] }
 0xc74   :  { %9745 = vmatprep.subr.bf16.mxu1 %v10454_v0  ;;  %v11895_v60 = vpack.c.bf16 %v3280_v57, %v3279_v31  ;;  %v3452_v57 = vld [vmem:[%s13083_s4 + $0x5c0] sm:$0xff] }
 0xc75   :  { %v12071_v7 = vpack.c.bf16 %v3453_v3, %v3452_v57 }
 0xd29   :  { %v7695_v37 = vpop.f32.mrb[34].mxu1 }
 0xd2a   :  { %v2668_v49 = vadd.f32 %v7695_v37, %v11671_v43  ;;  %v2658_v63 = vpop.f32.mrb[35].mxu1  ;;  %v3291_v37 = vld [vmem:[%s13083_s4 + $0x550] sm:$0xff] }
 0xd2b   :  { %v2667_v14 = vadd.f32 %v11671_v43, %v2658_v63 }
 0xd2c   :  { %v2670_v22 = vmax.f32 %v2668_v49, 0.0  ;;  %v3292_v49 = vld [vmem:[%s13083_s4 + $0x558] sm:$0xff] }
 0xd2d   :  { %v2669_v35 = vmax.f32 %v2667_v14, 0.0  ;;  %v11958_v63 = vpack.c.bf16 %v3292_v49, %v3291_v37  ;;  %v3293_v14 = vld [vmem:[%s13083_s4 + $0x560] sm:$0xff]  ;;  %v12110_v37 = vpack.c.bf16 %v3459_v39, %v3458_v32  ;;  %v3965_v32 = vld [vmem:[%s13083_s4 + $0x630] sm:$0xff]  ;;  %v3966_v39 = vld [vmem:[%s13083_s4 + $0x638] sm:$0xff] }
 0xd2f   :  { %7728 = vmatprep.mubr.f32.mxu0 %v2669_v35  ;;  %v3294_v35 = vld [vmem:[%s13083_s4 + $0x568] sm:$0xff] }
 0xd30   :  { %7729 = vmatmul.mubr.f32.vlgmr.msra.gmra.mrb[28].mxu0 %v2670_v22  ;;  %v11968_v22 = vpack.c.bf16 %v3294_v35, %v3293_v14 }
 0xd31   :  { %7735 = vmatprep.mubr.msk.f32.mxu0 %vm10455_vm0, %v10456_v8 }
 0xe03   :  { %v7730_v50 = vpop.f32.mrb[28].mxu0 }
 0xe04   :  { %v2743_v10 = vadd.f32 %v7730_v50, %v11680_v40  ;;  %v2737_v20 = vpop.f32.mrb[29].mxu0  ;;  %v3295_v50 = vld [vmem:[%s13083_s4 + $0x570] sm:$0xff] }
 0xe05   :  { %v2738_v28 = vadd.f32 %v11680_v40, %v2737_v20 }
 0xe07   :  { %v9647_v33 = vpack.c.bf16 %v2743_v10, %v2738_v28  ;;  %v3296_v10 = vld [vmem:[%s13083_s4 + $0x578] sm:$0xff] }
 0xe08   :  { %v11978_v20 = vpack.c.bf16 %v3296_v10, %v3295_v50  ;;  %v12119_v50 = vld [vmem:[%s13085_s5 + $0x6] ss:$0 sm:$0xff] }
 0xe09   :  { %9648 = vmatpush3.bf16.msra.mxu0 %v9647_v33 }
 0xe0a   :  { %7738 = vmatprep.subr.mxu0 %v11767_v1 }
 0xe0c   :  { %7736 = vmatmul.mubr.msk.f32.vlgmr.msra.gmra.mrb[30].mxu0 %vm2293_vm2, %v11691_v55 }
 0xe0d   :  { %7739 = vmatpush3.msra.mxu0 %v11767_v1  ;;  %7740 = vmatprep.mubr.msk.f32.mxu0 %vm1843_vm1, %v11385_v21 }
 0xe0e   :  { %7743 = vmatprep.subr.mxu0 %v11767_v1 }
 0xe10   :  { %7741 = vmatmul.mubr.msk.f32.vlgmr.msra.gmra.mrb[32].mxu0 %vm1843_vm1, %v11412_v34 }
 0xe11   :  { %7744 = vmatpush3.msra.mxu0 %v11767_v1  ;;  %7745 = vmatprep.mubr.msk.f32.mxu0 %vm1843_vm1, %v11378_v6 }
 0xe12   :  { %9650 = vmatprep.subr.bf16.mxu0 %v11414_v51 }
 0xe14   :  { %7746 = vmatmul.mubr.msk.f32.vlgmr.msra.gmra.mrb[34].mxu0 %vm1843_vm1, %v11407_v29 }
 0xe15   :  { %9652 = vmatpush3.bf16.msra.mxu0 %v11414_v51 }
 0xe16   :  { %9654 = vmatprep.subr.bf16.mxu0 %v11420_v52 }
 0xe19   :  { %9656 = vmatpush3.bf16.msra.mxu0 %v11420_v52 }
 0xe1a   :  { %9658 = vmatprep.subr.bf16.mxu0 %v11435_v26 }
 0xe1d   :  { %9660 = vmatpush3.bf16.msra.mxu0 %v11435_v26  ;;  %v3265_v26 = vld [vmem:[%s13083_s4 + $0x480] sm:$0xff] }
 0xe1e   :  { %9662 = vmatprep.subr.bf16.mxu0 %v11445_v41 }
 0xe21   :  { %9664 = vmatpush3.bf16.msra.mxu0 %v11445_v41  ;;  %v3266_v41 = vld [vmem:[%s13083_s4 + $0x488] sm:$0xff] }
 0xe22   :  { %9666 = vmatprep.subr.bf16.mxu0 %v11455_v59 }
 0xe25   :  { %9668 = vmatpush3.bf16.msra.mxu0 %v11455_v59  ;;  %v11823_v59 = vpack.c.bf16 %v3266_v41, %v3265_v26 }
 0xe26   :  { %9670 = vmatprep.subr.bf16.mxu0 %v11465_v18 }
 0xe29   :  { %9672 = vmatpush3.bf16.msra.mxu0 %v11465_v18  ;;  %v3267_v18 = vld [vmem:[%s13083_s4 + $0x490] sm:$0xff] }
 0xe2a   :  { %9674 = vmatprep.subr.bf16.mxu0 %v11475_v36 }
 0xe2d   :  { %9676 = vmatpush3.bf16.msra.mxu0 %v11475_v36  ;;  %v3268_v36 = vld [vmem:[%s13083_s4 + $0x498] sm:$0xff] }
 0xe2e   :  { %9678 = vmatprep.subr.bf16.mxu0 %v11485_v53 }
 0xe31   :  { %9680 = vmatpush3.bf16.msra.mxu0 %v11485_v53  ;;  %v11833_v53 = vpack.c.bf16 %v3268_v36, %v3267_v18 }
 0xe32   :  { %9682 = vmatprep.subr.bf16.mxu0 %v11496_v13 }
 0xedf   :  { %v11800_v6 = vpop.f32.mrb[30].mxu0 }
 0xee0   :  { %v7737_v21 = vpop.f32.mrb[31].mxu0 }
 0xee3   :  { %v7742_v29 = vpop.f32.mrb[32].mxu0 }
 0xee4   :  { %v2882_v34 = vpop.f32.mrb[33].mxu0 }
 0xee7   :  { %v7747_v51 = vpop.f32.mrb[34].mxu0 }
 0xee8   :  { %v2957_v52 = vpop.f32.mrb[35].mxu0 }
 0xee9   :  { %7780 = vmatprep.mubr.f32.mxu0 %v2957_v52 }
 0xeea   :  { %7781 = vmatmul.mubr.f32.vlgmr.msra.gmra.mrb[36].mxu0 %v7747_v51 }
 0xeeb   :  { %9684 = vmatpush3.bf16.msra.mxu0 %v11496_v13  ;;  %7815 = vmatprep.mubr.f32.mxu0 %v2882_v34  ;;  %v3269_v13 = vld [vmem:[%s13083_s4 + $0x4a0] sm:$0xff] }
 0xeec   :  { %9686 = vmatprep.subr.bf16.mxu0 %v11575_v27 }
 0xeef   :  { %9688 = vmatpush3.bf16.msra.mxu0 %v11575_v27  ;;  %v3270_v27 = vld [vmem:[%s13083_s4 + $0x4a8] sm:$0xff] }
 0xef0   :  { %9690 = vmatprep.subr.bf16.mxu0 %v11585_v5 }
 0xef3   :  { %9692 = vmatpush3.bf16.msra.mxu0 %v11585_v5  ;;  %v11845_v5 = vpack.c.bf16 %v3270_v27, %v3269_v13 }
 0xef4   :  { %9694 = vmatprep.subr.bf16.mxu0 %v11595_v15 }
 0xef7   :  { %9696 = vmatpush3.bf16.msra.mxu0 %v11595_v15  ;;  %v3271_v15 = vld [vmem:[%s13083_s4 + $0x4b0] sm:$0xff] }
 0xef8   :  { %9698 = vmatprep.subr.bf16.mxu0 %v11605_v47 }
 0xefb   :  { %9700 = vmatpush3.bf16.msra.mxu0 %v11605_v47  ;;  %v3272_v47 = vld [vmem:[%s13083_s4 + $0x4b8] sm:$0xff] }
 0xefc   :  { %9702 = vmatprep.subr.bf16.mxu0 %v11615_v12  ;;  %v11855_v4 = vpack.c.bf16 %v3272_v47, %v3271_v15  ;;  %v3446_v15 = vld [vmem:[%s13083_s4 + $0x590] sm:$0xff] }
 0xeff   :  { %9704 = vmatpush3.bf16.msra.mxu0 %v11615_v12  ;;  %v3273_v12 = vld [vmem:[%s13083_s4 + $0x4c0] sm:$0xff] }
 0xf00   :  { %9706 = vmatprep.subr.bf16.mxu0 %v11625_v42  ;;  %v11865_v30 = vpack.c.bf16 %v3274_v24, %v3273_v12  ;;  %v3448_v24 = vld [vmem:[%s13083_s4 + $0x5a0] sm:$0xff] }
 0xf03   :  { %9708 = vmatpush3.bf16.msra.mxu0 %v11625_v42  ;;  %v3275_v42 = vld [vmem:[%s13083_s4 + $0x4d0] sm:$0xff] }
 0xf04   :  { %9710 = vmatprep.subr.bf16.mxu0 %v11635_v9  ;;  %v11875_v54 = vpack.c.bf16 %v3276_v48, %v3275_v42  ;;  %v3449_v42 = vld [vmem:[%s13083_s4 + $0x5a8] sm:$0xff] }
 0xf05   :  { %v12047_v48 = vpack.c.bf16 %v3449_v42, %v3448_v24 }
 0xf07   :  { %9712 = vmatpush3.bf16.msra.mxu0 %v11635_v9  ;;  %v3277_v9 = vld [vmem:[%s13083_s4 + $0x4e0] sm:$0xff] }
 0xf08   :  { %9772 = vmatprep.subr.bf16.mxu0 %v10454_v0  ;;  %v11885_v25 = vpack.c.bf16 %v3278_v19, %v3277_v9  ;;  %v3450_v9 = vld [vmem:[%s13083_s4 + $0x5b0] sm:$0xff]  ;;  %v3451_v19 = vld [vmem:[%s13083_s4 + $0x5b8] sm:$0xff] }
 0xf09   :  { %v12059_v31 = vpack.c.bf16 %v3451_v19, %v3450_v9  ;;  %v3959_v19 = vld [vmem:[%s13083_s4 + $0x600] sm:$0xff] }
 0xf0a   :  { %7816 = vmatmul.mubr.f32.vlgmr.msra.gmra.mrb[36].mxu0 %v7742_v29 }
 0xf0b   :  { %9774 = vmatpush3.bf16.msra.mxu0 %v11823_v59  ;;  %7927 = vmatprep.mubr.msk.f32.mxu0 %vm10455_vm0, %v10456_v8 }
 0xf0c   :  { %9775 = vmatprep.subr.bf16.mxu0 %v10454_v0 }
 0xf0f   :  { %9777 = vmatpush3.bf16.msra.mxu0 %v11833_v53 }
 0xf10   :  { %9778 = vmatprep.subr.bf16.mxu0 %v10454_v0 }
 0xf13   :  { %9780 = vmatpush3.bf16.msra.mxu0 %v11845_v5 }
 0xf14   :  { %9781 = vmatprep.subr.bf16.mxu0 %v10454_v0 }
 0xf17   :  { %9783 = vmatpush3.bf16.msra.mxu0 %v11855_v4 }
 0xf18   :  { %9784 = vmatprep.subr.bf16.mxu0 %v10454_v0 }
 0xf1b   :  { %9786 = vmatpush3.bf16.msra.mxu0 %v11865_v30 }
 0xf1c   :  { %9787 = vmatprep.subr.bf16.mxu0 %v10454_v0 }
 0xf1f   :  { %9789 = vmatpush3.bf16.msra.mxu0 %v11875_v54 }
 0xf20   :  { %9790 = vmatprep.subr.bf16.mxu0 %v10454_v0 }
 0xf23   :  { %9792 = vmatpush3.bf16.msra.mxu0 %v11885_v25 }
 0xf24   :  { %9793 = vmatprep.subr.bf16.mxu0 %v10454_v0 }
 0xf27   :  { %9795 = vmatpush3.bf16.msra.mxu0 %v11895_v60 }
 0xf28   :  { %9820 = vmatprep.subr.bf16.mxu0 %v10454_v0 }
 0xf2a   :  { %7928 = vmatmul.mubr.f32.vlgmr.msra.gmra.mrb[38].mxu0 %v11396_v44  ;;  %v11928_v44 = vpack.c.bf16 %v3286_v16, %v3285_v61  ;;  %v12083_v61 = vpack.c.bf16 %v3455_v45, %v3454_v23  ;;  %v3456_v16 = vld [vmem:[%s13083_s4 + $0x5e0] sm:$0xff]  ;;  %v3961_v23 = vld [vmem:[%s13083_s4 + $0x610] sm:$0xff]  ;;  %v3962_v45 = vld [vmem:[%s13083_s4 + $0x618] sm:$0xff] }
 0xf2b   :  { %9822 = vmatpush3.bf16.msra.mxu0 %v11905_v17  ;;  %7997 = vmatprep.mubr.msk.f32.mxu0 %vm10455_vm0, %v10456_v8  ;;  %v12095_v2 = vpack.c.bf16 %v3457_v38, %v3456_v16  ;;  %v3963_v16 = vld [vmem:[%s13083_s4 + $0x620] sm:$0xff]  ;;  %v3964_v38 = vld [vmem:[%s13083_s4 + $0x628] sm:$0xff] }
 0xf2c   :  { %9823 = vmatprep.subr.bf16.mxu0 %v10454_v0 }
 0xf2f   :  { %9825 = vmatpush3.bf16.msra.mxu0 %v11916_v56 }
 0xf30   :  { %9826 = vmatprep.subr.bf16.mxu0 %v10454_v0 }
 0xf33   :  { %9828 = vmatpush3.bf16.msra.mxu0 %v11928_v44 }
 0xf34   :  { %9829 = vmatprep.subr.bf16.mxu0 %v10454_v0 }
 0xf37   :  { %9831 = vmatpush3.bf16.msra.mxu0 %v11938_v62 }
 0xf38   :  { %9832 = vmatprep.subr.bf16.mxu0 %v10454_v0 }
 0xf3b   :  { %9834 = vmatpush3.bf16.msra.mxu0 %v11948_v58 }
 0xf3c   :  { %9835 = vmatprep.subr.bf16.mxu0 %v10454_v0 }
 0xf3f   :  { %9837 = vmatpush3.bf16.msra.mxu0 %v11958_v63 }
 0xf40   :  { %9838 = vmatprep.subr.bf16.mxu0 %v10454_v0 }
 0xf43   :  { %9840 = vmatpush3.bf16.msra.mxu0 %v11968_v22 }
 0xf44   :  { %9841 = vmatprep.subr.bf16.mxu0 %v10454_v0 }
 0xf47   :  { %9843 = vmatpush3.bf16.msra.mxu0 %v11978_v20 }
 0xf48   :  { %9868 = vmatprep.subr.bf16.mxu0 %v10454_v0 }
 0xf4a   :  { %7998 = vmatmul.mubr.f32.vlgmr.msra.gmra.mrb[40].mxu0 %v11800_v6 }
 0xf4b   :  { %8067 = vmatprep.mubr.msk.f32.mxu0 %vm10455_vm0, %v10456_v8 }
 0xfdd   :  { %v7817_v28 = vpop.f32.mrb[36].mxu0 }
 0xfde   :  { %v3117_v33 = vadd.f32 %v7817_v28, %v11671_v43  ;;  %v3107_v21 = vpop.f32.mrb[37].mxu0 }
 0xfdf   :  { %v3116_v29 = vadd.f32 %v11671_v43, %v3107_v21 }
 0xfe0   :  { %v3119_v51 = vmax.f32 %v3117_v33, 0.0 }
 0xfe1   :  { %v3118_v34 = vmax.f32 %v3116_v29, 0.0  ;;  %v3981_v29 = vld [vmem:[%s13083_s4 + $0x6b0] sm:$0xff] }
 0xfe3   :  { %7850 = vmatprep.mubr.f32.mxu1 %v3118_v34  ;;  %v3982_v34 = vld [vmem:[%s13083_s4 + $0x6b8] sm:$0xff] }
 0xfe4   :  { %7851 = vmatmul.mubr.f32.vlgmr.msra.gmra.mrb[36].mxu1 %v3119_v51  ;;  %v12238_v51 = vpack.c.bf16 %v3982_v34, %v3981_v29  ;;  %v4145_v29 = vld [vmem:[%s13083_s4 + $0x738] sm:$0xff] }
 0xfe5   :  { %7857 = vmatprep.mubr.msk.f32.mxu1 %vm10455_vm0, %v10456_v8 }
 0xffd   :  { %v11990_v52 = vpop.f32.mrb[38].mxu0 }
 0xffe   :  { %v7929_v26 = vpop.f32.mrb[39].mxu0 }
 0xfff   :  { %v3984_v26 = vld [vmem:[%s13083_s4 + $0x6c8] sm:$0xff] }
0x101d   :  { %v11992_v6 = vpop.f32.mrb[40].mxu0 }
0x101e   :  { %v7999_v41 = vpop.f32.mrb[41].mxu0 }
0x101f   :  { %v3985_v41 = vld [vmem:[%s13083_s4 + $0x6d0] sm:$0xff] }
0x10b7   :  { %v7852_v18 = vpop.f32.mrb[36].mxu1 }
0x10b8   :  { %v3192_v36 = vadd.f32 %v7852_v18, %v11680_v40  ;;  %v3186_v13 = vpop.f32.mrb[37].mxu1  ;;  %v3986_v18 = vld [vmem:[%s13083_s4 + $0x6d8] sm:$0xff] }
0x10b9   :  { %v3187_v27 = vadd.f32 %v11680_v40, %v3186_v13  ;;  %v3444_v40 = vld [vmem:[%s13083_s4 + $0x580] sm:$0xff] }
0x10ba   :  { %v3987_v13 = vld [vmem:[%s13083_s4 + $0x6e0] sm:$0xff] }
0x10bb   :  { %v9746_v43 = vpack.c.bf16 %v3192_v36, %v3187_v27  ;;  %v12258_v36 = vpack.c.bf16 %v3986_v18, %v3985_v41  ;;  %v3988_v27 = vld [vmem:[%s13083_s4 + $0x6e8] sm:$0xff]  ;;  %v4148_v18 = vld [vmem:[%s13083_s4 + $0x750] sm:$0xff] }
0x10bd   :  { %9747 = vmatpush3.bf16.msra.mxu1 %v9746_v43  ;;  %v12268_v43 = vpack.c.bf16 %v3988_v27, %v3987_v13  ;;  %v4149_v13 = vld [vmem:[%s13083_s4 + $0x758] sm:$0xff] }
0x10be   :  { %9748 = vmatprep.subr.bf16.mxu1 %v10454_v0  ;;  %v12452_v27 = vpack.c.bf16 %v4149_v13, %v4148_v18  ;;  %v4471_v13 = vld [vmem:[%s13083_s4 + $0x870] sm:$0xff] }
0x10c0   :  { %7858 = vmatmul.mubr.msk.f32.vlgmr.msra.gmra.mrb[38].mxu1 %vm2293_vm2, %v11691_v55  ;;  %v3445_v55 = vld [vmem:[%s13083_s4 + $0x588] sm:$0xff] }
0x10c1   :  { %9750 = vmatpush3.bf16.msra.mxu1 %v11905_v17  ;;  %7892 = vmatprep.mubr.msk.f32.mxu1 %vm10455_vm0, %v10456_v8  ;;  %v12029_v47 = vpack.c.bf16 %v3445_v55, %v3444_v40  ;;  %v3989_v40 = vld [vmem:[%s13083_s4 + $0x6f0] sm:$0xff]  ;;  %v3990_v55 = vld [vmem:[%s13083_s4 + $0x6f8] sm:$0xff] }
0x10c2   :  { %9751 = vmatprep.subr.bf16.mxu1 %v10454_v0 }
0x10c3   :  { %9870 = vmatpush3.bf16.msra.mxu0 %v12029_v47 }
0x10c4   :  { %9871 = vmatprep.subr.bf16.mxu0 %v10454_v0 }
0x10c5   :  { %9753 = vmatpush3.bf16.msra.mxu1 %v11916_v56 }
0x10c6   :  { %9754 = vmatprep.subr.bf16.mxu1 %v10454_v0 }
0x10c9   :  { %9756 = vmatpush3.bf16.msra.mxu1 %v11928_v44 }
0x10ca   :  { %9757 = vmatprep.subr.bf16.mxu1 %v10454_v0 }
0x10cd   :  { %9759 = vmatpush3.bf16.msra.mxu1 %v11938_v62 }
0x10ce   :  { %9760 = vmatprep.subr.bf16.mxu1 %v10454_v0 }
0x10d1   :  { %9762 = vmatpush3.bf16.msra.mxu1 %v11948_v58 }
0x10d2   :  { %9763 = vmatprep.subr.bf16.mxu1 %v10454_v0 }
0x10d5   :  { %9765 = vmatpush3.bf16.msra.mxu1 %v11958_v63 }
0x10d6   :  { %9766 = vmatprep.subr.bf16.mxu1 %v10454_v0 }
0x10d9   :  { %9768 = vmatpush3.bf16.msra.mxu1 %v11968_v22 }
0x10da   :  { %9769 = vmatprep.subr.bf16.mxu1 %v10454_v0 }
0x10dd   :  { %9771 = vmatpush3.bf16.msra.mxu1 %v11978_v20 }
0x10de   :  { %9796 = vmatprep.subr.bf16.mxu1 %v10454_v0 }
0x10e0   :  { %7893 = vmatmul.mubr.f32.vlgmr.msra.gmra.mrb[40].mxu1 %v11724_v11  ;;  %v3447_v11 = vld [vmem:[%s13083_s4 + $0x598] sm:$0xff] }
0x10e1   :  { %7962 = vmatprep.mubr.msk.f32.mxu1 %vm10455_vm0, %v10456_v8  ;;  %9798 = vmatpush3.bf16.msra.mxu1 %v12029_v47  ;;  %v12035_v12 = vpack.c.bf16 %v3447_v11, %v3446_v15  ;;  %v12279_v15 = vpack.c.bf16 %v3990_v55, %v3989_v40  ;;  %v4150_v40 = vld [vmem:[%s13083_s4 + $0x760] sm:$0xff]  ;;  %v4151_v55 = vld [vmem:[%s13083_s4 + $0x768] sm:$0xff] }
0x10e2   :  { %9799 = vmatprep.subr.bf16.mxu1 %v10454_v0 }
0x10e3   :  { %9873 = vmatpush3.bf16.msra.mxu0 %v12035_v12 }
0x10e4   :  { %9874 = vmatprep.subr.bf16.mxu0 %v10454_v0 }
0x10e5   :  { %9801 = vmatpush3.bf16.msra.mxu1 %v12035_v12 }
0x10e6   :  { %9802 = vmatprep.subr.bf16.mxu1 %v10454_v0 }
0x10e7   :  { %9876 = vmatpush3.bf16.msra.mxu0 %v12047_v48 }
0x10e8   :  { %9877 = vmatprep.subr.bf16.mxu0 %v10454_v0 }
0x10e9   :  { %9804 = vmatpush3.bf16.msra.mxu1 %v12047_v48 }
0x10ea   :  { %9805 = vmatprep.subr.bf16.mxu1 %v10454_v0 }
0x10eb   :  { %9879 = vmatpush3.bf16.msra.mxu0 %v12059_v31 }
0x10ec   :  { %9880 = vmatprep.subr.bf16.mxu0 %v10454_v0 }
0x10ed   :  { %9807 = vmatpush3.bf16.msra.mxu1 %v12059_v31 }
0x10ee   :  { %9808 = vmatprep.subr.bf16.mxu1 %v10454_v0 }
0x10ef   :  { %9882 = vmatpush3.bf16.msra.mxu0 %v12071_v7 }
0x10f0   :  { %9883 = vmatprep.subr.bf16.mxu0 %v10454_v0 }
0x10f1   :  { %9810 = vmatpush3.bf16.msra.mxu1 %v12071_v7 }
0x10f2   :  { %9811 = vmatprep.subr.bf16.mxu1 %v10454_v0 }
0x10f3   :  { %9885 = vmatpush3.bf16.msra.mxu0 %v12083_v61 }
0x10f4   :  { %9886 = vmatprep.subr.bf16.mxu0 %v10454_v0 }
0x10f5   :  { %9813 = vmatpush3.bf16.msra.mxu1 %v12083_v61 }
0x10f6   :  { %9814 = vmatprep.subr.bf16.mxu1 %v10454_v0 }
0x10f7   :  { %9888 = vmatpush3.bf16.msra.mxu0 %v12095_v2 }
0x10f8   :  { %9889 = vmatprep.subr.bf16.mxu0 %v10454_v0 }
0x10f9   :  { %9816 = vmatpush3.bf16.msra.mxu1 %v12095_v2 }
0x10fa   :  { %9817 = vmatprep.subr.bf16.mxu1 %v10454_v0 }
0x10fb   :  { %9891 = vmatpush3.bf16.msra.mxu0 %v12110_v37 }
0x10fc   :  { %9916 = vmatprep.subr.bf16.mxu0 %v10454_v0 }
0x10fd   :  { %9819 = vmatpush3.bf16.msra.mxu1 %v12110_v37 }
0x10fe   :  { %9844 = vmatprep.subr.bf16.mxu1 %v10454_v0 }
0x1193   :  { %v3261_v49 = vpop.f32.mrb[38].mxu1 }
0x1194   :  { %v7859_v14 = vpop.f32.mrb[39].mxu1 }
0x1195   :  { %v3968_v14 = vld [vmem:[%s13083_s4 + $0x648] sm:$0xff] }
0x11b3   :  { %v3363_v35 = vpop.f32.mrb[40].mxu1 }
0x11b4   :  { %v3434_v10 = vadd.f32 %v11990_v52, %v3363_v35  ;;  %v7894_v28 = vpop.f32.mrb[41].mxu1  ;;  %v3983_v52 = vld [vmem:[%s13083_s4 + $0x6c0] sm:$0xff] }
0x11b6   :  { %v3442_v33 = vadd.f32 %v12119_v50, %v3434_v10  ;;  %v3970_v10 = vld [vmem:[%s13083_s4 + $0x658] sm:$0xff] }
0x11b8   :  { %v3443_v21 = vmax.f32 %v3442_v33, 0.0  ;;  %v3971_v33 = vld [vmem:[%s13083_s4 + $0x660] sm:$0xff] }
0x11ba   :  { %7963 = vmatmul.mubr.f32.vlgmr.msra.gmra.mrb[42].mxu1 %v3443_v21  ;;  %v3972_v21 = vld [vmem:[%s13083_s4 + $0x668] sm:$0xff] }
0x11bb   :  { %9846 = vmatpush3.bf16.msra.mxu1 %v11823_v59  ;;  %8032 = vmatprep.mubr.msk.f32.mxu1 %vm10455_vm0, %v10456_v8 }
0x11bc   :  { %9847 = vmatprep.subr.bf16.mxu1 %v10454_v0 }
0x11bf   :  { %9849 = vmatpush3.bf16.msra.mxu1 %v11833_v53 }
0x11c0   :  { %9850 = vmatprep.subr.bf16.mxu1 %v10454_v0 }
0x11c3   :  { %9852 = vmatpush3.bf16.msra.mxu1 %v11845_v5 }
0x11c4   :  { %9853 = vmatprep.subr.bf16.mxu1 %v10454_v0 }
0x11c7   :  { %9855 = vmatpush3.bf16.msra.mxu1 %v11855_v4 }
0x11c8   :  { %9856 = vmatprep.subr.bf16.mxu1 %v10454_v0 }
0x11cb   :  { %9858 = vmatpush3.bf16.msra.mxu1 %v11865_v30 }
0x11cc   :  { %9859 = vmatprep.subr.bf16.mxu1 %v10454_v0 }
0x11cf   :  { %9861 = vmatpush3.bf16.msra.mxu1 %v11875_v54 }
0x11d0   :  { %9862 = vmatprep.subr.bf16.mxu1 %v10454_v0 }
0x11d3   :  { %9864 = vmatpush3.bf16.msra.mxu1 %v11885_v25 }
0x11d4   :  { %9865 = vmatprep.subr.bf16.mxu1 %v10454_v0 }
0x11d7   :  { %9867 = vmatpush3.bf16.msra.mxu1 %v11895_v60 }
0x11d8   :  { %9892 = vmatprep.subr.bf16.mxu1 %v10454_v0 }
0x11da   :  { %8033 = vmatmul.mubr.f32.vlgmr.msra.gmra.mrb[44].mxu1 %v11686_v46 }
0x11db   :  { %9894 = vmatpush3.bf16.msra.mxu1 %v11905_v17  ;;  %8102 = vmatprep.mubr.msk.f32.mxu1 %vm10455_vm0, %v10456_v8 }
0x11dc   :  { %9895 = vmatprep.subr.bf16.mxu1 %v10454_v0 }
0x11df   :  { %9897 = vmatpush3.bf16.msra.mxu1 %v11916_v56 }
0x11e0   :  { %9898 = vmatprep.subr.bf16.mxu1 %v10454_v0 }
0x11e3   :  { %9900 = vmatpush3.bf16.msra.mxu1 %v11928_v44 }
0x11e4   :  { %9901 = vmatprep.subr.bf16.mxu1 %v10454_v0 }
0x11e7   :  { %9903 = vmatpush3.bf16.msra.mxu1 %v11938_v62 }
0x11e8   :  { %9904 = vmatprep.subr.bf16.mxu1 %v10454_v0 }
0x11eb   :  { %9906 = vmatpush3.bf16.msra.mxu1 %v11948_v58 }
0x11ec   :  { %9907 = vmatprep.subr.bf16.mxu1 %v10454_v0 }
0x11ef   :  { %9909 = vmatpush3.bf16.msra.mxu1 %v11958_v63 }
0x11f0   :  { %9910 = vmatprep.subr.bf16.mxu1 %v10454_v0 }
0x11f3   :  { %9912 = vmatpush3.bf16.msra.mxu1 %v11968_v22 }
0x11f4   :  { %9913 = vmatprep.subr.bf16.mxu1 %v10454_v0 }
0x11f7   :  { %9915 = vmatpush3.bf16.msra.mxu1 %v11978_v20  ;;  %v3980_v20 = vld [vmem:[%s13083_s4 + $0x6a8] sm:$0xff] }
0x11f8   :  { %9940 = vmatprep.subr.bf16.mxu1 %v10454_v0 }
0x11fa   :  { %8103 = vmatmul.mubr.f32.vlgmr.msra.gmra.mrb[46].mxu1 %v3261_v49  ;;  %v3967_v49 = vld [vmem:[%s13083_s4 + $0x640] sm:$0xff] }
0x11fb   :  { %9942 = vmatpush3.bf16.msra.mxu1 %v12029_v47  ;;  %8172 = vmatprep.mubr.msk.f32.mxu1 %vm10455_vm0, %v10456_v8  ;;  %v12286_v47 = vld [vmem:[%s13085_s5 + $0x7] ss:$0 sm:$0xff]  ;;  %v12342_v35 = vpack.c.bf16 %v3968_v14, %v3967_v49  ;;  %v4458_v49 = vld [vmem:[%s13083_s4 + $0x808] sm:$0xff]  ;;  %v4459_v14 = vld [vmem:[%s13083_s4 + $0x810] sm:$0xff] }
0x11fc   :  { %9943 = vmatprep.subr.bf16.mxu1 %v10454_v0 }
0x11ff   :  { %9945 = vmatpush3.bf16.msra.mxu1 %v12035_v12 }
0x1200   :  { %9946 = vmatprep.subr.bf16.mxu1 %v10454_v0 }
0x1203   :  { %9948 = vmatpush3.bf16.msra.mxu1 %v12047_v48 }
0x1204   :  { %9949 = vmatprep.subr.bf16.mxu1 %v10454_v0 }
0x1207   :  { %9951 = vmatpush3.bf16.msra.mxu1 %v12059_v31  ;;  %v3960_v31 = vld [vmem:[%s13083_s4 + $0x608] sm:$0xff] }
0x1208   :  { %9952 = vmatprep.subr.bf16.mxu1 %v10454_v0  ;;  %v12301_v3 = vpack.c.bf16 %v3960_v31, %v3959_v19 }
0x120b   :  { %9954 = vmatpush3.bf16.msra.mxu1 %v12071_v7 }
0x120c   :  { %9955 = vmatprep.subr.bf16.mxu1 %v10454_v0 }
0x120f   :  { %9957 = vmatpush3.bf16.msra.mxu1 %v12083_v61  ;;  %v12310_v61 = vpack.c.bf16 %v3962_v45, %v3961_v23  ;;  %v12500_v23 = vld [vmem:[%s13085_s5 + $0x8] ss:$0 sm:$0xff] }
0x1210   :  { %9958 = vmatprep.subr.bf16.mxu1 %v10454_v0 }
0x1213   :  { %9960 = vmatpush3.bf16.msra.mxu1 %v12095_v2  ;;  %v12322_v2 = vpack.c.bf16 %v3964_v38, %v3963_v16 }
0x1214   :  { %9961 = vmatprep.subr.bf16.mxu1 %v10454_v0 }
0x1217   :  { %9963 = vmatpush3.bf16.msra.mxu1 %v12110_v37  ;;  %v12332_v37 = vpack.c.bf16 %v3966_v39, %v3965_v32  ;;  %v4457_v39 = vld [vmem:[%s13083_s4 + $0x800] sm:$0xff] }
0x1218   :  { %9988 = vmatprep.subr.bf16.mxu1 %v10454_v0 }
0x128d   :  { %v12178_v46 = vpop.f32.mrb[42].mxu1 }
0x128e   :  { %v7964_v17 = vpop.f32.mrb[43].mxu1 }
0x128f   :  { %v12362_v17 = vpack.c.bf16 %v3972_v21, %v3971_v33  ;;  %v4461_v21 = vld [vmem:[%s13083_s4 + $0x820] sm:$0xff] }
0x12ad   :  { %v3671_v56 = vpop.f32.mrb[44].mxu1 }
0x12ae   :  { %v3672_v44 = vadd.f32 %v3671_v56, %v11992_v6  ;;  %v8034_v62 = vpop.f32.mrb[45].mxu1  ;;  %v12248_v6 = vpack.c.bf16 %v3984_v26, %v3983_v52  ;;  %v3973_v56 = vld [vmem:[%s13083_s4 + $0x670] sm:$0xff]  ;;  %v4146_v52 = vld [vmem:[%s13083_s4 + $0x740] sm:$0xff]  ;;  %v4147_v26 = vld [vmem:[%s13083_s4 + $0x748] sm:$0xff] }
0x12af   :  { %v12442_v41 = vpack.c.bf16 %v4147_v26, %v4146_v52  ;;  %v4469_v52 = vld [vmem:[%s13083_s4 + $0x860] sm:$0xff]  ;;  %v4470_v26 = vld [vmem:[%s13083_s4 + $0x868] sm:$0xff] }
0x12b0   :  { %v3675_v58 = vadd.f32 %v12119_v50, %v3672_v44  ;;  %v3974_v44 = vld [vmem:[%s13083_s4 + $0x678] sm:$0xff]  ;;  %v12591_v18 = vpack.c.bf16 %v4470_v26, %v4469_v52  ;;  %v4449_v52 = vld [vmem:[%s13083_s4 + $0x7c0] sm:$0xff]  ;;  %v4450_v26 = vld [vmem:[%s13083_s4 + $0x7c8] sm:$0xff] }
0x12b1   :  { %v12372_v62 = vpack.c.bf16 %v3974_v44, %v3973_v56  ;;  %v4462_v56 = vld [vmem:[%s13083_s4 + $0x828] sm:$0xff] }
0x12b2   :  { %v3676_v63 = vmax.f32 %v3675_v58, 0.0  ;;  %v3532_v58 = vadd.f32 %v12286_v47, %v12178_v46  ;;  %v4138_v46 = vld [vmem:[%s13083_s4 + $0x700] sm:$0xff]  ;;  %v12551_v44 = vpack.c.bf16 %v4462_v56, %v4461_v21  ;;  %v4444_v21 = vld [vmem:[%s13083_s4 + $0x798] sm:$0xff] }
0x12b4   :  { %8068 = vmatmul.mubr.f32.vlgmr.msra.gmra.mrb[42].mxu0 %v3676_v63  ;;  %v4139_v63 = vld [vmem:[%s13083_s4 + $0x708] sm:$0xff] }
0x12b5   :  { %9918 = vmatpush3.bf16.msra.mxu0 %v11823_v59  ;;  %8137 = vmatprep.mubr.msk.f32.mxu0 %vm10455_vm0, %v10456_v8 }
0x12b6   :  { %9919 = vmatprep.subr.bf16.mxu0 %v10454_v0 }
0x12b9   :  { %9921 = vmatpush3.bf16.msra.mxu0 %v11833_v53 }
0x12ba   :  { %9922 = vmatprep.subr.bf16.mxu0 %v10454_v0 }
0x12bd   :  { %9924 = vmatpush3.bf16.msra.mxu0 %v11845_v5  ;;  %v3975_v5 = vld [vmem:[%s13083_s4 + $0x680] sm:$0xff] }
0x12be   :  { %9925 = vmatprep.subr.bf16.mxu0 %v10454_v0 }
0x12c1   :  { %9927 = vmatpush3.bf16.msra.mxu0 %v11855_v4  ;;  %v3976_v4 = vld [vmem:[%s13083_s4 + $0x688] sm:$0xff] }
0x12c2   :  { %9928 = vmatprep.subr.bf16.mxu0 %v10454_v0 }
0x12c5   :  { %9930 = vmatpush3.bf16.msra.mxu0 %v11865_v30  ;;  %v12205_v30 = vpack.c.bf16 %v3976_v4, %v3975_v5  ;;  %v4141_v5 = vld [vmem:[%s13083_s4 + $0x718] sm:$0xff] }
0x12c6   :  { %9931 = vmatprep.subr.bf16.mxu0 %v10454_v0 }
0x12c9   :  { %9933 = vmatpush3.bf16.msra.mxu0 %v11875_v54  ;;  %v3977_v54 = vld [vmem:[%s13083_s4 + $0x690] sm:$0xff] }
0x12ca   :  { %9934 = vmatprep.subr.bf16.mxu0 %v10454_v0 }
0x12cd   :  { %9936 = vmatpush3.bf16.msra.mxu0 %v11885_v25  ;;  %v3813_v59 = vpop.f32.mrb[46].mxu1  ;;  %v3978_v25 = vld [vmem:[%s13083_s4 + $0x698] sm:$0xff] }
0x12ce   :  { %v8104_v53 = vpop.f32.mrb[47].mxu1  ;;  %9937 = vmatprep.subr.bf16.mxu0 %v10454_v0  ;;  %v12216_v22 = vpack.c.bf16 %v3978_v25, %v3977_v54  ;;  %v4142_v54 = vld [vmem:[%s13083_s4 + $0x720] sm:$0xff]  ;;  %v4143_v25 = vld [vmem:[%s13083_s4 + $0x728] sm:$0xff] }
0x12cf   :  { %v12406_v53 = vpack.c.bf16 %v4139_v63, %v4138_v46  ;;  %v4464_v46 = vld [vmem:[%s13083_s4 + $0x838] sm:$0xff] }
0x12d1   :  { %9939 = vmatpush3.bf16.msra.mxu0 %v11895_v60  ;;  %v3979_v60 = vld [vmem:[%s13083_s4 + $0x6a0] sm:$0xff] }
0x12d2   :  { %9964 = vmatprep.subr.bf16.mxu0 %v10454_v0 }
0x12d4   :  { %8138 = vmatmul.mubr.f32.vlgmr.msra.gmra.mrb[44].mxu0 %v11767_v1  ;;  %v12228_v1 = vpack.c.bf16 %v3980_v20, %v3979_v60  ;;  %v12422_v60 = vpack.c.bf16 %v4143_v25, %v4142_v54  ;;  %v4144_v20 = vld [vmem:[%s13083_s4 + $0x730] sm:$0xff] }
0x12d5   :  { %9966 = vmatpush3.bf16.msra.mxu0 %v12205_v30  ;;  %8207 = vmatprep.mubr.msk.f32.mxu0 %vm10455_vm0, %v10456_v8  ;;  %v12432_v34 = vpack.c.bf16 %v4145_v29, %v4144_v20  ;;  %v4467_v25 = vld [vmem:[%s13083_s4 + $0x850] sm:$0xff]  ;;  %v4468_v20 = vld [vmem:[%s13083_s4 + $0x858] sm:$0xff] }
0x12d6   :  { %9967 = vmatprep.subr.bf16.mxu0 %v10454_v0  ;;  %v12581_v29 = vpack.c.bf16 %v4468_v20, %v4467_v25  ;;  %v4448_v25 = vld [vmem:[%s13083_s4 + $0x7b8] sm:$0xff] }
0x12d9   :  { %9969 = vmatpush3.bf16.msra.mxu0 %v12216_v22 }
0x12da   :  { %9970 = vmatprep.subr.bf16.mxu0 %v10454_v0 }
0x12dd   :  { %9972 = vmatpush3.bf16.msra.mxu0 %v12228_v1 }
0x12de   :  { %9973 = vmatprep.subr.bf16.mxu0 %v10454_v0 }
0x12e1   :  { %9975 = vmatpush3.bf16.msra.mxu0 %v12238_v51 }
0x12e2   :  { %9976 = vmatprep.subr.bf16.mxu0 %v10454_v0 }
0x12e5   :  { %9978 = vmatpush3.bf16.msra.mxu0 %v12248_v6 }
0x12e6   :  { %9979 = vmatprep.subr.bf16.mxu0 %v10454_v0 }
0x12e9   :  { %9981 = vmatpush3.bf16.msra.mxu0 %v12258_v36 }
0x12ea   :  { %9982 = vmatprep.subr.bf16.mxu0 %v10454_v0 }
0x12ed   :  { %9984 = vmatpush3.bf16.msra.mxu0 %v12268_v43 }
0x12ee   :  { %9985 = vmatprep.subr.bf16.mxu0 %v10454_v0 }
0x12f1   :  { %9987 = vmatpush3.bf16.msra.mxu0 %v12279_v15 }
0x12f2   :  { %10012 = vmatprep.subr.bf16.mxu0 %v10454_v0 }
0x1387   :  { %v3743_v11 = vpop.f32.mrb[42].mxu0 }
0x1388   :  { %v12289_v12 = vadd.f32 %v12286_v47, %v3743_v11  ;;  %v8069_v24 = vpop.f32.mrb[43].mxu0  ;;  %v12462_v11 = vpack.c.bf16 %v4151_v55, %v4150_v40  ;;  %v4472_v40 = vld [vmem:[%s13083_s4 + $0x878] sm:$0xff] }
0x1389   :  { %v4152_v24 = vld [vmem:[%s13083_s4 + $0x770] sm:$0xff]  ;;  %v12602_v55 = vpack.c.bf16 %v4472_v40, %v4471_v13  ;;  %v12662_v13 = vpack.c.bf16 %v4450_v26, %v4449_v52  ;;  %v4628_v26 = vld [vmem:[%s13083_s4 + $0x8c0] sm:$0xff] }
0x138a   :  { %8208 = vmatmul.mubr.f32.vlgmr.msra.gmra.mrb[46].mxu0 %v12289_v12  ;;  %v4451_v40 = vld [vmem:[%s13083_s4 + $0x7d0] sm:$0xff] }
0x138b   :  { %8277 = vmatprep.mubr.msk.f32.mxu0 %vm10455_vm0, %v10456_v8  ;;  %10014 = vmatpush3.bf16.msra.mxu0 %v12406_v53 }
0x138c   :  { %10015 = vmatprep.subr.bf16.mxu0 %v10454_v0 }
0x13a7   :  { %v3883_v42 = vpop.f32.mrb[44].mxu0 }
0x13a8   :  { %v3884_v48 = vadd.f32 %v3883_v42, %v3813_v59  ;;  %v8139_v9 = vpop.f32.mrb[45].mxu0  ;;  %v4140_v59 = vld [vmem:[%s13083_s4 + $0x710] sm:$0xff]  ;;  %v4153_v42 = vld [vmem:[%s13083_s4 + $0x778] sm:$0xff] }
0x13a9   :  { %v12412_v4 = vpack.c.bf16 %v4141_v5, %v4140_v59  ;;  %v4465_v59 = vld [vmem:[%s13083_s4 + $0x840] sm:$0xff]  ;;  %v4466_v5 = vld [vmem:[%s13083_s4 + $0x848] sm:$0xff] }
0x13aa   :  { %v3887_v57 = vadd.f32 %v12119_v50, %v3884_v48  ;;  %v3969_v50 = vld [vmem:[%s13083_s4 + $0x650] sm:$0xff]  ;;  %v12473_v48 = vpack.c.bf16 %v4153_v42, %v4152_v24  ;;  %v12571_v54 = vpack.c.bf16 %v4466_v5, %v4465_v59 }
0x13ab   :  { %v12352_v28 = vpack.c.bf16 %v3970_v10, %v3969_v50  ;;  %10017 = vmatpush3.bf16.msra.mxu0 %v12412_v4  ;;  %v12535_v50 = vpack.c.bf16 %v4458_v49, %v4457_v39  ;;  %v4460_v10 = vld [vmem:[%s13083_s4 + $0x818] sm:$0xff]  ;;  %v4447_v5 = vld [vmem:[%s13083_s4 + $0x7b0] sm:$0xff] }
0x13ac   :  { %v3888_v7 = vmax.f32 %v3887_v57, 0.0  ;;  %10018 = vmatprep.subr.bf16.mxu0 %v10454_v0  ;;  %v12541_v33 = vpack.c.bf16 %v4460_v10, %v4459_v14  ;;  %v4443_v10 = vld [vmem:[%s13083_s4 + $0x790] sm:$0xff]  ;;  %v12652_v20 = vpack.c.bf16 %v4448_v25, %v4447_v5  ;;  %v4627_v25 = vld [vmem:[%s13083_s4 + $0x8b8] sm:$0xff] }
0x13ad   :  { %v12630_v56 = vpack.c.bf16 %v4444_v21, %v4443_v10  ;;  %v4624_v21 = vld [vmem:[%s13083_s4 + $0x8a0] sm:$0xff]  ;;  %v4626_v5 = vld [vmem:[%s13083_s4 + $0x8b0] sm:$0xff] }
0x13ae   :  { %8173 = vmatmul.mubr.f32.vlgmr.msra.gmra.mrb[48].mxu1 %v3888_v7  ;;  %v12751_v52 = vpack.c.bf16 %v4627_v25, %v4626_v5 }
0x13af   :  { %9990 = vmatpush3.bf16.msra.mxu1 %v12301_v3  ;;  %8242 = vmatprep.mubr.msk.f32.mxu1 %vm10455_vm0, %v10456_v8 }
0x13b0   :  { %9991 = vmatprep.subr.bf16.mxu1 %v10454_v0  ;;  %10020 = vmatpush3.bf16.msra.mxu0 %v12422_v60 }
0x13b1   :  { %10021 = vmatprep.subr.bf16.mxu0 %v10454_v0 }
0x13b3   :  { %9993 = vmatpush3.bf16.msra.mxu1 %v12310_v61 }
0x13b4   :  { %9994 = vmatprep.subr.bf16.mxu1 %v10454_v0  ;;  %10023 = vmatpush3.bf16.msra.mxu0 %v12432_v34 }
0x13b5   :  { %10024 = vmatprep.subr.bf16.mxu0 %v10454_v0 }
0x13b7   :  { %9996 = vmatpush3.bf16.msra.mxu1 %v12322_v2 }
0x13b8   :  { %9997 = vmatprep.subr.bf16.mxu1 %v10454_v0  ;;  %10026 = vmatpush3.bf16.msra.mxu0 %v12442_v41 }
0x13b9   :  { %10027 = vmatprep.subr.bf16.mxu0 %v10454_v0 }
0x13bb   :  { %9999 = vmatpush3.bf16.msra.mxu1 %v12332_v37 }
0x13bc   :  { %10000 = vmatprep.subr.bf16.mxu1 %v10454_v0  ;;  %10029 = vmatpush3.bf16.msra.mxu0 %v12452_v27 }
0x13bd   :  { %10030 = vmatprep.subr.bf16.mxu0 %v10454_v0 }
0x13bf   :  { %10002 = vmatpush3.bf16.msra.mxu1 %v12342_v35 }
0x13c0   :  { %10003 = vmatprep.subr.bf16.mxu1 %v10454_v0  ;;  %10032 = vmatpush3.bf16.msra.mxu0 %v12462_v11 }
0x13c1   :  { %10033 = vmatprep.subr.bf16.mxu0 %v10454_v0 }
0x13c3   :  { %10005 = vmatpush3.bf16.msra.mxu1 %v12352_v28 }
0x13c4   :  { %10006 = vmatprep.subr.bf16.mxu1 %v10454_v0  ;;  %10035 = vmatpush3.bf16.msra.mxu0 %v12473_v48 }
0x13c5   :  { %10060 = vmatprep.subr.bf16.mxu0 %v10454_v0 }
0x13c7   :  { %10008 = vmatpush3.bf16.msra.mxu1 %v12362_v17 }
0x13c8   :  { %10009 = vmatprep.subr.bf16.mxu1 %v10454_v0 }
0x13cb   :  { %10011 = vmatpush3.bf16.msra.mxu1 %v12372_v62 }
0x13cc   :  { %10036 = vmatprep.subr.bf16.mxu1 %v10454_v0 }
0x13ce   :  { %8243 = vmatmul.mubr.f32.vlgmr.msra.gmra.mrb[50].mxu1 %v3532_v58  ;;  %v4463_v58 = vld [vmem:[%s13083_s4 + $0x830] sm:$0xff] }
0x13cf   :  { %10038 = vmatpush3.bf16.msra.mxu1 %v12205_v30  ;;  %8312 = vmatprep.mubr.msk.f32.mxu1 %vm10455_vm0, %v10456_v8  ;;  %v12561_v63 = vpack.c.bf16 %v4464_v46, %v4463_v58  ;;  %v4445_v58 = vld [vmem:[%s13083_s4 + $0x7a0] sm:$0xff]  ;;  %v4446_v46 = vld [vmem:[%s13083_s4 + $0x7a8] sm:$0xff] }
0x13d0   :  { %10039 = vmatprep.subr.bf16.mxu1 %v10454_v0  ;;  %v12642_v59 = vpack.c.bf16 %v4446_v46, %v4445_v58  ;;  %v4625_v58 = vld [vmem:[%s13083_s4 + $0x8a8] sm:$0xff] }
0x13d1   :  { %v12741_v46 = vpack.c.bf16 %v4625_v58, %v4624_v21 }
0x13d3   :  { %10041 = vmatpush3.bf16.msra.mxu1 %v12216_v22 }
0x13d4   :  { %10042 = vmatprep.subr.bf16.mxu1 %v10454_v0 }
0x13d7   :  { %10044 = vmatpush3.bf16.msra.mxu1 %v12228_v1 }
0x13d8   :  { %10045 = vmatprep.subr.bf16.mxu1 %v10454_v0 }
0x13db   :  { %10047 = vmatpush3.bf16.msra.mxu1 %v12238_v51 }
0x13dc   :  { %10048 = vmatprep.subr.bf16.mxu1 %v10454_v0 }
0x13df   :  { %10050 = vmatpush3.bf16.msra.mxu1 %v12248_v6 }
0x13e0   :  { %10051 = vmatprep.subr.bf16.mxu1 %v10454_v0 }
0x13e3   :  { %10053 = vmatpush3.bf16.msra.mxu1 %v12258_v36 }
0x13e4   :  { %10054 = vmatprep.subr.bf16.mxu1 %v10454_v0 }
0x13e7   :  { %10056 = vmatpush3.bf16.msra.mxu1 %v12268_v43 }
0x13e8   :  { %10057 = vmatprep.subr.bf16.mxu1 %v10454_v0 }
0x13eb   :  { %10059 = vmatpush3.bf16.msra.mxu1 %v12279_v15 }
0x13ec   :  { %10084 = vmatprep.subr.bf16.mxu1 %v10454_v0 }
0x145d   :  { %v4057_v9 = vpop.f32.mrb[46].mxu0 }
0x145e   :  { %v8209_v19 = vpop.f32.mrb[47].mxu0 }
0x1481   :  { %v3955_v31 = vpop.f32.mrb[48].mxu1 }
0x1482   :  { %v12478_v57 = vadd.f32 %v12286_v47, %v3955_v31  ;;  %v8174_v7 = vpop.f32.mrb[49].mxu1 }
0x1484   :  { %8313 = vmatmul.mubr.f32.vlgmr.msra.gmra.mrb[52].mxu1 %v12478_v57 }
0x1485   :  { %10086 = vmatpush3.bf16.msra.mxu1 %v12406_v53  ;;  %8382 = vmatprep.mubr.msk.f32.mxu1 %vm10455_vm0, %v10456_v8 }
0x1486   :  { %10087 = vmatprep.subr.bf16.mxu1 %v10454_v0 }
0x1489   :  { %10089 = vmatpush3.bf16.msra.mxu1 %v12412_v4 }
0x148a   :  { %10090 = vmatprep.subr.bf16.mxu1 %v10454_v0 }
0x148d   :  { %10092 = vmatpush3.bf16.msra.mxu1 %v12422_v60 }
0x148e   :  { %10093 = vmatprep.subr.bf16.mxu1 %v10454_v0 }
0x1491   :  { %10095 = vmatpush3.bf16.msra.mxu1 %v12432_v34 }
0x1492   :  { %10096 = vmatprep.subr.bf16.mxu1 %v10454_v0 }
0x1495   :  { %10098 = vmatpush3.bf16.msra.mxu1 %v12442_v41 }
0x1496   :  { %10099 = vmatprep.subr.bf16.mxu1 %v10454_v0 }
0x1499   :  { %10101 = vmatpush3.bf16.msra.mxu1 %v12452_v27 }
0x149a   :  { %10102 = vmatprep.subr.bf16.mxu1 %v10454_v0 }
0x149d   :  { %10104 = vmatpush3.bf16.msra.mxu1 %v12462_v11 }
0x149e   :  { %10105 = vmatprep.subr.bf16.mxu1 %v10454_v0 }
0x14a1   :  { %v4127_v47 = vpop.f32.mrb[50].mxu1  ;;  %10107 = vmatpush3.bf16.msra.mxu1 %v12473_v48 }
0x14a2   :  { %v4128_v45 = vadd.f32 %v4127_v47, %v4057_v9  ;;  %v8244_v16 = vpop.f32.mrb[51].mxu1  ;;  %10132 = vmatprep.subr.bf16.mxu1 %v10454_v0  ;;  %v12609_v9 = vld [vmem:[%s13085_s5 + $0x9] ss:$0 sm:$0xff] }
0x14a4   :  { %v4136_v38 = vadd.f32 %v12500_v23, %v4128_v45 }
0x14a6   :  { %v4137_v32 = vmax.f32 %v4136_v38, 0.0  ;;  %v4441_v38 = vld [vmem:[%s13083_s4 + $0x780] sm:$0xff] }
0x14a8   :  { %8278 = vmatmul.mubr.f32.vlgmr.msra.gmra.mrb[48].mxu0 %v4137_v32  ;;  %v4442_v32 = vld [vmem:[%s13083_s4 + $0x788] sm:$0xff] }
0x14a9   :  { %10062 = vmatpush3.bf16.msra.mxu0 %v12301_v3  ;;  %8347 = vmatprep.mubr.msk.f32.mxu0 %vm10455_vm0, %v10456_v8  ;;  %v12621_v49 = vpack.c.bf16 %v4442_v32, %v4441_v38  ;;  %v4621_v38 = vld [vmem:[%s13083_s4 + $0x888] sm:$0xff]  ;;  %v4622_v32 = vld [vmem:[%s13083_s4 + $0x890] sm:$0xff] }
0x14aa   :  { %10063 = vmatprep.subr.bf16.mxu0 %v10454_v0 }
0x14ad   :  { %10065 = vmatpush3.bf16.msra.mxu0 %v12310_v61 }
0x14ae   :  { %10066 = vmatprep.subr.bf16.mxu0 %v10454_v0 }
0x14b1   :  { %10068 = vmatpush3.bf16.msra.mxu0 %v12322_v2 }
0x14b2   :  { %10069 = vmatprep.subr.bf16.mxu0 %v10454_v0 }
0x14b5   :  { %10071 = vmatpush3.bf16.msra.mxu0 %v12332_v37 }
0x14b6   :  { %10072 = vmatprep.subr.bf16.mxu0 %v10454_v0 }
0x14b9   :  { %10074 = vmatpush3.bf16.msra.mxu0 %v12342_v35 }
0x14ba   :  { %10075 = vmatprep.subr.bf16.mxu0 %v10454_v0 }
0x14bd   :  { %10077 = vmatpush3.bf16.msra.mxu0 %v12352_v28 }
0x14be   :  { %10078 = vmatprep.subr.bf16.mxu0 %v10454_v0 }
0x14c1   :  { %10080 = vmatpush3.bf16.msra.mxu0 %v12362_v17 }
0x14c2   :  { %10081 = vmatprep.subr.bf16.mxu0 %v10454_v0 }
0x14c5   :  { %10083 = vmatpush3.bf16.msra.mxu0 %v12372_v62 }
0x14c6   :  { %10108 = vmatprep.subr.bf16.mxu0 %v10454_v0 }
0x14c8   :  { %8348 = vmatmul.mubr.f32.vlgmr.msra.gmra.mrb[50].mxu0 %v12289_v12 }
0x14c9   :  { %8417 = vmatprep.mubr.msk.f32.mxu0 %vm10455_vm0, %v10456_v8  ;;  %10110 = vmatpush3.bf16.msra.mxu0 %v12535_v50 }
0x14ca   :  { %10111 = vmatprep.subr.bf16.mxu0 %v10454_v0 }
0x14cd   :  { %10113 = vmatpush3.bf16.msra.mxu0 %v12541_v33 }
0x14ce   :  { %10114 = vmatprep.subr.bf16.mxu0 %v10454_v0 }
0x14d1   :  { %10116 = vmatpush3.bf16.msra.mxu0 %v12551_v44 }
0x14d2   :  { %10117 = vmatprep.subr.bf16.mxu0 %v10454_v0 }
0x14d5   :  { %10119 = vmatpush3.bf16.msra.mxu0 %v12561_v63 }
0x14d6   :  { %10120 = vmatprep.subr.bf16.mxu0 %v10454_v0 }
0x14d9   :  { %10122 = vmatpush3.bf16.msra.mxu0 %v12571_v54 }
0x14da   :  { %10123 = vmatprep.subr.bf16.mxu0 %v10454_v0 }
0x14dd   :  { %10125 = vmatpush3.bf16.msra.mxu0 %v12581_v29 }
0x14de   :  { %10126 = vmatprep.subr.bf16.mxu0 %v10454_v0 }
0x14e1   :  { %10128 = vmatpush3.bf16.msra.mxu0 %v12591_v18 }
0x14e2   :  { %10129 = vmatprep.subr.bf16.mxu0 %v10454_v0 }
0x14e5   :  { %10131 = vmatpush3.bf16.msra.mxu0 %v12602_v55 }
0x14e6   :  { %10156 = vmatprep.subr.bf16.mxu0 %v10454_v0 }
0x1557   :  { %v4295_v24 = vpop.f32.mrb[52].mxu1 }
0x1558   :  { %v8314_v42 = vpop.f32.mrb[53].mxu1 }
0x157b   :  { %v4225_v19 = vpop.f32.mrb[48].mxu0 }
0x157c   :  { %v4226_v31 = vadd.f32 %v12609_v9, %v4225_v19  ;;  %v8279_v7 = vpop.f32.mrb[49].mxu0  ;;  %v4453_v19 = vld [vmem:[%s13083_s4 + $0x7e0] sm:$0xff] }
0x157e   :  { %8418 = vmatmul.mubr.f32.vlgmr.msra.gmra.mrb[52].mxu0 %v4226_v31  ;;  %v4454_v31 = vld [vmem:[%s13083_s4 + $0x7e8] sm:$0xff] }
0x157f   :  { %8487 = vmatprep.mubr.msk.f32.mxu0 %vm10455_vm0, %v10456_v8  ;;  %v12682_v7 = vpack.c.bf16 %v4454_v31, %v4453_v19  ;;  %v4630_v19 = vld [vmem:[%s13083_s4 + $0x8d0] sm:$0xff]  ;;  %v4631_v31 = vld [vmem:[%s13083_s4 + $0x8d8] sm:$0xff] }
0x159b   :  { %v4365_v47 = vpop.f32.mrb[50].mxu0 }
0x159c   :  { %v4366_v45 = vadd.f32 %v4365_v47, %v4295_v24  ;;  %v8349_v16 = vpop.f32.mrb[51].mxu0  ;;  %v4452_v24 = vld [vmem:[%s13083_s4 + $0x7d8] sm:$0xff]  ;;  %v4455_v47 = vld [vmem:[%s13083_s4 + $0x7f0] sm:$0xff] }
0x159d   :  { %v12672_v42 = vpack.c.bf16 %v4452_v24, %v4451_v40  ;;  %v4629_v40 = vld [vmem:[%s13083_s4 + $0x8c8] sm:$0xff] }
0x159e   :  { %v4369_v39 = vadd.f32 %v12500_v23, %v4366_v45  ;;  %v4456_v45 = vld [vmem:[%s13083_s4 + $0x7f8] sm:$0xff]  ;;  %v12761_v24 = vpack.c.bf16 %v4629_v40, %v4628_v26 }
0x159f   :  { %v12692_v16 = vpack.c.bf16 %v4456_v45, %v4455_v47  ;;  %v12771_v47 = vpack.c.bf16 %v4631_v31, %v4630_v19  ;;  %v4632_v45 = vld [vmem:[%s13083_s4 + $0x8e0] sm:$0xff]  ;;  %v12816_v31 = vld [vmem:[%s13085_s5 + $0xa] ss:$0 sm:$0xff] }
0x15a0   :  { %v4370_v14 = vmax.f32 %v4369_v39, 0.0 }
0x15a2   :  { %8383 = vmatmul.mubr.f32.vlgmr.msra.gmra.mrb[54].mxu1 %v4370_v14  ;;  %v4623_v14 = vld [vmem:[%s13083_s4 + $0x898] sm:$0xff] }
0x15a3   :  { %10134 = vmatpush3.bf16.msra.mxu1 %v12621_v49  ;;  %8452 = vmatprep.mubr.msk.f32.mxu1 %vm10455_vm0, %v10456_v8  ;;  %v12731_v10 = vpack.c.bf16 %v4623_v14, %v4622_v32  ;;  %v4634_v32 = vld [vmem:[%s13083_s4 + $0x8f0] sm:$0xff]  ;;  %v4635_v14 = vld [vmem:[%s13083_s4 + $0x8f8] sm:$0xff] }
0x15a4   :  { %10135 = vmatprep.subr.bf16.mxu1 %v10454_v0  ;;  %v12792_v21 = vpack.c.bf16 %v4635_v14, %v4634_v32 }
0x15a7   :  { %10137 = vmatpush3.bf16.msra.mxu1 %v12630_v56 }
0x15a8   :  { %10138 = vmatprep.subr.bf16.mxu1 %v10454_v0 }
0x15ab   :  { %10140 = vmatpush3.bf16.msra.mxu1 %v12642_v59 }
0x15ac   :  { %10141 = vmatprep.subr.bf16.mxu1 %v10454_v0 }
0x15af   :  { %10143 = vmatpush3.bf16.msra.mxu1 %v12652_v20 }
0x15b0   :  { %10144 = vmatprep.subr.bf16.mxu1 %v10454_v0 }
0x15b3   :  { %10146 = vmatpush3.bf16.msra.mxu1 %v12662_v13 }
0x15b4   :  { %10147 = vmatprep.subr.bf16.mxu1 %v10454_v0 }
0x15b7   :  { %10149 = vmatpush3.bf16.msra.mxu1 %v12672_v42 }
0x15b8   :  { %10150 = vmatprep.subr.bf16.mxu1 %v10454_v0 }
0x15bb   :  { %10152 = vmatpush3.bf16.msra.mxu1 %v12682_v7 }
0x15bc   :  { %10153 = vmatprep.subr.bf16.mxu1 %v10454_v0 }
0x15bf   :  { %10155 = vmatpush3.bf16.msra.mxu1 %v12692_v16 }
0x15c0   :  { %10180 = vmatprep.subr.bf16.mxu1 %v10454_v0 }
0x15c2   :  { %8453 = vmatmul.mubr.f32.vlgmr.msra.gmra.mrb[56].mxu1 %v12289_v12  ;;  %v4620_v12 = vld [vmem:[%s13083_s4 + $0x880] sm:$0xff] }
0x15c3   :  { %10182 = vmatpush3.bf16.msra.mxu1 %v12535_v50  ;;  %8522 = vmatprep.mubr.msk.f32.mxu1 %vm10455_vm0, %v10456_v8  ;;  %v12725_v39 = vpack.c.bf16 %v4621_v38, %v4620_v12  ;;  %v4633_v12 = vld [vmem:[%s13083_s4 + $0x8e8] sm:$0xff] }
0x15c4   :  { %10183 = vmatprep.subr.bf16.mxu1 %v10454_v0  ;;  %v12781_v38 = vpack.c.bf16 %v4633_v12, %v4632_v45 }
0x15c5   :  { %10158 = vmatpush3.bf16.msra.mxu0 %v12725_v39 }
0x15c6   :  { %10159 = vmatprep.subr.bf16.mxu0 %v10454_v0 }
0x15c7   :  { %10185 = vmatpush3.bf16.msra.mxu1 %v12541_v33 }
0x15c8   :  { %10186 = vmatprep.subr.bf16.mxu1 %v10454_v0 }
0x15c9   :  { %10161 = vmatpush3.bf16.msra.mxu0 %v12731_v10 }
0x15ca   :  { %10162 = vmatprep.subr.bf16.mxu0 %v10454_v0 }
0x15cb   :  { %10188 = vmatpush3.bf16.msra.mxu1 %v12551_v44 }
0x15cc   :  { %10189 = vmatprep.subr.bf16.mxu1 %v10454_v0 }
0x15cd   :  { %10164 = vmatpush3.bf16.msra.mxu0 %v12741_v46 }
0x15ce   :  { %10165 = vmatprep.subr.bf16.mxu0 %v10454_v0 }
0x15cf   :  { %10191 = vmatpush3.bf16.msra.mxu1 %v12561_v63 }
0x15d0   :  { %10192 = vmatprep.subr.bf16.mxu1 %v10454_v0 }
0x15d1   :  { %10167 = vmatpush3.bf16.msra.mxu0 %v12751_v52 }
0x15d2   :  { %10168 = vmatprep.subr.bf16.mxu0 %v10454_v0 }
0x15d3   :  { %10194 = vmatpush3.bf16.msra.mxu1 %v12571_v54 }
0x15d4   :  { %10195 = vmatprep.subr.bf16.mxu1 %v10454_v0 }
0x15d5   :  { %10170 = vmatpush3.bf16.msra.mxu0 %v12761_v24 }
0x15d6   :  { %10171 = vmatprep.subr.bf16.mxu0 %v10454_v0 }
0x15d7   :  { %10197 = vmatpush3.bf16.msra.mxu1 %v12581_v29 }
0x15d8   :  { %10198 = vmatprep.subr.bf16.mxu1 %v10454_v0 }
0x15d9   :  { %10173 = vmatpush3.bf16.msra.mxu0 %v12771_v47 }
0x15da   :  { %10174 = vmatprep.subr.bf16.mxu0 %v10454_v0 }
0x15db   :  { %10200 = vmatpush3.bf16.msra.mxu1 %v12591_v18 }
0x15dc   :  { %10201 = vmatprep.subr.bf16.mxu1 %v10454_v0 }
0x15dd   :  { %10176 = vmatpush3.bf16.msra.mxu0 %v12781_v38 }
0x15de   :  { %10177 = vmatprep.subr.bf16.mxu0 %v10454_v0 }
0x15df   :  { %10203 = vmatpush3.bf16.msra.mxu1 %v12602_v55 }
0x15e0   :  { %10228 = vmatprep.subr.bf16.mxu1 %v10454_v0 }
0x15e1   :  { %10179 = vmatpush3.bf16.msra.mxu0 %v12792_v21 }
0x15e2   :  { %10204 = vmatprep.subr.bf16.mxu0 %v10454_v0 }
0x1651   :  { %v4539_v58 = vpop.f32.mrb[52].mxu0 }
0x1652   :  { %v8419_v5 = vpop.f32.mrb[53].mxu0 }
0x1675   :  { %v4437_v25 = vpop.f32.mrb[54].mxu1 }
0x1676   :  { %v4438_v26 = vadd.f32 %v12609_v9, %v4437_v25  ;;  %v8384_v40 = vpop.f32.mrb[55].mxu1  ;;  %v5362_v25 = vld [vmem:[%s13083_s4 + $0x978] sm:$0xff] }
0x1677   :  { %v5439_v40 = vld [vmem:[%s13083_s4 + $0x980] sm:$0xff] }
0x1678   :  { %8523 = vmatmul.mubr.f32.vlgmr.msra.gmra.mrb[58].mxu1 %v4438_v26 }
0x1679   :  { %10230 = vmatpush3.bf16.msra.mxu1 %v12725_v39  ;;  %8592 = vmatprep.mubr.msk.f32.mxu1 %vm10455_vm0, %v10456_v8 }
0x167a   :  { %10231 = vmatprep.subr.bf16.mxu1 %v10454_v0 }
0x167d   :  { %10233 = vmatpush3.bf16.msra.mxu1 %v12731_v10 }
0x167e   :  { %10234 = vmatprep.subr.bf16.mxu1 %v10454_v0 }
0x1681   :  { %10236 = vmatpush3.bf16.msra.mxu1 %v12741_v46 }
0x1682   :  { %10237 = vmatprep.subr.bf16.mxu1 %v10454_v0 }
0x1685   :  { %10239 = vmatpush3.bf16.msra.mxu1 %v12751_v52 }
0x1686   :  { %10240 = vmatprep.subr.bf16.mxu1 %v10454_v0 }
0x1689   :  { %10242 = vmatpush3.bf16.msra.mxu1 %v12761_v24 }
0x168a   :  { %10243 = vmatprep.subr.bf16.mxu1 %v10454_v0 }
0x168d   :  { %10245 = vmatpush3.bf16.msra.mxu1 %v12771_v47 }
0x168e   :  { %10246 = vmatprep.subr.bf16.mxu1 %v10454_v0 }
0x1691   :  { %10248 = vmatpush3.bf16.msra.mxu1 %v12781_v38 }
0x1692   :  { %10249 = vmatprep.subr.bf16.mxu1 %v10454_v0 }
0x1695   :  { %v4609_v19 = vpop.f32.mrb[56].mxu1  ;;  %10251 = vmatpush3.bf16.msra.mxu1 %v12792_v21 }
0x1696   :  { %v4610_v45 = vadd.f32 %v4609_v19, %v4539_v58  ;;  %v8454_v12 = vpop.f32.mrb[57].mxu1  ;;  %10276 = vmatprep.subr.bf16.mxu1 %v10454_v0  ;;  %v5440_v19 = vld [vmem:[%s13083_s4 + $0x988] sm:$0xff] }
0x1698   :  { %v4618_v32 = vadd.f32 %v12816_v31, %v4610_v45  ;;  %v5442_v45 = vld [vmem:[%s13083_s4 + $0x998] sm:$0xff] }
0x169a   :  { %v4619_v14 = vmax.f32 %v4618_v32, 0.0  ;;  %v5443_v32 = vld [vmem:[%s13083_s4 + $0x9a0] sm:$0xff] }
0x169c   :  { %8488 = vmatmul.mubr.f32.vlgmr.msra.gmra.mrb[54].mxu0 %v4619_v14  ;;  %v5444_v14 = vld [vmem:[%s13083_s4 + $0x9a8] sm:$0xff] }
0x169d   :  { %10206 = vmatpush3.bf16.msra.mxu0 %v12621_v49  ;;  %8557 = vmatprep.mubr.msk.f32.mxu0 %vm10455_vm0, %v10456_v8 }
0x169e   :  { %10207 = vmatprep.subr.bf16.mxu0 %v10454_v0 }
0x16a1   :  { %10209 = vmatpush3.bf16.msra.mxu0 %v12630_v56 }
0x16a2   :  { %10210 = vmatprep.subr.bf16.mxu0 %v10454_v0 }
0x16a5   :  { %10212 = vmatpush3.bf16.msra.mxu0 %v12642_v59 }
0x16a6   :  { %10213 = vmatprep.subr.bf16.mxu0 %v10454_v0 }
0x16a9   :  { %10215 = vmatpush3.bf16.msra.mxu0 %v12652_v20 }
0x16aa   :  { %10216 = vmatprep.subr.bf16.mxu0 %v10454_v0 }
0x16ad   :  { %10218 = vmatpush3.bf16.msra.mxu0 %v12662_v13 }
0x16ae   :  { %10219 = vmatprep.subr.bf16.mxu0 %v10454_v0 }
0x16b1   :  { %10221 = vmatpush3.bf16.msra.mxu0 %v12672_v42 }
0x16b2   :  { %10222 = vmatprep.subr.bf16.mxu0 %v10454_v0 }
0x16b5   :  { %10224 = vmatpush3.bf16.msra.mxu0 %v12682_v7 }
0x16b6   :  { %10225 = vmatprep.subr.bf16.mxu0 %v10454_v0 }
0x16b9   :  { %10227 = vmatpush3.bf16.msra.mxu0 %v12692_v16 }
0x16ba   :  { %10252 = vmatprep.subr.bf16.mxu0 %v10454_v0 }
0x16bc   :  { %8558 = vmatmul.mubr.f32.vlgmr.msra.gmra.mrb[56].mxu0 %v12478_v57 }
0x16bd   :  { %10254 = vmatpush3.bf16.msra.mxu0 %v12205_v30  ;;  %8627 = vmatprep.mubr.msk.f32.mxu0 %vm10455_vm0, %v10456_v8 }
0x16be   :  { %10255 = vmatprep.subr.bf16.mxu0 %v10454_v0 }
0x16c1   :  { %10257 = vmatpush3.bf16.msra.mxu0 %v12216_v22 }
0x16c2   :  { %10258 = vmatprep.subr.bf16.mxu0 %v10454_v0 }
0x16c5   :  { %10260 = vmatpush3.bf16.msra.mxu0 %v12228_v1 }
0x16c6   :  { %10261 = vmatprep.subr.bf16.mxu0 %v10454_v0 }
0x16c9   :  { %10263 = vmatpush3.bf16.msra.mxu0 %v12238_v51 }
0x16ca   :  { %10264 = vmatprep.subr.bf16.mxu0 %v10454_v0 }
0x16cd   :  { %10266 = vmatpush3.bf16.msra.mxu0 %v12248_v6 }
0x16ce   :  { %10267 = vmatprep.subr.bf16.mxu0 %v10454_v0 }
0x16d1   :  { %10269 = vmatpush3.bf16.msra.mxu0 %v12258_v36 }
0x16d2   :  { %10270 = vmatprep.subr.bf16.mxu0 %v10454_v0 }
0x16d5   :  { %10272 = vmatpush3.bf16.msra.mxu0 %v12268_v43  ;;  %v12878_v43 = vld [vmem:[%s13085_s5 + $0xb] ss:$0 sm:$0xff] }
0x16d6   :  { %10273 = vmatprep.subr.bf16.mxu0 %v10454_v0 }
0x16d9   :  { %10275 = vmatpush3.bf16.msra.mxu0 %v12279_v15 }
0x16da   :  { %10300 = vmatprep.subr.bf16.mxu0 %v10454_v0 }
0x174b   :  { %v4777_v30 = vpop.f32.mrb[58].mxu1 }
0x174c   :  { %v8524_v22 = vpop.f32.mrb[59].mxu1 }
0x174d   :  { %v5445_v22 = vld [vmem:[%s13083_s4 + $0x9b0] sm:$0xff] }
0x176f   :  { %v4707_v1 = vpop.f32.mrb[54].mxu0 }
0x1770   :  { %v8489_v51 = vpop.f32.mrb[55].mxu0  ;;  %v4708_v15 = vadd.f32 %v12878_v43, %v4707_v1  ;;  %v5446_v1 = vld [vmem:[%s13083_s4 + $0x9b8] sm:$0xff] }
0x1771   :  { %v10430_v51 = vpack.c.bf16 %v5446_v1, %v5445_v22 }
0x178f   :  { %v4847_v57 = vpop.f32.mrb[56].mxu0 }
0x1790   :  { %v4848_v6 = vadd.f32 %v4847_v57, %v4777_v30  ;;  %v8559_v58 = vpop.f32.mrb[57].mxu0  ;;  %v10427_v30 = vpack.c.bf16 %v5444_v14, %v5443_v32  ;;  %v5447_v57 = vld [vmem:[%s13083_s4 + $0x9c0] sm:$0xff] }
0x1792   :  { %v4851_v5 = vadd.f32 %v12816_v31, %v4848_v6  ;;  %v5448_v6 = vld [vmem:[%s13083_s4 + $0x9c8] sm:$0xff] }
0x1793   :  { %v10433_v58 = vpack.c.bf16 %v5448_v6, %v5447_v57 }
0x1794   :  { %v4852_v36 = vmax.f32 %v4851_v5, 0.0  ;;  %v5449_v5 = vld [vmem:[%s13083_s4 + $0x9d0] sm:$0xff] }
0x1796   :  { %8593 = vmatmul.mubr.f32.vlgmr.msra.gmra.mrb[60].mxu1 %v4852_v36  ;;  %v5450_v36 = vld [vmem:[%s13083_s4 + $0x9d8] sm:$0xff] }
0x1797   :  { %10278 = vmatpush3.bf16.msra.mxu1 %v12301_v3  ;;  %8662 = vmatprep.mubr.msk.f32.mxu1 %vm10455_vm0, %v10456_v8 }
0x1798   :  { %10279 = vmatprep.subr.bf16.mxu1 %v10454_v0 }
0x179b   :  { %10281 = vmatpush3.bf16.msra.mxu1 %v12310_v61 }
0x179c   :  { %10282 = vmatprep.subr.bf16.mxu1 %v10454_v0 }
0x179f   :  { %10284 = vmatpush3.bf16.msra.mxu1 %v12322_v2 }
0x17a0   :  { %10285 = vmatprep.subr.bf16.mxu1 %v10454_v0 }
0x17a3   :  { %10287 = vmatpush3.bf16.msra.mxu1 %v12332_v37 }
0x17a4   :  { %10288 = vmatprep.subr.bf16.mxu1 %v10454_v0 }
0x17a7   :  { %10290 = vmatpush3.bf16.msra.mxu1 %v12342_v35 }
0x17a8   :  { %10291 = vmatprep.subr.bf16.mxu1 %v10454_v0 }
0x17ab   :  { %10293 = vmatpush3.bf16.msra.mxu1 %v12352_v28 }
0x17ac   :  { %10294 = vmatprep.subr.bf16.mxu1 %v10454_v0 }
0x17af   :  { %10296 = vmatpush3.bf16.msra.mxu1 %v12362_v17 }
0x17b0   :  { %10297 = vmatprep.subr.bf16.mxu1 %v10454_v0 }
0x17b3   :  { %10299 = vmatpush3.bf16.msra.mxu1 %v12372_v62 }
0x17b4   :  { %10324 = vmatprep.subr.bf16.mxu1 %v10454_v0 }
0x17b6   :  { %8663 = vmatmul.mubr.f32.vlgmr.msra.gmra.mrb[62].mxu1 %v4708_v15  ;;  %v10436_v15 = vpack.c.bf16 %v5450_v36, %v5449_v5 }
0x17b7   :  { %10326 = vmatpush3.bf16.msra.mxu1 %v12535_v50  ;;  %8732 = vmatprep.mubr.msk.f32.mxu1 %vm10455_vm0, %v10456_v8  ;;  %v5349_v50 = vld [vmem:[%s13083_s4 + $0x910] sm:$0xff] }
0x17b8   :  { %10327 = vmatprep.subr.bf16.mxu1 %v10454_v0 }
0x17bb   :  { %10329 = vmatpush3.bf16.msra.mxu1 %v12541_v33 }
0x17bc   :  { %10330 = vmatprep.subr.bf16.mxu1 %v10454_v0 }
0x17bf   :  { %10332 = vmatpush3.bf16.msra.mxu1 %v12551_v44  ;;  %v5350_v44 = vld [vmem:[%s13083_s4 + $0x918] sm:$0xff] }
0x17c0   :  { %10333 = vmatprep.subr.bf16.mxu1 %v10454_v0 }
0x17c3   :  { %10335 = vmatpush3.bf16.msra.mxu1 %v12561_v63  ;;  %v10400_v63 = vpack.c.bf16 %v5350_v44, %v5349_v50 }
0x17c4   :  { %10336 = vmatprep.subr.bf16.mxu1 %v10454_v0 }
0x17c7   :  { %10338 = vmatpush3.bf16.msra.mxu1 %v12571_v54  ;;  %v5351_v54 = vld [vmem:[%s13083_s4 + $0x920] sm:$0xff] }
0x17c8   :  { %10339 = vmatprep.subr.bf16.mxu1 %v10454_v0 }
0x17cb   :  { %10341 = vmatpush3.bf16.msra.mxu1 %v12581_v29  ;;  %v5352_v29 = vld [vmem:[%s13083_s4 + $0x928] sm:$0xff] }
0x17cc   :  { %10342 = vmatprep.subr.bf16.mxu1 %v10454_v0 }
0x17cf   :  { %10344 = vmatpush3.bf16.msra.mxu1 %v12591_v18  ;;  %v10403_v18 = vpack.c.bf16 %v5352_v29, %v5351_v54 }
0x17d0   :  { %10345 = vmatprep.subr.bf16.mxu1 %v10454_v0 }
0x17d3   :  { %10347 = vmatpush3.bf16.msra.mxu1 %v12602_v55  ;;  %v5353_v55 = vld [vmem:[%s13083_s4 + $0x930] sm:$0xff] }
0x17d4   :  { %10372 = vmatprep.subr.bf16.mxu1 %v10454_v0 }
0x1869   :  { %v4919_v3 = vpop.f32.mrb[60].mxu1 }
0x186a   :  { %v4920_v61 = vadd.f32 %v12878_v43, %v4919_v3  ;;  %v8594_v2 = vpop.f32.mrb[61].mxu1  ;;  %v5451_v3 = vld [vmem:[%s13083_s4 + $0x9e0] sm:$0xff] }
0x186c   :  { %8628 = vmatmul.mubr.f32.vlgmr.msra.gmra.mrb[58].mxu0 %v4920_v61 }
0x186d   :  { %10302 = vmatpush3.bf16.msra.mxu0 %v12406_v53  ;;  %8697 = vmatprep.mubr.msk.f32.mxu0 %vm10455_vm0, %v10456_v8 }
0x186e   :  { %10303 = vmatprep.subr.bf16.mxu0 %v10454_v0 }
0x1871   :  { %10305 = vmatpush3.bf16.msra.mxu0 %v12412_v4 }
0x1872   :  { %10306 = vmatprep.subr.bf16.mxu0 %v10454_v0 }
0x1875   :  { %10308 = vmatpush3.bf16.msra.mxu0 %v12422_v60 }
0x1876   :  { %10309 = vmatprep.subr.bf16.mxu0 %v10454_v0 }
0x1879   :  { %10311 = vmatpush3.bf16.msra.mxu0 %v12432_v34 }
0x187a   :  { %10312 = vmatprep.subr.bf16.mxu0 %v10454_v0 }
0x187d   :  { %10314 = vmatpush3.bf16.msra.mxu0 %v12442_v41 }
0x187e   :  { %10315 = vmatprep.subr.bf16.mxu0 %v10454_v0 }
0x1881   :  { %10317 = vmatpush3.bf16.msra.mxu0 %v12452_v27 }
0x1882   :  { %10318 = vmatprep.subr.bf16.mxu0 %v10454_v0 }
0x1885   :  { %10320 = vmatpush3.bf16.msra.mxu0 %v12462_v11 }
0x1886   :  { %10321 = vmatprep.subr.bf16.mxu0 %v10454_v0 }
0x1889   :  { %v5059_v37 = vpop.f32.mrb[62].mxu1  ;;  %10323 = vmatpush3.bf16.msra.mxu0 %v12473_v48  ;;  %v5347_v48 = vld [vmem:[%s13083_s4 + $0x900] sm:$0xff] }
0x188a   :  { %v8664_v35 = vpop.f32.mrb[63].mxu1  ;;  %10348 = vmatprep.subr.bf16.mxu0 %v10454_v0 }
0x193f   :  { %v4989_v28 = vpop.f32.mrb[58].mxu0 }
0x1940   :  { %v5060_v17 = vadd.f32 %v5059_v37, %v4989_v28  ;;  %v8629_v62 = vpop.f32.mrb[59].mxu0 }
0x1941   :  { %v5454_v62 = vld [vmem:[%s13083_s4 + $0x9f8] sm:$0xff] }
0x1942   :  { %v5063_v53 = vadd.f32 %v12500_v23, %v5060_v17  ;;  %v5348_v23 = vld [vmem:[%s13083_s4 + $0x908] sm:$0xff]  ;;  %v5453_v17 = vld [vmem:[%s13083_s4 + $0x9f0] sm:$0xff] }
0x1943   :  { %v10397_v33 = vpack.c.bf16 %v5348_v23, %v5347_v48 }
0x1944   :  { %v5064_v4 = vmax.f32 %v5063_v53, 0.0  ;;  %v10442_v53 = vpack.c.bf16 %v5454_v62, %v5453_v17 }
0x1946   :  { %8698 = vmatmul.mubr.f32.vlgmr.msra.gmra.mrb[60].mxu0 %v5064_v4  ;;  %v5562_v4 = vld [vmem:[%s13085_s5 + $0xc] ss:$0 sm:$0xff] }
0x1947   :  { %10350 = vmatpush3.bf16.msra.mxu0 %v12621_v49  ;;  %8767 = vmatprep.mubr.msk.f32.mxu0 %vm10455_vm0, %v10456_v8 }
0x1948   :  { %10351 = vmatprep.subr.bf16.mxu0 %v10454_v0 }
0x194b   :  { %10353 = vmatpush3.bf16.msra.mxu0 %v12630_v56  ;;  %v5355_v56 = vld [vmem:[%s13083_s4 + $0x940] sm:$0xff] }
0x194c   :  { %10354 = vmatprep.subr.bf16.mxu0 %v10454_v0 }
0x194f   :  { %10356 = vmatpush3.bf16.msra.mxu0 %v12642_v59  ;;  %v5356_v59 = vld [vmem:[%s13083_s4 + $0x948] sm:$0xff] }
0x1950   :  { %10357 = vmatprep.subr.bf16.mxu0 %v10454_v0 }
0x1953   :  { %10359 = vmatpush3.bf16.msra.mxu0 %v12652_v20  ;;  %v10409_v20 = vpack.c.bf16 %v5356_v59, %v5355_v56 }
0x1954   :  { %10360 = vmatprep.subr.bf16.mxu0 %v10454_v0 }
0x1957   :  { %10362 = vmatpush3.bf16.msra.mxu0 %v12662_v13  ;;  %v5357_v13 = vld [vmem:[%s13083_s4 + $0x950] sm:$0xff] }
0x1958   :  { %10363 = vmatprep.subr.bf16.mxu0 %v10454_v0 }
0x195b   :  { %10365 = vmatpush3.bf16.msra.mxu0 %v12672_v42  ;;  %v5358_v42 = vld [vmem:[%s13083_s4 + $0x958] sm:$0xff] }
0x195c   :  { %10366 = vmatprep.subr.bf16.mxu0 %v10454_v0 }
0x195f   :  { %10368 = vmatpush3.bf16.msra.mxu0 %v12682_v7  ;;  %v10412_v7 = vpack.c.bf16 %v5358_v42, %v5357_v13 }
0x1960   :  { %10369 = vmatprep.subr.bf16.mxu0 %v10454_v0 }
0x1963   :  { %10371 = vmatpush3.bf16.msra.mxu0 %v12692_v16  ;;  %v5359_v16 = vld [vmem:[%s13083_s4 + $0x960] sm:$0xff] }
0x1964   :  { %10396 = vmatprep.subr.bf16.mxu0 %v10454_v0 }
0x1966   :  { %8768 = vmatmul.mubr.f32.vlgmr.msra.gmra.mrb[62].mxu0 %v4920_v61  ;;  %v5452_v61 = vld [vmem:[%s13083_s4 + $0x9e8] sm:$0xff] }
0x1967   :  { %8837 = vmatprep.mubr.msk.f32.mxu0 %vm10455_vm0, %v10456_v8  ;;  %10398 = vmatpush3.bf16.msra.mxu0 %v10397_v33  ;;  %v10439_v2 = vpack.c.bf16 %v5452_v61, %v5451_v3 }
0x1968   :  { %10399 = vmatprep.subr.bf16.mxu0 %v10454_v0 }
0x196b   :  { %10401 = vmatpush3.bf16.msra.mxu0 %v10400_v63 }
0x196c   :  { %10402 = vmatprep.subr.bf16.mxu0 %v10454_v0 }
0x196f   :  { %10404 = vmatpush3.bf16.msra.mxu0 %v10403_v18 }
0x1970   :  { %10405 = vmatprep.subr.bf16.mxu0 %v10454_v0 }
0x1a19   :  { %v5131_v60 = vpop.f32.mrb[60].mxu0 }
0x1a1a   :  { %v5132_v34 = vadd.f32 %v12609_v9, %v5131_v60  ;;  %v8699_v41 = vpop.f32.mrb[61].mxu0  ;;  %v5354_v9 = vld [vmem:[%s13083_s4 + $0x938] sm:$0xff] }
0x1a1b   :  { %v10406_v49 = vpack.c.bf16 %v5354_v9, %v5353_v55  ;;  %v5563_v41 = vld [vmem:[%s13085_s5 + $0xd] ss:$0 sm:$0xff] }
0x1a1c   :  { %8733 = vmatmul.mubr.f32.vlgmr.msra.gmra.mrb[64].mxu1 %v5132_v34 }
0x1a1d   :  { %10374 = vmatpush3.bf16.msra.mxu1 %v12725_v39  ;;  %8802 = vmatprep.mubr.msk.f32.mxu1 %vm10455_vm0, %v10456_v8  ;;  %v5360_v39 = vld [vmem:[%s13083_s4 + $0x968] sm:$0xff] }
0x1a1e   :  { %10375 = vmatprep.subr.bf16.mxu1 %v10454_v0  ;;  %10407 = vmatpush3.bf16.msra.mxu0 %v10406_v49 }
0x1a1f   :  { %10408 = vmatprep.subr.bf16.mxu0 %v10454_v0 }
0x1a21   :  { %10377 = vmatpush3.bf16.msra.mxu1 %v12731_v10  ;;  %v10415_v10 = vpack.c.bf16 %v5360_v39, %v5359_v16 }
0x1a22   :  { %10378 = vmatprep.subr.bf16.mxu1 %v10454_v0  ;;  %10410 = vmatpush3.bf16.msra.mxu0 %v10409_v20 }
0x1a23   :  { %10411 = vmatprep.subr.bf16.mxu0 %v10454_v0 }
0x1a25   :  { %10380 = vmatpush3.bf16.msra.mxu1 %v12741_v46 }
0x1a26   :  { %10381 = vmatprep.subr.bf16.mxu1 %v10454_v0  ;;  %10413 = vmatpush3.bf16.msra.mxu0 %v10412_v7 }
0x1a27   :  { %10414 = vmatprep.subr.bf16.mxu0 %v10454_v0 }
0x1a29   :  { %10383 = vmatpush3.bf16.msra.mxu1 %v12751_v52 }
0x1a2a   :  { %10384 = vmatprep.subr.bf16.mxu1 %v10454_v0  ;;  %10416 = vmatpush3.bf16.msra.mxu0 %v10415_v10 }
0x1a2b   :  { %10417 = vmatprep.subr.bf16.mxu0 %v10454_v0 }
0x1a2d   :  { %10386 = vmatpush3.bf16.msra.mxu1 %v12761_v24 }
0x1a2e   :  { %10387 = vmatprep.subr.bf16.mxu1 %v10454_v0 }
0x1a31   :  { %10389 = vmatpush3.bf16.msra.mxu1 %v12771_v47 }
0x1a32   :  { %10390 = vmatprep.subr.bf16.mxu1 %v10454_v0 }
0x1a35   :  { %10392 = vmatpush3.bf16.msra.mxu1 %v12781_v38 }
0x1a36   :  { %10393 = vmatprep.subr.bf16.mxu1 %v10454_v0 }
0x1a39   :  { %v5271_v27 = vpop.f32.mrb[62].mxu0  ;;  %10395 = vmatpush3.bf16.msra.mxu1 %v12792_v21  ;;  %v5361_v21 = vld [vmem:[%s13083_s4 + $0x970] sm:$0xff] }
0x1a3a   :  { %v8769_v11 = vpop.f32.mrb[63].mxu0  ;;  %10420 = vmatprep.subr.bf16.mxu1 %v10454_v0  ;;  %v10418_v26 = vpack.c.bf16 %v5362_v25, %v5361_v21 }
0x1a3c   :  { %10419 = vmatpush3.bf16.msra.mxu0 %v10418_v26 }
0x1aef   :  { %v5201_v46 = vpop.f32.mrb[64].mxu1 }
0x1af0   :  { %v5272_v52 = vadd.f32 %v5271_v27, %v5201_v46  ;;  %v8734_v24 = vpop.f32.mrb[65].mxu1 }
0x1af2   :  { %v5275_v47 = vadd.f32 %v12816_v31, %v5272_v52  ;;  %v10421_v31 = vpack.c.bf16 %v5440_v19, %v5439_v40 }
0x1af4   :  { %v5276_v38 = vmax.f32 %v5275_v47, 0.0 }
0x1af6   :  { %8803 = vmatmul.mubr.f32.vlgmr.msra.gmra.mrb[66].mxu1 %v5276_v38 }
0x1af7   :  { %8872 = vmatprep.mubr.msk.f32.mxu1 %vm10455_vm0, %v10456_v8  ;;  %v5441_v8 = vld [vmem:[%s13083_s4 + $0x990] sm:$0xff]  ;;  %10422 = vmatpush3.bf16.msra.mxu1 %v10421_v31 }
0x1af8   :  { %v10424_v12 = vpack.c.bf16 %v5442_v45, %v5441_v8  ;;  %10423 = vmatprep.subr.bf16.mxu1 %v10454_v0 }
0x1afb   :  { %10425 = vmatpush3.bf16.msra.mxu1 %v10424_v12 }
0x1afc   :  { %10426 = vmatprep.subr.bf16.mxu1 %v10454_v0 }
0x1aff   :  { %10428 = vmatpush3.bf16.msra.mxu1 %v10427_v30 }
0x1b00   :  { %10429 = vmatprep.subr.bf16.mxu1 %v10454_v0 }
0x1b03   :  { %10431 = vmatpush3.bf16.msra.mxu1 %v10430_v51 }
0x1b04   :  { %10432 = vmatprep.subr.bf16.mxu1 %v10454_v0 }
0x1b07   :  { %10434 = vmatpush3.bf16.msra.mxu1 %v10433_v58 }
0x1b08   :  { %10435 = vmatprep.subr.bf16.mxu1 %v10454_v0 }
0x1b0b   :  { %10437 = vmatpush3.bf16.msra.mxu1 %v10436_v15 }
0x1b0c   :  { %10438 = vmatprep.subr.bf16.mxu1 %v10454_v0 }
0x1b0f   :  { %10440 = vmatpush3.bf16.msra.mxu1 %v10439_v2 }
0x1b10   :  { %10441 = vmatprep.subr.bf16.mxu1 %v10454_v0 }
0x1b13   :  { %10443 = vmatpush3.bf16.msra.mxu1 %v10442_v53 }
0x1bc9   :  { %v5343_v37 = vpop.f32.mrb[66].mxu1 }
0x1bca   :  { %v5344_v35 = vadd.f32 %v12878_v43, %v5343_v37  ;;  %v8804_v28 = vpop.f32.mrb[67].mxu1 }
0x1bcc   :  { %8838 = vmatmul.mubr.f32.vlgmr.msra.gmra.mrb[64].mxu0 %v5344_v35 }
0x1c9f   :  { %v5434_v0 = vpop.f32.mrb[64].mxu0 }
0x1ca0   :  { %v5435_v60 = vadd.f32 %v5562_v4, %v5434_v0  ;;  %v8839_v34 = vpop.f32.mrb[65].mxu0 }
0x1ca2   :  { %v5438_v43 = vmax.f32 %v5435_v60, 0.0 }
0x1ca4   :  { %8873 = vmatmul.mubr.f32.vlgmr.msra.gmra.mrb[68].mxu1 %v5438_v43 }
0x1d77   :  { %v5526_v27 = vpop.f32.mrb[68].mxu1 }
0x1d78   :  { %v5527_v11 = vadd.f32 %v5563_v41, %v5526_v27  ;;  %v8874_v48 = vpop.f32.mrb[69].mxu1 }
0x1d7a   :  { %5530 = vst [vmem:[%s13089_s6] sm:$0xff] %v5527_v11 }

</bundles_post_ra>
